<compile_context>
chip_gen: v7x
topology: tpu7x:2x2x1
jax: 0.10.0
libtpu: 0.0.40
codegen_flags: <defaults>
</compile_context>

<pallas_src>
import functools
import math

import jax
import jax.numpy as jnp
from jax.experimental import pallas as pl
from jax.experimental.pallas import tpu as pltpu


def _lstm_fc_kernel(x_ref, wih_ref, whh_ref, b_ref, fcw_ref, fcb_ref,
                    out_ref, h_sc, c_sc, gx_sc, *, tc, batch, hidden,
                    seq_len, masked):
    blk = pl.program_id(0)
    H = hidden

    @pl.when(blk == 0)
    def _():
        h_sc[...] = jnp.zeros_like(h_sc)
        c_sc[...] = jnp.zeros_like(c_sc)

    # ---- Phase 1: hoisted input projection for this block of tc steps ------
    # One (tc*B, I) x (I, 4H) bf16 GEMM + one bias broadcast, instead of tc
    # tiny per-step GEMMs.  x_ref is already bf16 and lane-dense (no reshape).
    gx_sc[...] = (
        jnp.dot(x_ref[...], wih_ref[...], preferred_element_type=jnp.float32)
        + b_ref[...])

    # ---- Phase 2: serial recurrence over the tc timesteps of this block ----
    def step(t, carry):
        h, c = carry
        row0 = pl.multiple_of(t * batch, batch)
        # W_hh re-read from VMEM each step (cheap) to avoid pinning 32 vregs
        # across the unrolled loop.
        gates = gx_sc[pl.ds(row0, batch), :] + jnp.dot(
            h.astype(jnp.bfloat16), whh_ref[...],
            preferred_element_type=jnp.float32)
        i_g = jax.nn.sigmoid(gates[:, 0 * H:1 * H])
        f_g = jax.nn.sigmoid(gates[:, 1 * H:2 * H])
        g_g = jnp.tanh(gates[:, 2 * H:3 * H])
        o_g = jax.nn.sigmoid(gates[:, 3 * H:4 * H])
        c_new = f_g * c + i_g * g_g            # f32 element-wise (VPU/EUP)
        h_new = o_g * jnp.tanh(c_new)
        if masked:                             # only traced when T was padded
            valid = (blk * tc + t) < seq_len
            h_new = jnp.where(valid, h_new, h)
            c_new = jnp.where(valid, c_new, c)
        return h_new, c_new

    h_new, c_new = jax.lax.fori_loop(
        0, tc, step, (h_sc[...], c_sc[...]), unroll=True)
    h_sc[...] = h_new
    c_sc[...] = c_new

    # ---- Fused Linear head on the final hidden state ------------------------
    @pl.when(blk == pl.num_programs(0) - 1)
    def _():
        out_ref[...] = (
            jnp.dot(h_new.astype(jnp.bfloat16), fcw_ref[...],
                    preferred_element_type=jnp.float32)
            + fcb_ref[...]).astype(out_ref.dtype)


def _choose_time_chunk(T, B, I, H):
    """Timesteps per grid block.

    Targets: (a) fill the MXU M dimension (tc*B >= 256) for the hoisted
    projection GEMM, (b) a single grid block (tc == T) whenever the
    tc-dependent VMEM footprint allows, (c) bound the fully-unrolled
    recurrence code size.
    """
    budget = 24 << 20                        # VMEM for tc-dependent buffers
    per_step = B * (4 * H * 4 + 2 * I * 2)   # gx_sc (f32) + 2x bf16 x rows
    tc_cap = max(1, budget // per_step)
    max_unroll = 128                         # bound unrolled recurrence length
    return max(1, min(T, tc_cap, max_unroll))


def _vmem_limit_bytes(tc, B, I, H, O):
    """Explicit scoped-VMEM request (safe on v5e/v6e/v7x)."""
    x_blk = 2 * tc * B * I * 2                                  # 2x bf16 block
    wts = 2 * (((I + H) * 4 * H + H * O) * 2 + (4 * H + O) * 4)  # 2x weights
    scr = tc * B * 4 * H * 4 + 2 * B * H * 4                     # gx + h + c
    est = x_blk + wts + scr + 2 * B * O * 4
    return int(min(max(est * 5 // 4, 32 << 20), 56 << 20))


def rnn_model_forward(x, params, *, time_chunk=None):
    """x: (B, T, I) float32 (batch_first, like the PyTorch module)."""
    B, T, I = x.shape
    wih, whh, bias, fcw, fcb = (params["w_ih"], params["w_hh"], params["bias"],
                                params["w_fc"], params["b_fc"])
    H = whh.shape[0]
    O = fcw.shape[1]

    if time_chunk is None:
        tc = _choose_time_chunk(T, B, I, H)
    else:
        tc = max(1, min(int(time_chunk), T))
    # Keep tc*B a multiple of the bf16 sublane tile (16 rows) so x blocks and
    # gx_sc row-slices stay aligned; rounding tc UP is fine because we pad T.
    mult = 16 // math.gcd(16, B)
    if tc % mult:
        tc = ((tc + mult - 1) // mult) * mult

    n_blocks = -(-T // tc)
    t_pad = n_blocks * tc
    masked = (t_pad != T)

    # Time-major, bf16 (cast fused into the transpose copy), lane-dense 2-D
    # slab of shape (T_pad*B, I); zero rows for the padded (masked) steps.
    x_flat = jnp.transpose(x, (1, 0, 2)).astype(jnp.bfloat16).reshape(T * B, I)
    if masked:
        x_flat = jnp.pad(x_flat, ((0, (t_pad - T) * B), (0, 0)))

    kernel = functools.partial(_lstm_fc_kernel, tc=tc, batch=B, hidden=H,
                               seq_len=T, masked=masked)

    return pl.pallas_call(
        kernel,
        out_shape=jax.ShapeDtypeStruct((B, O), jnp.float32),
        grid_spec=pltpu.PrefetchScalarGridSpec(
            num_scalar_prefetch=0,
            grid=(n_blocks,),
            in_specs=[
                pl.BlockSpec((tc * B, I), lambda i: (i, 0)),     # x rows (bf16)
                pl.BlockSpec((I, 4 * H), lambda i: (0, 0)),      # W_ih (bf16)
                pl.BlockSpec((H, 4 * H), lambda i: (0, 0)),      # W_hh (bf16)
                pl.BlockSpec((1, 4 * H), lambda i: (0, 0)),      # bias (f32)
                pl.BlockSpec((H, O), lambda i: (0, 0)),          # W_fc (bf16)
                pl.BlockSpec((1, O), lambda i: (0, 0)),          # b_fc (f32)
            ],
            out_specs=pl.BlockSpec((B, O), lambda i: (0, 0)),
            scratch_shapes=[
                pltpu.VMEM((B, H), jnp.float32),            # h state (carried)
                pltpu.VMEM((B, H), jnp.float32),            # c state (carried)
                pltpu.VMEM((tc * B, 4 * H), jnp.float32),   # hoisted x@W_ih+b
            ],
        ),
        compiler_params=pltpu.CompilerParams(
            dimension_semantics=("arbitrary",),   # time recurrence is serial
            vmem_limit_bytes=_vmem_limit_bytes(tc, B, I, H, O)),
    )(x_flat, wih, whh, bias, fcw, fcb)


def init_params(key, input_size, hidden_size, output_size):
    """Deterministic synthetic parameters (PyTorch-style uniform init)."""
    ks = jax.random.split(key, 6)
    bound = 1.0 / jnp.sqrt(hidden_size)
    u = lambda k, shape: jax.random.uniform(k, shape, jnp.float32, -bound, bound)
    # PyTorch stores W_ih as (4H, I), W_hh as (4H, H); we keep the transposed
    # (I, 4H)/(H, 4H) layout for row-major GEMMs.  Gate order: i, f, g, o.
    w_ih = u(ks[0], (input_size, 4 * hidden_size))
    w_hh = u(ks[1], (hidden_size, 4 * hidden_size))
    b_ih = u(ks[2], (4 * hidden_size,))
    b_hh = u(ks[3], (4 * hidden_size,))
    w_fc = u(ks[4], (hidden_size, output_size))
    b_fc = u(ks[5], (output_size,))
    return {
        "w_ih": w_ih.astype(jnp.bfloat16),       # MXU operands in bf16
        "w_hh": w_hh.astype(jnp.bfloat16),
        "bias": (b_ih + b_hh)[None, :],          # f32
        "w_fc": w_fc.astype(jnp.bfloat16),
        "b_fc": b_fc[None, :],                   # f32
    }


def reference_forward(x, params):
    """Pure-JAX reference (torch.nn.LSTM + Linear semantics, same bf16 matmul
    inputs / f32 accumulation as the kernel)."""
    B, T, I = x.shape
    H = params["w_hh"].shape[0]
    w_ih, w_hh = params["w_ih"], params["w_hh"]
    bias = params["bias"][0]

    def step(carry, x_t):
        h, c = carry
        gates = (jnp.dot(x_t.astype(jnp.bfloat16), w_ih,
                         preferred_element_type=jnp.float32)
                 + jnp.dot(h.astype(jnp.bfloat16), w_hh,
                           preferred_element_type=jnp.float32)
                 + bias)
        i_g = jax.nn.sigmoid(gates[:, 0 * H:1 * H])
        f_g = jax.nn.sigmoid(gates[:, 1 * H:2 * H])
        g_g = jnp.tanh(gates[:, 2 * H:3 * H])
        o_g = jax.nn.sigmoid(gates[:, 3 * H:4 * H])
        c_new = f_g * c + i_g * g_g
        h_new = o_g * jnp.tanh(c_new)
        return (h_new, c_new), None

    h0 = jnp.zeros((B, H), jnp.float32)
    c0 = jnp.zeros((B, H), jnp.float32)
    (h_T, _), _ = jax.lax.scan(step, (h0, c0), jnp.transpose(x, (1, 0, 2)))
    return (jnp.dot(h_T.astype(jnp.bfloat16), params["w_fc"],
                    preferred_element_type=jnp.float32)
            + params["b_fc"][0])


if __name__ == "__main__":
    # Small shapes consistent with the module (input_size shrunk from 5000).
    B, T, I, H, O = 8, 16, 128, 128, 24

    key = jax.random.PRNGKey(0)
    k_x, k_p = jax.random.split(key)
    x = jax.random.normal(k_x, (B, T, I), jnp.float32)
    params = init_params(k_p, I, H, O)

    ref = jax.block_until_ready(reference_forward(x, params))

    # Default chunking: tc = T -> a single grid block; the hoisted projection
    # is one (128, 128) x (128, 512) GEMM (M = tc*B = 128).
    out = jax.block_until_ready(rnn_model_forward(x, params))
    assert out.shape == (B, O), out.shape
    err = float(jnp.max(jnp.abs(out - ref)))
    assert jnp.allclose(out, ref, rtol=2e-2, atol=2e-2), err

    # Multi-block + ragged-tail path: tc=6 over T=16 -> 3 blocks, 2 masked
    # (zero-padded) trailing steps; exercises the h/c carry across grid
    # iterations and the padding mask.
    out2 = jax.block_until_ready(rnn_model_forward(x, params, time_chunk=6))
    err2 = float(jnp.max(jnp.abs(out2 - ref)))
    assert jnp.allclose(out2, ref, rtol=2e-2, atol=2e-2), err2

    print("KERNEL_OK")
</pallas_src>

<mosaic_0001>
module attributes {stable_mosaic.version = 11 : i64} {
  func.func @_lstm_fc_kernel(%arg0: i32, %arg1: memref<128x128xbf16, #tpu.memory_space<vmem>>, %arg2: memref<128x512xbf16, #tpu.memory_space<vmem>>, %arg3: memref<128x512xbf16, #tpu.memory_space<vmem>>, %arg4: memref<1x512xf32, #tpu.memory_space<vmem>>, %arg5: memref<128x24xbf16, #tpu.memory_space<vmem>>, %arg6: memref<1x24xf32, #tpu.memory_space<vmem>>, %arg7: memref<8x24xf32, #tpu.memory_space<vmem>>, %arg8: memref<8x128xf32, #tpu.memory_space<vmem>>, %arg9: memref<8x128xf32, #tpu.memory_space<vmem>>, %arg10: memref<128x512xf32, #tpu.memory_space<vmem>>) attributes {dimension_semantics = [#tpu.dimension_semantics<arbitrary>], iteration_bounds = array<i64: 1>, scalar_prefetch = 0 : i64, scratch_operands = 3 : i64, tpu.core_type = #tpu.core_type<tc>, window_params = [{transform_indices = @transform_0, window_bounds = array<i64: 128, 128>}, {pipeline_mode = #tpu.pipeline_mode<synchronous>, transform_indices = @transform_1, window_bounds = array<i64: 128, 512>}, {pipeline_mode = #tpu.pipeline_mode<synchronous>, transform_indices = @transform_2, window_bounds = array<i64: 128, 512>}, {pipeline_mode = #tpu.pipeline_mode<synchronous>, transform_indices = @transform_3, window_bounds = array<i64: 1, 512>}, {pipeline_mode = #tpu.pipeline_mode<synchronous>, transform_indices = @transform_4, window_bounds = array<i64: 128, 24>}, {pipeline_mode = #tpu.pipeline_mode<synchronous>, transform_indices = @transform_5, window_bounds = array<i64: 1, 24>}, {pipeline_mode = #tpu.pipeline_mode<synchronous>, transform_indices = @transform_6, window_bounds = array<i64: 8, 24>}]} {
    %c0_i32 = arith.constant 0 : i32
    %0 = arith.cmpi eq, %arg0, %c0_i32 : i32
    %1 = arith.extui %0 : i1 to i32
    %c0_i32_0 = arith.constant 0 : i32
    %2 = arith.cmpi ne, %1, %c0_i32_0 : i32
    scf.if %2 {
      %cst_147 = arith.constant 0.000000e+00 : f32
      %545 = vector.broadcast %cst_147 : f32 to vector<8x128xf32>
      %c0_148 = arith.constant 0 : index
      %c0_149 = arith.constant 0 : index
      %546 = vector.load %arg8[%c0_148, %c0_149] : memref<8x128xf32, #tpu.memory_space<vmem>>, vector<8x128xf32>
      tpu.vector_store %arg8[%c0_148, %c0_149], %545 {strides = array<i32>} : memref<8x128xf32, #tpu.memory_space<vmem>>, vector<8x128xf32>,
      %cst_150 = arith.constant 0.000000e+00 : f32
      %547 = vector.broadcast %cst_150 : f32 to vector<8x128xf32>
      %c0_151 = arith.constant 0 : index
      %c0_152 = arith.constant 0 : index
      %548 = vector.load %arg9[%c0_151, %c0_152] : memref<8x128xf32, #tpu.memory_space<vmem>>, vector<8x128xf32>
      tpu.vector_store %arg9[%c0_151, %c0_152], %547 {strides = array<i32>} : memref<8x128xf32, #tpu.memory_space<vmem>>, vector<8x128xf32>,
    } else {
    }
    %c0 = arith.constant 0 : index
    %c0_1 = arith.constant 0 : index
    %3 = vector.load %arg1[%c0, %c0_1] : memref<128x128xbf16, #tpu.memory_space<vmem>>, vector<128x128xbf16>
    %c0_2 = arith.constant 0 : index
    %c0_3 = arith.constant 0 : index
    %4 = vector.load %arg2[%c0_2, %c0_3] : memref<128x512xbf16, #tpu.memory_space<vmem>>, vector<128x512xbf16>
    %cst = arith.constant dense<0.000000e+00> : vector<128x512xf32>
    %5 = tpu.matmul %3, %4, %cst {dimension_numbers = #tpu.dot_dimension_numbers<[1], [0], [0], [1], [0, 0, 1, 1], [], []>} : vector<128x128xbf16>, vector<128x512xbf16>, vector<128x512xf32> -> vector<128x512xf32>
    %c0_4 = arith.constant 0 : index
    %c0_5 = arith.constant 0 : index
    %6 = vector.load %arg4[%c0_4, %c0_5] : memref<1x512xf32, #tpu.memory_space<vmem>>, vector<1x512xf32>
    %7 = vector.broadcast %6 : vector<1x512xf32> to vector<128x512xf32>
    %8 = arith.addf %5, %7 : vector<128x512xf32>
    %c0_6 = arith.constant 0 : index
    %c0_7 = arith.constant 0 : index
    %9 = vector.load %arg10[%c0_6, %c0_7] : memref<128x512xf32, #tpu.memory_space<vmem>>, vector<128x512xf32>
    tpu.vector_store %arg10[%c0_6, %c0_7], %8 {strides = array<i32>} : memref<128x512xf32, #tpu.memory_space<vmem>>, vector<128x512xf32>,
    %c0_8 = arith.constant 0 : index
    %c0_9 = arith.constant 0 : index
    %10 = vector.load %arg8[%c0_8, %c0_9] : memref<8x128xf32, #tpu.memory_space<vmem>>, vector<8x128xf32>
    %c0_10 = arith.constant 0 : index
    %c0_11 = arith.constant 0 : index
    %11 = vector.load %arg9[%c0_10, %c0_11] : memref<8x128xf32, #tpu.memory_space<vmem>>, vector<8x128xf32>
    %c0_i32_12 = arith.constant 0 : i32
    %c8_i32 = arith.constant 8 : i32
    %12 = arith.muli %c0_i32_12, %c8_i32 : i32
    %13 = tpu.assume_multiple %12, 8 : i32
    %14 = arith.index_cast %13 : i32 to index
    %c0_13 = arith.constant 0 : index
    %15 = vector.load %arg10[%14, %c0_13] : memref<128x512xf32, #tpu.memory_space<vmem>>, vector<8x512xf32>
    %16 = arith.truncf %10 : vector<8x128xf32> to vector<8x128xbf16>
    %c0_14 = arith.constant 0 : index
    %c0_15 = arith.constant 0 : index
    %17 = vector.load %arg3[%c0_14, %c0_15] : memref<128x512xbf16, #tpu.memory_space<vmem>>, vector<128x512xbf16>
    %cst_16 = arith.constant dense<0.000000e+00> : vector<8x512xf32>
    %18 = tpu.matmul %16, %17, %cst_16 {dimension_numbers = #tpu.dot_dimension_numbers<[1], [0], [0], [1], [0, 0, 1, 1], [], []>} : vector<8x128xbf16>, vector<128x512xbf16>, vector<8x512xf32> -> vector<8x512xf32>
    %19 = arith.addf %15, %18 : vector<8x512xf32>
    %20 = vector.extract_strided_slice %19 {offsets = [0, 0], sizes = [8, 128], strides = [1, 1]} : vector<8x512xf32> to vector<8x128xf32>
    %21 = arith.negf %20 : vector<8x128xf32>
    %22 = math.exp %21 : vector<8x128xf32>
    %cst_17 = arith.constant 1.000000e+00 : f32
    %23 = vector.broadcast %cst_17 : f32 to vector<8x128xf32>
    %24 = arith.addf %23, %22 : vector<8x128xf32>
    %25 = arith.divf %23, %24 : vector<8x128xf32>
    %26 = vector.extract_strided_slice %19 {offsets = [0, 128], sizes = [8, 128], strides = [1, 1]} : vector<8x512xf32> to vector<8x128xf32>
    %27 = arith.negf %26 : vector<8x128xf32>
    %28 = math.exp %27 : vector<8x128xf32>
    %cst_18 = arith.constant 1.000000e+00 : f32
    %29 = vector.broadcast %cst_18 : f32 to vector<8x128xf32>
    %30 = arith.addf %29, %28 : vector<8x128xf32>
    %31 = arith.divf %29, %30 : vector<8x128xf32>
    %32 = vector.extract_strided_slice %19 {offsets = [0, 256], sizes = [8, 128], strides = [1, 1]} : vector<8x512xf32> to vector<8x128xf32>
    %33 = math.tanh %32 : vector<8x128xf32>
    %34 = vector.extract_strided_slice %19 {offsets = [0, 384], sizes = [8, 128], strides = [1, 1]} : vector<8x512xf32> to vector<8x128xf32>
    %35 = arith.negf %34 : vector<8x128xf32>
    %36 = math.exp %35 : vector<8x128xf32>
    %cst_19 = arith.constant 1.000000e+00 : f32
    %37 = vector.broadcast %cst_19 : f32 to vector<8x128xf32>
    %38 = arith.addf %37, %36 : vector<8x128xf32>
    %39 = arith.divf %37, %38 : vector<8x128xf32>
    %40 = arith.mulf %31, %11 : vector<8x128xf32>
    %41 = arith.mulf %25, %33 : vector<8x128xf32>
    %42 = arith.addf %40, %41 : vector<8x128xf32>
    %43 = math.tanh %42 : vector<8x128xf32>
    %44 = arith.mulf %39, %43 : vector<8x128xf32>
    %c1_i32 = arith.constant 1 : i32
    %c8_i32_20 = arith.constant 8 : i32
    %45 = arith.muli %c1_i32, %c8_i32_20 : i32
    %46 = tpu.assume_multiple %45, 8 : i32
    %47 = arith.index_cast %46 : i32 to index
    %c0_21 = arith.constant 0 : index
    %48 = vector.load %arg10[%47, %c0_21] : memref<128x512xf32, #tpu.memory_space<vmem>>, vector<8x512xf32>
    %49 = arith.truncf %44 : vector<8x128xf32> to vector<8x128xbf16>
    %c0_22 = arith.constant 0 : index
    %c0_23 = arith.constant 0 : index
    %50 = vector.load %arg3[%c0_22, %c0_23] : memref<128x512xbf16, #tpu.memory_space<vmem>>, vector<128x512xbf16>
    %cst_24 = arith.constant dense<0.000000e+00> : vector<8x512xf32>
    %51 = tpu.matmul %49, %50, %cst_24 {dimension_numbers = #tpu.dot_dimension_numbers<[1], [0], [0], [1], [0, 0, 1, 1], [], []>} : vector<8x128xbf16>, vector<128x512xbf16>, vector<8x512xf32> -> vector<8x512xf32>
    %52 = arith.addf %48, %51 : vector<8x512xf32>
    %53 = vector.extract_strided_slice %52 {offsets = [0, 0], sizes = [8, 128], strides = [1, 1]} : vector<8x512xf32> to vector<8x128xf32>
    %54 = arith.negf %53 : vector<8x128xf32>
    %55 = math.exp %54 : vector<8x128xf32>
    %cst_25 = arith.constant 1.000000e+00 : f32
    %56 = vector.broadcast %cst_25 : f32 to vector<8x128xf32>
    %57 = arith.addf %56, %55 : vector<8x128xf32>
    %58 = arith.divf %56, %57 : vector<8x128xf32>
    %59 = vector.extract_strided_slice %52 {offsets = [0, 128], sizes = [8, 128], strides = [1, 1]} : vector<8x512xf32> to vector<8x128xf32>
    %60 = arith.negf %59 : vector<8x128xf32>
    %61 = math.exp %60 : vector<8x128xf32>
    %cst_26 = arith.constant 1.000000e+00 : f32
    %62 = vector.broadcast %cst_26 : f32 to vector<8x128xf32>
    %63 = arith.addf %62, %61 : vector<8x128xf32>
    %64 = arith.divf %62, %63 : vector<8x128xf32>
    %65 = vector.extract_strided_slice %52 {offsets = [0, 256], sizes = [8, 128], strides = [1, 1]} : vector<8x512xf32> to vector<8x128xf32>
    %66 = math.tanh %65 : vector<8x128xf32>
    %67 = vector.extract_strided_slice %52 {offsets = [0, 384], sizes = [8, 128], strides = [1, 1]} : vector<8x512xf32> to vector<8x128xf32>
    %68 = arith.negf %67 : vector<8x128xf32>
    %69 = math.exp %68 : vector<8x128xf32>
    %cst_27 = arith.constant 1.000000e+00 : f32
    %70 = vector.broadcast %cst_27 : f32 to vector<8x128xf32>
    %71 = arith.addf %70, %69 : vector<8x128xf32>
    %72 = arith.divf %70, %71 : vector<8x128xf32>
    %73 = arith.mulf %64, %42 : vector<8x128xf32>
    %74 = arith.mulf %58, %66 : vector<8x128xf32>
    %75 = arith.addf %73, %74 : vector<8x128xf32>
    %76 = math.tanh %75 : vector<8x128xf32>
    %77 = arith.mulf %72, %76 : vector<8x128xf32>
    %c2_i32 = arith.constant 2 : i32
    %c8_i32_28 = arith.constant 8 : i32
    %78 = arith.muli %c2_i32, %c8_i32_28 : i32
    %79 = tpu.assume_multiple %78, 8 : i32
    %80 = arith.index_cast %79 : i32 to index
    %c0_29 = arith.constant 0 : index
    %81 = vector.load %arg10[%80, %c0_29] : memref<128x512xf32, #tpu.memory_space<vmem>>, vector<8x512xf32>
    %82 = arith.truncf %77 : vector<8x128xf32> to vector<8x128xbf16>
    %c0_30 = arith.constant 0 : index
    %c0_31 = arith.constant 0 : index
    %83 = vector.load %arg3[%c0_30, %c0_31] : memref<128x512xbf16, #tpu.memory_space<vmem>>, vector<128x512xbf16>
    %cst_32 = arith.constant dense<0.000000e+00> : vector<8x512xf32>
    %84 = tpu.matmul %82, %83, %cst_32 {dimension_numbers = #tpu.dot_dimension_numbers<[1], [0], [0], [1], [0, 0, 1, 1], [], []>} : vector<8x128xbf16>, vector<128x512xbf16>, vector<8x512xf32> -> vector<8x512xf32>
    %85 = arith.addf %81, %84 : vector<8x512xf32>
    %86 = vector.extract_strided_slice %85 {offsets = [0, 0], sizes = [8, 128], strides = [1, 1]} : vector<8x512xf32> to vector<8x128xf32>
    %87 = arith.negf %86 : vector<8x128xf32>
    %88 = math.exp %87 : vector<8x128xf32>
    %cst_33 = arith.constant 1.000000e+00 : f32
    %89 = vector.broadcast %cst_33 : f32 to vector<8x128xf32>
    %90 = arith.addf %89, %88 : vector<8x128xf32>
    %91 = arith.divf %89, %90 : vector<8x128xf32>
    %92 = vector.extract_strided_slice %85 {offsets = [0, 128], sizes = [8, 128], strides = [1, 1]} : vector<8x512xf32> to vector<8x128xf32>
    %93 = arith.negf %92 : vector<8x128xf32>
    %94 = math.exp %93 : vector<8x128xf32>
    %cst_34 = arith.constant 1.000000e+00 : f32
    %95 = vector.broadcast %cst_34 : f32 to vector<8x128xf32>
    %96 = arith.addf %95, %94 : vector<8x128xf32>
    %97 = arith.divf %95, %96 : vector<8x128xf32>
    %98 = vector.extract_strided_slice %85 {offsets = [0, 256], sizes = [8, 128], strides = [1, 1]} : vector<8x512xf32> to vector<8x128xf32>
    %99 = math.tanh %98 : vector<8x128xf32>
    %100 = vector.extract_strided_slice %85 {offsets = [0, 384], sizes = [8, 128], strides = [1, 1]} : vector<8x512xf32> to vector<8x128xf32>
    %101 = arith.negf %100 : vector<8x128xf32>
    %102 = math.exp %101 : vector<8x128xf32>
    %cst_35 = arith.constant 1.000000e+00 : f32
    %103 = vector.broadcast %cst_35 : f32 to vector<8x128xf32>
    %104 = arith.addf %103, %102 : vector<8x128xf32>
    %105 = arith.divf %103, %104 : vector<8x128xf32>
    %106 = arith.mulf %97, %75 : vector<8x128xf32>
    %107 = arith.mulf %91, %99 : vector<8x128xf32>
    %108 = arith.addf %106, %107 : vector<8x128xf32>
    %109 = math.tanh %108 : vector<8x128xf32>
    %110 = arith.mulf %105, %109 : vector<8x128xf32>
    %c3_i32 = arith.constant 3 : i32
    %c8_i32_36 = arith.constant 8 : i32
    %111 = arith.muli %c3_i32, %c8_i32_36 : i32
    %112 = tpu.assume_multiple %111, 8 : i32
    %113 = arith.index_cast %112 : i32 to index
    %c0_37 = arith.constant 0 : index
    %114 = vector.load %arg10[%113, %c0_37] : memref<128x512xf32, #tpu.memory_space<vmem>>, vector<8x512xf32>
    %115 = arith.truncf %110 : vector<8x128xf32> to vector<8x128xbf16>
    %c0_38 = arith.constant 0 : index
    %c0_39 = arith.constant 0 : index
    %116 = vector.load %arg3[%c0_38, %c0_39] : memref<128x512xbf16, #tpu.memory_space<vmem>>, vector<128x512xbf16>
    %cst_40 = arith.constant dense<0.000000e+00> : vector<8x512xf32>
    %117 = tpu.matmul %115, %116, %cst_40 {dimension_numbers = #tpu.dot_dimension_numbers<[1], [0], [0], [1], [0, 0, 1, 1], [], []>} : vector<8x128xbf16>, vector<128x512xbf16>, vector<8x512xf32> -> vector<8x512xf32>
    %118 = arith.addf %114, %117 : vector<8x512xf32>
    %119 = vector.extract_strided_slice %118 {offsets = [0, 0], sizes = [8, 128], strides = [1, 1]} : vector<8x512xf32> to vector<8x128xf32>
    %120 = arith.negf %119 : vector<8x128xf32>
    %121 = math.exp %120 : vector<8x128xf32>
    %cst_41 = arith.constant 1.000000e+00 : f32
    %122 = vector.broadcast %cst_41 : f32 to vector<8x128xf32>
    %123 = arith.addf %122, %121 : vector<8x128xf32>
    %124 = arith.divf %122, %123 : vector<8x128xf32>
    %125 = vector.extract_strided_slice %118 {offsets = [0, 128], sizes = [8, 128], strides = [1, 1]} : vector<8x512xf32> to vector<8x128xf32>
    %126 = arith.negf %125 : vector<8x128xf32>
    %127 = math.exp %126 : vector<8x128xf32>
    %cst_42 = arith.constant 1.000000e+00 : f32
    %128 = vector.broadcast %cst_42 : f32 to vector<8x128xf32>
    %129 = arith.addf %128, %127 : vector<8x128xf32>
    %130 = arith.divf %128, %129 : vector<8x128xf32>
    %131 = vector.extract_strided_slice %118 {offsets = [0, 256], sizes = [8, 128], strides = [1, 1]} : vector<8x512xf32> to vector<8x128xf32>
    %132 = math.tanh %131 : vector<8x128xf32>
    %133 = vector.extract_strided_slice %118 {offsets = [0, 384], sizes = [8, 128], strides = [1, 1]} : vector<8x512xf32> to vector<8x128xf32>
    %134 = arith.negf %133 : vector<8x128xf32>
    %135 = math.exp %134 : vector<8x128xf32>
    %cst_43 = arith.constant 1.000000e+00 : f32
    %136 = vector.broadcast %cst_43 : f32 to vector<8x128xf32>
    %137 = arith.addf %136, %135 : vector<8x128xf32>
    %138 = arith.divf %136, %137 : vector<8x128xf32>
    %139 = arith.mulf %130, %108 : vector<8x128xf32>
    %140 = arith.mulf %124, %132 : vector<8x128xf32>
    %141 = arith.addf %139, %140 : vector<8x128xf32>
    %142 = math.tanh %141 : vector<8x128xf32>
    %143 = arith.mulf %138, %142 : vector<8x128xf32>
    %c4_i32 = arith.constant 4 : i32
    %c8_i32_44 = arith.constant 8 : i32
    %144 = arith.muli %c4_i32, %c8_i32_44 : i32
    %145 = tpu.assume_multiple %144, 8 : i32
    %146 = arith.index_cast %145 : i32 to index
    %c0_45 = arith.constant 0 : index
    %147 = vector.load %arg10[%146, %c0_45] : memref<128x512xf32, #tpu.memory_space<vmem>>, vector<8x512xf32>
    %148 = arith.truncf %143 : vector<8x128xf32> to vector<8x128xbf16>
    %c0_46 = arith.constant 0 : index
    %c0_47 = arith.constant 0 : index
    %149 = vector.load %arg3[%c0_46, %c0_47] : memref<128x512xbf16, #tpu.memory_space<vmem>>, vector<128x512xbf16>
    %cst_48 = arith.constant dense<0.000000e+00> : vector<8x512xf32>
    %150 = tpu.matmul %148, %149, %cst_48 {dimension_numbers = #tpu.dot_dimension_numbers<[1], [0], [0], [1], [0, 0, 1, 1], [], []>} : vector<8x128xbf16>, vector<128x512xbf16>, vector<8x512xf32> -> vector<8x512xf32>
    %151 = arith.addf %147, %150 : vector<8x512xf32>
    %152 = vector.extract_strided_slice %151 {offsets = [0, 0], sizes = [8, 128], strides = [1, 1]} : vector<8x512xf32> to vector<8x128xf32>
    %153 = arith.negf %152 : vector<8x128xf32>
    %154 = math.exp %153 : vector<8x128xf32>
    %cst_49 = arith.constant 1.000000e+00 : f32
    %155 = vector.broadcast %cst_49 : f32 to vector<8x128xf32>
    %156 = arith.addf %155, %154 : vector<8x128xf32>
    %157 = arith.divf %155, %156 : vector<8x128xf32>
    %158 = vector.extract_strided_slice %151 {offsets = [0, 128], sizes = [8, 128], strides = [1, 1]} : vector<8x512xf32> to vector<8x128xf32>
    %159 = arith.negf %158 : vector<8x128xf32>
    %160 = math.exp %159 : vector<8x128xf32>
    %cst_50 = arith.constant 1.000000e+00 : f32
    %161 = vector.broadcast %cst_50 : f32 to vector<8x128xf32>
    %162 = arith.addf %161, %160 : vector<8x128xf32>
    %163 = arith.divf %161, %162 : vector<8x128xf32>
    %164 = vector.extract_strided_slice %151 {offsets = [0, 256], sizes = [8, 128], strides = [1, 1]} : vector<8x512xf32> to vector<8x128xf32>
    %165 = math.tanh %164 : vector<8x128xf32>
    %166 = vector.extract_strided_slice %151 {offsets = [0, 384], sizes = [8, 128], strides = [1, 1]} : vector<8x512xf32> to vector<8x128xf32>
    %167 = arith.negf %166 : vector<8x128xf32>
    %168 = math.exp %167 : vector<8x128xf32>
    %cst_51 = arith.constant 1.000000e+00 : f32
    %169 = vector.broadcast %cst_51 : f32 to vector<8x128xf32>
    %170 = arith.addf %169, %168 : vector<8x128xf32>
    %171 = arith.divf %169, %170 : vector<8x128xf32>
    %172 = arith.mulf %163, %141 : vector<8x128xf32>
    %173 = arith.mulf %157, %165 : vector<8x128xf32>
    %174 = arith.addf %172, %173 : vector<8x128xf32>
    %175 = math.tanh %174 : vector<8x128xf32>
    %176 = arith.mulf %171, %175 : vector<8x128xf32>
    %c5_i32 = arith.constant 5 : i32
    %c8_i32_52 = arith.constant 8 : i32
    %177 = arith.muli %c5_i32, %c8_i32_52 : i32
    %178 = tpu.assume_multiple %177, 8 : i32
    %179 = arith.index_cast %178 : i32 to index
    %c0_53 = arith.constant 0 : index
    %180 = vector.load %arg10[%179, %c0_53] : memref<128x512xf32, #tpu.memory_space<vmem>>, vector<8x512xf32>
    %181 = arith.truncf %176 : vector<8x128xf32> to vector<8x128xbf16>
    %c0_54 = arith.constant 0 : index
    %c0_55 = arith.constant 0 : index
    %182 = vector.load %arg3[%c0_54, %c0_55] : memref<128x512xbf16, #tpu.memory_space<vmem>>, vector<128x512xbf16>
    %cst_56 = arith.constant dense<0.000000e+00> : vector<8x512xf32>
    %183 = tpu.matmul %181, %182, %cst_56 {dimension_numbers = #tpu.dot_dimension_numbers<[1], [0], [0], [1], [0, 0, 1, 1], [], []>} : vector<8x128xbf16>, vector<128x512xbf16>, vector<8x512xf32> -> vector<8x512xf32>
    %184 = arith.addf %180, %183 : vector<8x512xf32>
    %185 = vector.extract_strided_slice %184 {offsets = [0, 0], sizes = [8, 128], strides = [1, 1]} : vector<8x512xf32> to vector<8x128xf32>
    %186 = arith.negf %185 : vector<8x128xf32>
    %187 = math.exp %186 : vector<8x128xf32>
    %cst_57 = arith.constant 1.000000e+00 : f32
    %188 = vector.broadcast %cst_57 : f32 to vector<8x128xf32>
    %189 = arith.addf %188, %187 : vector<8x128xf32>
    %190 = arith.divf %188, %189 : vector<8x128xf32>
    %191 = vector.extract_strided_slice %184 {offsets = [0, 128], sizes = [8, 128], strides = [1, 1]} : vector<8x512xf32> to vector<8x128xf32>
    %192 = arith.negf %191 : vector<8x128xf32>
    %193 = math.exp %192 : vector<8x128xf32>
    %cst_58 = arith.constant 1.000000e+00 : f32
    %194 = vector.broadcast %cst_58 : f32 to vector<8x128xf32>
    %195 = arith.addf %194, %193 : vector<8x128xf32>
    %196 = arith.divf %194, %195 : vector<8x128xf32>
    %197 = vector.extract_strided_slice %184 {offsets = [0, 256], sizes = [8, 128], strides = [1, 1]} : vector<8x512xf32> to vector<8x128xf32>
    %198 = math.tanh %197 : vector<8x128xf32>
    %199 = vector.extract_strided_slice %184 {offsets = [0, 384], sizes = [8, 128], strides = [1, 1]} : vector<8x512xf32> to vector<8x128xf32>
    %200 = arith.negf %199 : vector<8x128xf32>
    %201 = math.exp %200 : vector<8x128xf32>
    %cst_59 = arith.constant 1.000000e+00 : f32
    %202 = vector.broadcast %cst_59 : f32 to vector<8x128xf32>
    %203 = arith.addf %202, %201 : vector<8x128xf32>
    %204 = arith.divf %202, %203 : vector<8x128xf32>
    %205 = arith.mulf %196, %174 : vector<8x128xf32>
    %206 = arith.mulf %190, %198 : vector<8x128xf32>
    %207 = arith.addf %205, %206 : vector<8x128xf32>
    %208 = math.tanh %207 : vector<8x128xf32>
    %209 = arith.mulf %204, %208 : vector<8x128xf32>
    %c6_i32 = arith.constant 6 : i32
    %c8_i32_60 = arith.constant 8 : i32
    %210 = arith.muli %c6_i32, %c8_i32_60 : i32
    %211 = tpu.assume_multiple %210, 8 : i32
    %212 = arith.index_cast %211 : i32 to index
    %c0_61 = arith.constant 0 : index
    %213 = vector.load %arg10[%212, %c0_61] : memref<128x512xf32, #tpu.memory_space<vmem>>, vector<8x512xf32>
    %214 = arith.truncf %209 : vector<8x128xf32> to vector<8x128xbf16>
    %c0_62 = arith.constant 0 : index
    %c0_63 = arith.constant 0 : index
    %215 = vector.load %arg3[%c0_62, %c0_63] : memref<128x512xbf16, #tpu.memory_space<vmem>>, vector<128x512xbf16>
    %cst_64 = arith.constant dense<0.000000e+00> : vector<8x512xf32>
    %216 = tpu.matmul %214, %215, %cst_64 {dimension_numbers = #tpu.dot_dimension_numbers<[1], [0], [0], [1], [0, 0, 1, 1], [], []>} : vector<8x128xbf16>, vector<128x512xbf16>, vector<8x512xf32> -> vector<8x512xf32>
    %217 = arith.addf %213, %216 : vector<8x512xf32>
    %218 = vector.extract_strided_slice %217 {offsets = [0, 0], sizes = [8, 128], strides = [1, 1]} : vector<8x512xf32> to vector<8x128xf32>
    %219 = arith.negf %218 : vector<8x128xf32>
    %220 = math.exp %219 : vector<8x128xf32>
    %cst_65 = arith.constant 1.000000e+00 : f32
    %221 = vector.broadcast %cst_65 : f32 to vector<8x128xf32>
    %222 = arith.addf %221, %220 : vector<8x128xf32>
    %223 = arith.divf %221, %222 : vector<8x128xf32>
    %224 = vector.extract_strided_slice %217 {offsets = [0, 128], sizes = [8, 128], strides = [1, 1]} : vector<8x512xf32> to vector<8x128xf32>
    %225 = arith.negf %224 : vector<8x128xf32>
    %226 = math.exp %225 : vector<8x128xf32>
    %cst_66 = arith.constant 1.000000e+00 : f32
    %227 = vector.broadcast %cst_66 : f32 to vector<8x128xf32>
    %228 = arith.addf %227, %226 : vector<8x128xf32>
    %229 = arith.divf %227, %228 : vector<8x128xf32>
    %230 = vector.extract_strided_slice %217 {offsets = [0, 256], sizes = [8, 128], strides = [1, 1]} : vector<8x512xf32> to vector<8x128xf32>
    %231 = math.tanh %230 : vector<8x128xf32>
    %232 = vector.extract_strided_slice %217 {offsets = [0, 384], sizes = [8, 128], strides = [1, 1]} : vector<8x512xf32> to vector<8x128xf32>
    %233 = arith.negf %232 : vector<8x128xf32>
    %234 = math.exp %233 : vector<8x128xf32>
    %cst_67 = arith.constant 1.000000e+00 : f32
    %235 = vector.broadcast %cst_67 : f32 to vector<8x128xf32>
    %236 = arith.addf %235, %234 : vector<8x128xf32>
    %237 = arith.divf %235, %236 : vector<8x128xf32>
    %238 = arith.mulf %229, %207 : vector<8x128xf32>
    %239 = arith.mulf %223, %231 : vector<8x128xf32>
    %240 = arith.addf %238, %239 : vector<8x128xf32>
    %241 = math.tanh %240 : vector<8x128xf32>
    %242 = arith.mulf %237, %241 : vector<8x128xf32>
    %c7_i32 = arith.constant 7 : i32
    %c8_i32_68 = arith.constant 8 : i32
    %243 = arith.muli %c7_i32, %c8_i32_68 : i32
    %244 = tpu.assume_multiple %243, 8 : i32
    %245 = arith.index_cast %244 : i32 to index
    %c0_69 = arith.constant 0 : index
    %246 = vector.load %arg10[%245, %c0_69] : memref<128x512xf32, #tpu.memory_space<vmem>>, vector<8x512xf32>
    %247 = arith.truncf %242 : vector<8x128xf32> to vector<8x128xbf16>
    %c0_70 = arith.constant 0 : index
    %c0_71 = arith.constant 0 : index
    %248 = vector.load %arg3[%c0_70, %c0_71] : memref<128x512xbf16, #tpu.memory_space<vmem>>, vector<128x512xbf16>
    %cst_72 = arith.constant dense<0.000000e+00> : vector<8x512xf32>
    %249 = tpu.matmul %247, %248, %cst_72 {dimension_numbers = #tpu.dot_dimension_numbers<[1], [0], [0], [1], [0, 0, 1, 1], [], []>} : vector<8x128xbf16>, vector<128x512xbf16>, vector<8x512xf32> -> vector<8x512xf32>
    %250 = arith.addf %246, %249 : vector<8x512xf32>
    %251 = vector.extract_strided_slice %250 {offsets = [0, 0], sizes = [8, 128], strides = [1, 1]} : vector<8x512xf32> to vector<8x128xf32>
    %252 = arith.negf %251 : vector<8x128xf32>
    %253 = math.exp %252 : vector<8x128xf32>
    %cst_73 = arith.constant 1.000000e+00 : f32
    %254 = vector.broadcast %cst_73 : f32 to vector<8x128xf32>
    %255 = arith.addf %254, %253 : vector<8x128xf32>
    %256 = arith.divf %254, %255 : vector<8x128xf32>
    %257 = vector.extract_strided_slice %250 {offsets = [0, 128], sizes = [8, 128], strides = [1, 1]} : vector<8x512xf32> to vector<8x128xf32>
    %258 = arith.negf %257 : vector<8x128xf32>
    %259 = math.exp %258 : vector<8x128xf32>
    %cst_74 = arith.constant 1.000000e+00 : f32
    %260 = vector.broadcast %cst_74 : f32 to vector<8x128xf32>
    %261 = arith.addf %260, %259 : vector<8x128xf32>
    %262 = arith.divf %260, %261 : vector<8x128xf32>
    %263 = vector.extract_strided_slice %250 {offsets = [0, 256], sizes = [8, 128], strides = [1, 1]} : vector<8x512xf32> to vector<8x128xf32>
    %264 = math.tanh %263 : vector<8x128xf32>
    %265 = vector.extract_strided_slice %250 {offsets = [0, 384], sizes = [8, 128], strides = [1, 1]} : vector<8x512xf32> to vector<8x128xf32>
    %266 = arith.negf %265 : vector<8x128xf32>
    %267 = math.exp %266 : vector<8x128xf32>
    %cst_75 = arith.constant 1.000000e+00 : f32
    %268 = vector.broadcast %cst_75 : f32 to vector<8x128xf32>
    %269 = arith.addf %268, %267 : vector<8x128xf32>
    %270 = arith.divf %268, %269 : vector<8x128xf32>
    %271 = arith.mulf %262, %240 : vector<8x128xf32>
    %272 = arith.mulf %256, %264 : vector<8x128xf32>
    %273 = arith.addf %271, %272 : vector<8x128xf32>
    %274 = math.tanh %273 : vector<8x128xf32>
    %275 = arith.mulf %270, %274 : vector<8x128xf32>
    %c8_i32_76 = arith.constant 8 : i32
    %c8_i32_77 = arith.constant 8 : i32
    %276 = arith.muli %c8_i32_76, %c8_i32_77 : i32
    %277 = tpu.assume_multiple %276, 8 : i32
    %278 = arith.index_cast %277 : i32 to index
    %c0_78 = arith.constant 0 : index
    %279 = vector.load %arg10[%278, %c0_78] : memref<128x512xf32, #tpu.memory_space<vmem>>, vector<8x512xf32>
    %280 = arith.truncf %275 : vector<8x128xf32> to vector<8x128xbf16>
    %c0_79 = arith.constant 0 : index
    %c0_80 = arith.constant 0 : index
    %281 = vector.load %arg3[%c0_79, %c0_80] : memref<128x512xbf16, #tpu.memory_space<vmem>>, vector<128x512xbf16>
    %cst_81 = arith.constant dense<0.000000e+00> : vector<8x512xf32>
    %282 = tpu.matmul %280, %281, %cst_81 {dimension_numbers = #tpu.dot_dimension_numbers<[1], [0], [0], [1], [0, 0, 1, 1], [], []>} : vector<8x128xbf16>, vector<128x512xbf16>, vector<8x512xf32> -> vector<8x512xf32>
    %283 = arith.addf %279, %282 : vector<8x512xf32>
    %284 = vector.extract_strided_slice %283 {offsets = [0, 0], sizes = [8, 128], strides = [1, 1]} : vector<8x512xf32> to vector<8x128xf32>
    %285 = arith.negf %284 : vector<8x128xf32>
    %286 = math.exp %285 : vector<8x128xf32>
    %cst_82 = arith.constant 1.000000e+00 : f32
    %287 = vector.broadcast %cst_82 : f32 to vector<8x128xf32>
    %288 = arith.addf %287, %286 : vector<8x128xf32>
    %289 = arith.divf %287, %288 : vector<8x128xf32>
    %290 = vector.extract_strided_slice %283 {offsets = [0, 128], sizes = [8, 128], strides = [1, 1]} : vector<8x512xf32> to vector<8x128xf32>
    %291 = arith.negf %290 : vector<8x128xf32>
    %292 = math.exp %291 : vector<8x128xf32>
    %cst_83 = arith.constant 1.000000e+00 : f32
    %293 = vector.broadcast %cst_83 : f32 to vector<8x128xf32>
    %294 = arith.addf %293, %292 : vector<8x128xf32>
    %295 = arith.divf %293, %294 : vector<8x128xf32>
    %296 = vector.extract_strided_slice %283 {offsets = [0, 256], sizes = [8, 128], strides = [1, 1]} : vector<8x512xf32> to vector<8x128xf32>
    %297 = math.tanh %296 : vector<8x128xf32>
    %298 = vector.extract_strided_slice %283 {offsets = [0, 384], sizes = [8, 128], strides = [1, 1]} : vector<8x512xf32> to vector<8x128xf32>
    %299 = arith.negf %298 : vector<8x128xf32>
    %300 = math.exp %299 : vector<8x128xf32>
    %cst_84 = arith.constant 1.000000e+00 : f32
    %301 = vector.broadcast %cst_84 : f32 to vector<8x128xf32>
    %302 = arith.addf %301, %300 : vector<8x128xf32>
    %303 = arith.divf %301, %302 : vector<8x128xf32>
    %304 = arith.mulf %295, %273 : vector<8x128xf32>
    %305 = arith.mulf %289, %297 : vector<8x128xf32>
    %306 = arith.addf %304, %305 : vector<8x128xf32>
    %307 = math.tanh %306 : vector<8x128xf32>
    %308 = arith.mulf %303, %307 : vector<8x128xf32>
    %c9_i32 = arith.constant 9 : i32
    %c8_i32_85 = arith.constant 8 : i32
    %309 = arith.muli %c9_i32, %c8_i32_85 : i32
    %310 = tpu.assume_multiple %309, 8 : i32
    %311 = arith.index_cast %310 : i32 to index
    %c0_86 = arith.constant 0 : index
    %312 = vector.load %arg10[%311, %c0_86] : memref<128x512xf32, #tpu.memory_space<vmem>>, vector<8x512xf32>
    %313 = arith.truncf %308 : vector<8x128xf32> to vector<8x128xbf16>
    %c0_87 = arith.constant 0 : index
    %c0_88 = arith.constant 0 : index
    %314 = vector.load %arg3[%c0_87, %c0_88] : memref<128x512xbf16, #tpu.memory_space<vmem>>, vector<128x512xbf16>
    %cst_89 = arith.constant dense<0.000000e+00> : vector<8x512xf32>
    %315 = tpu.matmul %313, %314, %cst_89 {dimension_numbers = #tpu.dot_dimension_numbers<[1], [0], [0], [1], [0, 0, 1, 1], [], []>} : vector<8x128xbf16>, vector<128x512xbf16>, vector<8x512xf32> -> vector<8x512xf32>
    %316 = arith.addf %312, %315 : vector<8x512xf32>
    %317 = vector.extract_strided_slice %316 {offsets = [0, 0], sizes = [8, 128], strides = [1, 1]} : vector<8x512xf32> to vector<8x128xf32>
    %318 = arith.negf %317 : vector<8x128xf32>
    %319 = math.exp %318 : vector<8x128xf32>
    %cst_90 = arith.constant 1.000000e+00 : f32
    %320 = vector.broadcast %cst_90 : f32 to vector<8x128xf32>
    %321 = arith.addf %320, %319 : vector<8x128xf32>
    %322 = arith.divf %320, %321 : vector<8x128xf32>
    %323 = vector.extract_strided_slice %316 {offsets = [0, 128], sizes = [8, 128], strides = [1, 1]} : vector<8x512xf32> to vector<8x128xf32>
    %324 = arith.negf %323 : vector<8x128xf32>
    %325 = math.exp %324 : vector<8x128xf32>
    %cst_91 = arith.constant 1.000000e+00 : f32
    %326 = vector.broadcast %cst_91 : f32 to vector<8x128xf32>
    %327 = arith.addf %326, %325 : vector<8x128xf32>
    %328 = arith.divf %326, %327 : vector<8x128xf32>
    %329 = vector.extract_strided_slice %316 {offsets = [0, 256], sizes = [8, 128], strides = [1, 1]} : vector<8x512xf32> to vector<8x128xf32>
    %330 = math.tanh %329 : vector<8x128xf32>
    %331 = vector.extract_strided_slice %316 {offsets = [0, 384], sizes = [8, 128], strides = [1, 1]} : vector<8x512xf32> to vector<8x128xf32>
    %332 = arith.negf %331 : vector<8x128xf32>
    %333 = math.exp %332 : vector<8x128xf32>
    %cst_92 = arith.constant 1.000000e+00 : f32
    %334 = vector.broadcast %cst_92 : f32 to vector<8x128xf32>
    %335 = arith.addf %334, %333 : vector<8x128xf32>
    %336 = arith.divf %334, %335 : vector<8x128xf32>
    %337 = arith.mulf %328, %306 : vector<8x128xf32>
    %338 = arith.mulf %322, %330 : vector<8x128xf32>
    %339 = arith.addf %337, %338 : vector<8x128xf32>
    %340 = math.tanh %339 : vector<8x128xf32>
    %341 = arith.mulf %336, %340 : vector<8x128xf32>
    %c10_i32 = arith.constant 10 : i32
    %c8_i32_93 = arith.constant 8 : i32
    %342 = arith.muli %c10_i32, %c8_i32_93 : i32
    %343 = tpu.assume_multiple %342, 8 : i32
    %344 = arith.index_cast %343 : i32 to index
    %c0_94 = arith.constant 0 : index
    %345 = vector.load %arg10[%344, %c0_94] : memref<128x512xf32, #tpu.memory_space<vmem>>, vector<8x512xf32>
    %346 = arith.truncf %341 : vector<8x128xf32> to vector<8x128xbf16>
    %c0_95 = arith.constant 0 : index
    %c0_96 = arith.constant 0 : index
    %347 = vector.load %arg3[%c0_95, %c0_96] : memref<128x512xbf16, #tpu.memory_space<vmem>>, vector<128x512xbf16>
    %cst_97 = arith.constant dense<0.000000e+00> : vector<8x512xf32>
    %348 = tpu.matmul %346, %347, %cst_97 {dimension_numbers = #tpu.dot_dimension_numbers<[1], [0], [0], [1], [0, 0, 1, 1], [], []>} : vector<8x128xbf16>, vector<128x512xbf16>, vector<8x512xf32> -> vector<8x512xf32>
    %349 = arith.addf %345, %348 : vector<8x512xf32>
    %350 = vector.extract_strided_slice %349 {offsets = [0, 0], sizes = [8, 128], strides = [1, 1]} : vector<8x512xf32> to vector<8x128xf32>
    %351 = arith.negf %350 : vector<8x128xf32>
    %352 = math.exp %351 : vector<8x128xf32>
    %cst_98 = arith.constant 1.000000e+00 : f32
    %353 = vector.broadcast %cst_98 : f32 to vector<8x128xf32>
    %354 = arith.addf %353, %352 : vector<8x128xf32>
    %355 = arith.divf %353, %354 : vector<8x128xf32>
    %356 = vector.extract_strided_slice %349 {offsets = [0, 128], sizes = [8, 128], strides = [1, 1]} : vector<8x512xf32> to vector<8x128xf32>
    %357 = arith.negf %356 : vector<8x128xf32>
    %358 = math.exp %357 : vector<8x128xf32>
    %cst_99 = arith.constant 1.000000e+00 : f32
    %359 = vector.broadcast %cst_99 : f32 to vector<8x128xf32>
    %360 = arith.addf %359, %358 : vector<8x128xf32>
    %361 = arith.divf %359, %360 : vector<8x128xf32>
    %362 = vector.extract_strided_slice %349 {offsets = [0, 256], sizes = [8, 128], strides = [1, 1]} : vector<8x512xf32> to vector<8x128xf32>
    %363 = math.tanh %362 : vector<8x128xf32>
    %364 = vector.extract_strided_slice %349 {offsets = [0, 384], sizes = [8, 128], strides = [1, 1]} : vector<8x512xf32> to vector<8x128xf32>
    %365 = arith.negf %364 : vector<8x128xf32>
    %366 = math.exp %365 : vector<8x128xf32>
    %cst_100 = arith.constant 1.000000e+00 : f32
    %367 = vector.broadcast %cst_100 : f32 to vector<8x128xf32>
    %368 = arith.addf %367, %366 : vector<8x128xf32>
    %369 = arith.divf %367, %368 : vector<8x128xf32>
    %370 = arith.mulf %361, %339 : vector<8x128xf32>
    %371 = arith.mulf %355, %363 : vector<8x128xf32>
    %372 = arith.addf %370, %371 : vector<8x128xf32>
    %373 = math.tanh %372 : vector<8x128xf32>
    %374 = arith.mulf %369, %373 : vector<8x128xf32>
    %c11_i32 = arith.constant 11 : i32
    %c8_i32_101 = arith.constant 8 : i32
    %375 = arith.muli %c11_i32, %c8_i32_101 : i32
    %376 = tpu.assume_multiple %375, 8 : i32
    %377 = arith.index_cast %376 : i32 to index
    %c0_102 = arith.constant 0 : index
    %378 = vector.load %arg10[%377, %c0_102] : memref<128x512xf32, #tpu.memory_space<vmem>>, vector<8x512xf32>
    %379 = arith.truncf %374 : vector<8x128xf32> to vector<8x128xbf16>
    %c0_103 = arith.constant 0 : index
    %c0_104 = arith.constant 0 : index
    %380 = vector.load %arg3[%c0_103, %c0_104] : memref<128x512xbf16, #tpu.memory_space<vmem>>, vector<128x512xbf16>
    %cst_105 = arith.constant dense<0.000000e+00> : vector<8x512xf32>
    %381 = tpu.matmul %379, %380, %cst_105 {dimension_numbers = #tpu.dot_dimension_numbers<[1], [0], [0], [1], [0, 0, 1, 1], [], []>} : vector<8x128xbf16>, vector<128x512xbf16>, vector<8x512xf32> -> vector<8x512xf32>
    %382 = arith.addf %378, %381 : vector<8x512xf32>
    %383 = vector.extract_strided_slice %382 {offsets = [0, 0], sizes = [8, 128], strides = [1, 1]} : vector<8x512xf32> to vector<8x128xf32>
    %384 = arith.negf %383 : vector<8x128xf32>
    %385 = math.exp %384 : vector<8x128xf32>
    %cst_106 = arith.constant 1.000000e+00 : f32
    %386 = vector.broadcast %cst_106 : f32 to vector<8x128xf32>
    %387 = arith.addf %386, %385 : vector<8x128xf32>
    %388 = arith.divf %386, %387 : vector<8x128xf32>
    %389 = vector.extract_strided_slice %382 {offsets = [0, 128], sizes = [8, 128], strides = [1, 1]} : vector<8x512xf32> to vector<8x128xf32>
    %390 = arith.negf %389 : vector<8x128xf32>
    %391 = math.exp %390 : vector<8x128xf32>
    %cst_107 = arith.constant 1.000000e+00 : f32
    %392 = vector.broadcast %cst_107 : f32 to vector<8x128xf32>
    %393 = arith.addf %392, %391 : vector<8x128xf32>
    %394 = arith.divf %392, %393 : vector<8x128xf32>
    %395 = vector.extract_strided_slice %382 {offsets = [0, 256], sizes = [8, 128], strides = [1, 1]} : vector<8x512xf32> to vector<8x128xf32>
    %396 = math.tanh %395 : vector<8x128xf32>
    %397 = vector.extract_strided_slice %382 {offsets = [0, 384], sizes = [8, 128], strides = [1, 1]} : vector<8x512xf32> to vector<8x128xf32>
    %398 = arith.negf %397 : vector<8x128xf32>
    %399 = math.exp %398 : vector<8x128xf32>
    %cst_108 = arith.constant 1.000000e+00 : f32
    %400 = vector.broadcast %cst_108 : f32 to vector<8x128xf32>
    %401 = arith.addf %400, %399 : vector<8x128xf32>
    %402 = arith.divf %400, %401 : vector<8x128xf32>
    %403 = arith.mulf %394, %372 : vector<8x128xf32>
    %404 = arith.mulf %388, %396 : vector<8x128xf32>
    %405 = arith.addf %403, %404 : vector<8x128xf32>
    %406 = math.tanh %405 : vector<8x128xf32>
    %407 = arith.mulf %402, %406 : vector<8x128xf32>
    %c12_i32 = arith.constant 12 : i32
    %c8_i32_109 = arith.constant 8 : i32
    %408 = arith.muli %c12_i32, %c8_i32_109 : i32
    %409 = tpu.assume_multiple %408, 8 : i32
    %410 = arith.index_cast %409 : i32 to index
    %c0_110 = arith.constant 0 : index
    %411 = vector.load %arg10[%410, %c0_110] : memref<128x512xf32, #tpu.memory_space<vmem>>, vector<8x512xf32>
    %412 = arith.truncf %407 : vector<8x128xf32> to vector<8x128xbf16>
    %c0_111 = arith.constant 0 : index
    %c0_112 = arith.constant 0 : index
    %413 = vector.load %arg3[%c0_111, %c0_112] : memref<128x512xbf16, #tpu.memory_space<vmem>>, vector<128x512xbf16>
    %cst_113 = arith.constant dense<0.000000e+00> : vector<8x512xf32>
    %414 = tpu.matmul %412, %413, %cst_113 {dimension_numbers = #tpu.dot_dimension_numbers<[1], [0], [0], [1], [0, 0, 1, 1], [], []>} : vector<8x128xbf16>, vector<128x512xbf16>, vector<8x512xf32> -> vector<8x512xf32>
    %415 = arith.addf %411, %414 : vector<8x512xf32>
    %416 = vector.extract_strided_slice %415 {offsets = [0, 0], sizes = [8, 128], strides = [1, 1]} : vector<8x512xf32> to vector<8x128xf32>
    %417 = arith.negf %416 : vector<8x128xf32>
    %418 = math.exp %417 : vector<8x128xf32>
    %cst_114 = arith.constant 1.000000e+00 : f32
    %419 = vector.broadcast %cst_114 : f32 to vector<8x128xf32>
    %420 = arith.addf %419, %418 : vector<8x128xf32>
    %421 = arith.divf %419, %420 : vector<8x128xf32>
    %422 = vector.extract_strided_slice %415 {offsets = [0, 128], sizes = [8, 128], strides = [1, 1]} : vector<8x512xf32> to vector<8x128xf32>
    %423 = arith.negf %422 : vector<8x128xf32>
    %424 = math.exp %423 : vector<8x128xf32>
    %cst_115 = arith.constant 1.000000e+00 : f32
    %425 = vector.broadcast %cst_115 : f32 to vector<8x128xf32>
    %426 = arith.addf %425, %424 : vector<8x128xf32>
    %427 = arith.divf %425, %426 : vector<8x128xf32>
    %428 = vector.extract_strided_slice %415 {offsets = [0, 256], sizes = [8, 128], strides = [1, 1]} : vector<8x512xf32> to vector<8x128xf32>
    %429 = math.tanh %428 : vector<8x128xf32>
    %430 = vector.extract_strided_slice %415 {offsets = [0, 384], sizes = [8, 128], strides = [1, 1]} : vector<8x512xf32> to vector<8x128xf32>
    %431 = arith.negf %430 : vector<8x128xf32>
    %432 = math.exp %431 : vector<8x128xf32>
    %cst_116 = arith.constant 1.000000e+00 : f32
    %433 = vector.broadcast %cst_116 : f32 to vector<8x128xf32>
    %434 = arith.addf %433, %432 : vector<8x128xf32>
    %435 = arith.divf %433, %434 : vector<8x128xf32>
    %436 = arith.mulf %427, %405 : vector<8x128xf32>
    %437 = arith.mulf %421, %429 : vector<8x128xf32>
    %438 = arith.addf %436, %437 : vector<8x128xf32>
    %439 = math.tanh %438 : vector<8x128xf32>
    %440 = arith.mulf %435, %439 : vector<8x128xf32>
    %c13_i32 = arith.constant 13 : i32
    %c8_i32_117 = arith.constant 8 : i32
    %441 = arith.muli %c13_i32, %c8_i32_117 : i32
    %442 = tpu.assume_multiple %441, 8 : i32
    %443 = arith.index_cast %442 : i32 to index
    %c0_118 = arith.constant 0 : index
    %444 = vector.load %arg10[%443, %c0_118] : memref<128x512xf32, #tpu.memory_space<vmem>>, vector<8x512xf32>
    %445 = arith.truncf %440 : vector<8x128xf32> to vector<8x128xbf16>
    %c0_119 = arith.constant 0 : index
    %c0_120 = arith.constant 0 : index
    %446 = vector.load %arg3[%c0_119, %c0_120] : memref<128x512xbf16, #tpu.memory_space<vmem>>, vector<128x512xbf16>
    %cst_121 = arith.constant dense<0.000000e+00> : vector<8x512xf32>
    %447 = tpu.matmul %445, %446, %cst_121 {dimension_numbers = #tpu.dot_dimension_numbers<[1], [0], [0], [1], [0, 0, 1, 1], [], []>} : vector<8x128xbf16>, vector<128x512xbf16>, vector<8x512xf32> -> vector<8x512xf32>
    %448 = arith.addf %444, %447 : vector<8x512xf32>
    %449 = vector.extract_strided_slice %448 {offsets = [0, 0], sizes = [8, 128], strides = [1, 1]} : vector<8x512xf32> to vector<8x128xf32>
    %450 = arith.negf %449 : vector<8x128xf32>
    %451 = math.exp %450 : vector<8x128xf32>
    %cst_122 = arith.constant 1.000000e+00 : f32
    %452 = vector.broadcast %cst_122 : f32 to vector<8x128xf32>
    %453 = arith.addf %452, %451 : vector<8x128xf32>
    %454 = arith.divf %452, %453 : vector<8x128xf32>
    %455 = vector.extract_strided_slice %448 {offsets = [0, 128], sizes = [8, 128], strides = [1, 1]} : vector<8x512xf32> to vector<8x128xf32>
    %456 = arith.negf %455 : vector<8x128xf32>
    %457 = math.exp %456 : vector<8x128xf32>
    %cst_123 = arith.constant 1.000000e+00 : f32
    %458 = vector.broadcast %cst_123 : f32 to vector<8x128xf32>
    %459 = arith.addf %458, %457 : vector<8x128xf32>
    %460 = arith.divf %458, %459 : vector<8x128xf32>
    %461 = vector.extract_strided_slice %448 {offsets = [0, 256], sizes = [8, 128], strides = [1, 1]} : vector<8x512xf32> to vector<8x128xf32>
    %462 = math.tanh %461 : vector<8x128xf32>
    %463 = vector.extract_strided_slice %448 {offsets = [0, 384], sizes = [8, 128], strides = [1, 1]} : vector<8x512xf32> to vector<8x128xf32>
    %464 = arith.negf %463 : vector<8x128xf32>
    %465 = math.exp %464 : vector<8x128xf32>
    %cst_124 = arith.constant 1.000000e+00 : f32
    %466 = vector.broadcast %cst_124 : f32 to vector<8x128xf32>
    %467 = arith.addf %466, %465 : vector<8x128xf32>
    %468 = arith.divf %466, %467 : vector<8x128xf32>
    %469 = arith.mulf %460, %438 : vector<8x128xf32>
    %470 = arith.mulf %454, %462 : vector<8x128xf32>
    %471 = arith.addf %469, %470 : vector<8x128xf32>
    %472 = math.tanh %471 : vector<8x128xf32>
    %473 = arith.mulf %468, %472 : vector<8x128xf32>
    %c14_i32 = arith.constant 14 : i32
    %c8_i32_125 = arith.constant 8 : i32
    %474 = arith.muli %c14_i32, %c8_i32_125 : i32
    %475 = tpu.assume_multiple %474, 8 : i32
    %476 = arith.index_cast %475 : i32 to index
    %c0_126 = arith.constant 0 : index
    %477 = vector.load %arg10[%476, %c0_126] : memref<128x512xf32, #tpu.memory_space<vmem>>, vector<8x512xf32>
    %478 = arith.truncf %473 : vector<8x128xf32> to vector<8x128xbf16>
    %c0_127 = arith.constant 0 : index
    %c0_128 = arith.constant 0 : index
    %479 = vector.load %arg3[%c0_127, %c0_128] : memref<128x512xbf16, #tpu.memory_space<vmem>>, vector<128x512xbf16>
    %cst_129 = arith.constant dense<0.000000e+00> : vector<8x512xf32>
    %480 = tpu.matmul %478, %479, %cst_129 {dimension_numbers = #tpu.dot_dimension_numbers<[1], [0], [0], [1], [0, 0, 1, 1], [], []>} : vector<8x128xbf16>, vector<128x512xbf16>, vector<8x512xf32> -> vector<8x512xf32>
    %481 = arith.addf %477, %480 : vector<8x512xf32>
    %482 = vector.extract_strided_slice %481 {offsets = [0, 0], sizes = [8, 128], strides = [1, 1]} : vector<8x512xf32> to vector<8x128xf32>
    %483 = arith.negf %482 : vector<8x128xf32>
    %484 = math.exp %483 : vector<8x128xf32>
    %cst_130 = arith.constant 1.000000e+00 : f32
    %485 = vector.broadcast %cst_130 : f32 to vector<8x128xf32>
    %486 = arith.addf %485, %484 : vector<8x128xf32>
    %487 = arith.divf %485, %486 : vector<8x128xf32>
    %488 = vector.extract_strided_slice %481 {offsets = [0, 128], sizes = [8, 128], strides = [1, 1]} : vector<8x512xf32> to vector<8x128xf32>
    %489 = arith.negf %488 : vector<8x128xf32>
    %490 = math.exp %489 : vector<8x128xf32>
    %cst_131 = arith.constant 1.000000e+00 : f32
    %491 = vector.broadcast %cst_131 : f32 to vector<8x128xf32>
    %492 = arith.addf %491, %490 : vector<8x128xf32>
    %493 = arith.divf %491, %492 : vector<8x128xf32>
    %494 = vector.extract_strided_slice %481 {offsets = [0, 256], sizes = [8, 128], strides = [1, 1]} : vector<8x512xf32> to vector<8x128xf32>
    %495 = math.tanh %494 : vector<8x128xf32>
    %496 = vector.extract_strided_slice %481 {offsets = [0, 384], sizes = [8, 128], strides = [1, 1]} : vector<8x512xf32> to vector<8x128xf32>
    %497 = arith.negf %496 : vector<8x128xf32>
    %498 = math.exp %497 : vector<8x128xf32>
    %cst_132 = arith.constant 1.000000e+00 : f32
    %499 = vector.broadcast %cst_132 : f32 to vector<8x128xf32>
    %500 = arith.addf %499, %498 : vector<8x128xf32>
    %501 = arith.divf %499, %500 : vector<8x128xf32>
    %502 = arith.mulf %493, %471 : vector<8x128xf32>
    %503 = arith.mulf %487, %495 : vector<8x128xf32>
    %504 = arith.addf %502, %503 : vector<8x128xf32>
    %505 = math.tanh %504 : vector<8x128xf32>
    %506 = arith.mulf %501, %505 : vector<8x128xf32>
    %c15_i32 = arith.constant 15 : i32
    %c8_i32_133 = arith.constant 8 : i32
    %507 = arith.muli %c15_i32, %c8_i32_133 : i32
    %508 = tpu.assume_multiple %507, 8 : i32
    %509 = arith.index_cast %508 : i32 to index
    %c0_134 = arith.constant 0 : index
    %510 = vector.load %arg10[%509, %c0_134] : memref<128x512xf32, #tpu.memory_space<vmem>>, vector<8x512xf32>
    %511 = arith.truncf %506 : vector<8x128xf32> to vector<8x128xbf16>
    %c0_135 = arith.constant 0 : index
    %c0_136 = arith.constant 0 : index
    %512 = vector.load %arg3[%c0_135, %c0_136] : memref<128x512xbf16, #tpu.memory_space<vmem>>, vector<128x512xbf16>
    %cst_137 = arith.constant dense<0.000000e+00> : vector<8x512xf32>
    %513 = tpu.matmul %511, %512, %cst_137 {dimension_numbers = #tpu.dot_dimension_numbers<[1], [0], [0], [1], [0, 0, 1, 1], [], []>} : vector<8x128xbf16>, vector<128x512xbf16>, vector<8x512xf32> -> vector<8x512xf32>
    %514 = arith.addf %510, %513 : vector<8x512xf32>
    %515 = vector.extract_strided_slice %514 {offsets = [0, 0], sizes = [8, 128], strides = [1, 1]} : vector<8x512xf32> to vector<8x128xf32>
    %516 = arith.negf %515 : vector<8x128xf32>
    %517 = math.exp %516 : vector<8x128xf32>
    %cst_138 = arith.constant 1.000000e+00 : f32
    %518 = vector.broadcast %cst_138 : f32 to vector<8x128xf32>
    %519 = arith.addf %518, %517 : vector<8x128xf32>
    %520 = arith.divf %518, %519 : vector<8x128xf32>
    %521 = vector.extract_strided_slice %514 {offsets = [0, 128], sizes = [8, 128], strides = [1, 1]} : vector<8x512xf32> to vector<8x128xf32>
    %522 = arith.negf %521 : vector<8x128xf32>
    %523 = math.exp %522 : vector<8x128xf32>
    %cst_139 = arith.constant 1.000000e+00 : f32
    %524 = vector.broadcast %cst_139 : f32 to vector<8x128xf32>
    %525 = arith.addf %524, %523 : vector<8x128xf32>
    %526 = arith.divf %524, %525 : vector<8x128xf32>
    %527 = vector.extract_strided_slice %514 {offsets = [0, 256], sizes = [8, 128], strides = [1, 1]} : vector<8x512xf32> to vector<8x128xf32>
    %528 = math.tanh %527 : vector<8x128xf32>
    %529 = vector.extract_strided_slice %514 {offsets = [0, 384], sizes = [8, 128], strides = [1, 1]} : vector<8x512xf32> to vector<8x128xf32>
    %530 = arith.negf %529 : vector<8x128xf32>
    %531 = math.exp %530 : vector<8x128xf32>
    %cst_140 = arith.constant 1.000000e+00 : f32
    %532 = vector.broadcast %cst_140 : f32 to vector<8x128xf32>
    %533 = arith.addf %532, %531 : vector<8x128xf32>
    %534 = arith.divf %532, %533 : vector<8x128xf32>
    %535 = arith.mulf %526, %504 : vector<8x128xf32>
    %536 = arith.mulf %520, %528 : vector<8x128xf32>
    %537 = arith.addf %535, %536 : vector<8x128xf32>
    %538 = math.tanh %537 : vector<8x128xf32>
    %539 = arith.mulf %534, %538 : vector<8x128xf32>
    %c16_i32 = arith.constant 16 : i32
    %c0_141 = arith.constant 0 : index
    %c0_142 = arith.constant 0 : index
    %540 = vector.load %arg8[%c0_141, %c0_142] : memref<8x128xf32, #tpu.memory_space<vmem>>, vector<8x128xf32>
    tpu.vector_store %arg8[%c0_141, %c0_142], %539 {strides = array<i32>} : memref<8x128xf32, #tpu.memory_space<vmem>>, vector<8x128xf32>,
    %c0_143 = arith.constant 0 : index
    %c0_144 = arith.constant 0 : index
    %541 = vector.load %arg9[%c0_143, %c0_144] : memref<8x128xf32, #tpu.memory_space<vmem>>, vector<8x128xf32>
    tpu.vector_store %arg9[%c0_143, %c0_144], %537 {strides = array<i32>} : memref<8x128xf32, #tpu.memory_space<vmem>>, vector<8x128xf32>,
    %c0_i32_145 = arith.constant 0 : i32
    %542 = arith.cmpi eq, %arg0, %c0_i32_145 : i32
    %543 = arith.extui %542 : i1 to i32
    %c0_i32_146 = arith.constant 0 : i32
    %544 = arith.cmpi ne, %543, %c0_i32_146 : i32
    scf.if %544 {
      %545 = arith.truncf %539 : vector<8x128xf32> to vector<8x128xbf16>
      %c0_147 = arith.constant 0 : index
      %c0_148 = arith.constant 0 : index
      %546 = vector.load %arg5[%c0_147, %c0_148] : memref<128x24xbf16, #tpu.memory_space<vmem>>, vector<128x24xbf16>
      %cst_149 = arith.constant dense<0.000000e+00> : vector<8x24xf32>
      %547 = tpu.matmul %545, %546, %cst_149 {dimension_numbers = #tpu.dot_dimension_numbers<[1], [0], [0], [1], [0, 0, 1, 1], [], []>} : vector<8x128xbf16>, vector<128x24xbf16>, vector<8x24xf32> -> vector<8x24xf32>
      %c0_150 = arith.constant 0 : index
      %c0_151 = arith.constant 0 : index
      %548 = vector.load %arg6[%c0_150, %c0_151] : memref<1x24xf32, #tpu.memory_space<vmem>>, vector<1x24xf32>
      %549 = vector.broadcast %548 : vector<1x24xf32> to vector<8x24xf32>
      %550 = arith.addf %547, %549 : vector<8x24xf32>
      %c0_152 = arith.constant 0 : index
      %c0_153 = arith.constant 0 : index
      %551 = vector.load %arg7[%c0_152, %c0_153] : memref<8x24xf32, #tpu.memory_space<vmem>>, vector<8x24xf32>
      tpu.vector_store %arg7[%c0_152, %c0_153], %550 {strides = array<i32>} : memref<8x24xf32, #tpu.memory_space<vmem>>, vector<8x24xf32>,
    } else {
    }
    return
  }
  func.func @transform_0(%arg0: i32) -> (i32, i32) {
    %c0_i32 = arith.constant 0 : i32
    %c0_i32_0 = arith.constant 0 : i32
    return %arg0, %c0_i32 : i32, i32
  }
  func.func @transform_1(%arg0: i32) -> (i32, i32) {
    %c0_i32 = arith.constant 0 : i32
    %c0_i32_0 = arith.constant 0 : i32
    %c0_i32_1 = arith.constant 0 : i32
    return %c0_i32, %c0_i32_0 : i32, i32
  }
  func.func @transform_2(%arg0: i32) -> (i32, i32) {
    %c0_i32 = arith.constant 0 : i32
    %c0_i32_0 = arith.constant 0 : i32
    %c0_i32_1 = arith.constant 0 : i32
    return %c0_i32, %c0_i32_0 : i32, i32
  }
  func.func @transform_3(%arg0: i32) -> (i32, i32) {
    %c0_i32 = arith.constant 0 : i32
    %c0_i32_0 = arith.constant 0 : i32
    %c0_i32_1 = arith.constant 0 : i32
    return %c0_i32, %c0_i32_0 : i32, i32
  }
  func.func @transform_4(%arg0: i32) -> (i32, i32) {
    %c0_i32 = arith.constant 0 : i32
    %c0_i32_0 = arith.constant 0 : i32
    %c0_i32_1 = arith.constant 0 : i32
    return %c0_i32, %c0_i32_0 : i32, i32
  }
  func.func @transform_5(%arg0: i32) -> (i32, i32) {
    %c0_i32 = arith.constant 0 : i32
    %c0_i32_0 = arith.constant 0 : i32
    %c0_i32_1 = arith.constant 0 : i32
    return %c0_i32, %c0_i32_0 : i32, i32
  }
  func.func @transform_6(%arg0: i32) -> (i32, i32) {
    %c0_i32 = arith.constant 0 : i32
    %c0_i32_0 = arith.constant 0 : i32
    %c0_i32_1 = arith.constant 0 : i32
    return %c0_i32, %c0_i32_0 : i32, i32
  }
}

</mosaic_0001>

<bundles_post_ra>
// kernel: tpu_custom_call.1
= control target key start
LH: loop header
LB: loop body
LE: loop exit
PB: predicated region body
PF: predicated region fallthrough
CT: control target
= control target key end

     0   :  { %11 = vsyncpa [#allocation6], 0  ;;  %s4740_s0 = inlined_call_operand.vmem [shape: bf16[128,128], index: 0, kind: input, shape index: {}]   ;;  %s4741_s1 = inlined_call_operand.hbm [shape: bf16[128,512], index: 1, kind: input, shape index: {}]   ;;  %s4742_s2 = inlined_call_operand.hbm [shape: bf16[128,512], index: 2, kind: input, shape index: {}]   ;;  %s4743_s3 = inlined_call_operand.vmem [shape: f32[1,512], index: 3, kind: input, shape index: {}]   ;;  %s4744_s4 = inlined_call_operand.vmem [shape: bf16[128,24], index: 4, kind: input, shape index: {}]   ;;  %s4745_s5 = inlined_call_operand.vmem [shape: f32[1,24], index: 5, kind: input, shape index: {}]   ;;  %s4746_s6 = inlined_call_operand.hbm [shape: f32[8,24], index: 6, kind: output, shape index: {}]  }
   0x1   :  { %12 = vsyncpa [#allocation9], 0 }
   0x2   :  { %13 = vsyncpa [#allocation7], 0  ;;  %s3530_s21 = smov [#allocation5]   ;;  %s3458_s25 = scalar_lea.hbm %s4741_s1, 4096 }
   0x3   :  { %s21_s22 = sshll.u32 %s3530_s21, 4  ;;  %p3459_p0 = scmp.ne.s32.totalorder %s4741_s1, %s3458_s25  ;;  %s22_s22 = int_to_ptr.vmem [resolvable:$true] %s21_s22 }
   0x4   :  { %p3462_p1 = scmp.lt.u32.totalorder %s3458_s25, %s4741_s1 }
   0x6   :  { %p3464_p2 = pnand %p3462_p1, %p3459_p0 }
   0x8   :  { %3467 = shalt.err (!%p3464_p2)
}
   0x9   :  { %s3468_s30 = scalar_lea.vmem %s22_s22, 4096  ;;  %p3473_p4 = scmp.lt.s32.totalorder %s22_s22, %s22_s22 }
   0xa   :  { %p3469_p3 = scmp.ne.s32.totalorder %s22_s22, %s3468_s30  ;;  %p3474_p5 = scmp.lt.s32.totalorder %s3468_s30, %s3468_s30 }
   0xc   :  { %p3475_p6 = por %p3474_p5, %p3473_p4 }
   0xe   :  { %p3476_p7 = pnand %p3475_p6, %p3469_p3 }
  0x10   :  { %3479 = shalt.err (!%p3476_p7)
}
  0x11   :  { %s3531_s7 = smov 256   ;;  %s3532_s8 = smov 16  }
  0x12   :  { %27 = dma.hbm_to_vmem [thread:$0]  %s4741_s1, 4096, %s22_s22, [#allocation6], %s3531_s7, %s3531_s7, %s3532_s8  }
  0x13   :  { %s3533_s11 = smov [#allocation8]   ;;  %s3480_s15 = scalar_lea.hbm %s4742_s2, 4096 }
  0x14   :  { %s33_s12 = sshll.u32 %s3533_s11, 4  ;;  %p3481_p8 = scmp.ne.s32.totalorder %s4742_s2, %s3480_s15  ;;  %s34_s12 = int_to_ptr.vmem [resolvable:$true] %s33_s12 }
  0x15   :  { %p3484_p9 = scmp.lt.u32.totalorder %s3480_s15, %s4742_s2 }
  0x17   :  { %p3486_p10 = pnand %p3484_p9, %p3481_p8 }
  0x19   :  { %3489 = shalt.err (!%p3486_p10)
}
  0x1a   :  { %s3490_s20 = scalar_lea.vmem %s34_s12, 4096  ;;  %p3495_p12 = scmp.lt.s32.totalorder %s34_s12, %s34_s12 }
  0x1b   :  { %p3491_p11 = scmp.ne.s32.totalorder %s34_s12, %s3490_s20  ;;  %p3496_p13 = scmp.lt.s32.totalorder %s3490_s20, %s3490_s20 }
  0x1d   :  { %p3497_p0 = por %p3496_p13, %p3495_p12 }
  0x1f   :  { %p3498_p1 = pnand %p3497_p0, %p3491_p11 }
  0x21   :  { %3501 = shalt.err (!%p3498_p1)
}
  0x22   :  { %39 = dma.hbm_to_vmem [thread:$0]  %s4742_s2, 4096, %s34_s12, [#allocation9], %s3531_s7, %s3531_s7, %s3532_s8  }
  0x23   :  { %3524 = dma.done.wait [#allocation6], 4096  }
  0x24   :  { %3525 = vsyncadd [#allocation6], 4294963200 }
  0x25   :  { %3526 = dma.done.wait [#allocation9], 4096  }
  0x26   :  { %3527 = vsyncadd [#allocation9], 4294963200  ;;  %v4747_v0 = vmov 0   ;;  %v3026_v1 = vld [vmem:[#allocation5 + $0x4] ss:$16 sps:$4 sm:$0xff]   ;;  %v3078_v43 = vld [vmem:[%s4740_s0 + $0x8] sm:$0xff]  }
  0x27   :  { %369 = vmatprep.mubr.bf16.mxu0 %v4747_v0  ;;  %482 = vmatprep.mubr.bf16.mxu1 %v4747_v0  ;;  %v3028_v2 = vld [vmem:[#allocation5 + $0xc] ss:$16 sps:$4 sm:$0xff]   ;;  %v3030_v3 = vld [vmem:[#allocation5] ss:$16 sps:$4 sm:$0xff]   ;;  %v3031_v4 = vld [vmem:[#allocation5 + $0x8] ss:$16 sps:$4 sm:$0xff]  }
  0x28   :  { %337 = vmatprep.subr.bf16.mxu0 %v3026_v1  ;;  %450 = vmatprep.subr.bf16.mxu1 %v3028_v2  ;;  %v3032_v5 = vld [vmem:[#allocation5 + $0x24] ss:$16 sps:$4 sm:$0xff]   ;;  %v3034_v6 = vld [vmem:[#allocation5 + $0x2c] ss:$16 sps:$4 sm:$0xff]   ;;  %v3036_v7 = vld [vmem:[#allocation5 + $0x20] ss:$16 sps:$4 sm:$0xff]  }
  0x29   :  { %338 = vmatpush1.bf16.msra.mxu0 %v3030_v3  ;;  %451 = vmatpush1.bf16.msra.mxu1 %v3031_v4  ;;  %v3037_v8 = vld [vmem:[#allocation5 + $0x28] ss:$16 sps:$4 sm:$0xff]   ;;  %v3038_v9 = vld [vmem:[#allocation5 + $0x44] ss:$16 sps:$4 sm:$0xff]   ;;  %v3040_v10 = vld [vmem:[#allocation5 + $0x4c] ss:$16 sps:$4 sm:$0xff]  }
  0x2a   :  { %339 = vmatprep.subr.bf16.mxu0 %v3032_v5  ;;  %452 = vmatprep.subr.bf16.mxu1 %v3034_v6  ;;  %v3042_v11 = vld [vmem:[#allocation5 + $0x40] ss:$16 sps:$4 sm:$0xff]   ;;  %v3043_v12 = vld [vmem:[#allocation5 + $0x48] ss:$16 sps:$4 sm:$0xff]   ;;  %v3044_v13 = vld [vmem:[#allocation5 + $0x64] ss:$16 sps:$4 sm:$0xff]  }
  0x2b   :  { %v3046_v14 = vld [vmem:[#allocation5 + $0x6c] ss:$16 sps:$4 sm:$0xff]   ;;  %v3048_v15 = vld [vmem:[#allocation5 + $0x60] ss:$16 sps:$4 sm:$0xff]   ;;  %v3049_v16 = vld [vmem:[#allocation5 + $0x68] ss:$16 sps:$4 sm:$0xff]  }
  0x2c   :  { %v3050_v17 = vld [vmem:[#allocation5 + $0x84] ss:$16 sps:$4 sm:$0xff]   ;;  %v3052_v18 = vld [vmem:[#allocation5 + $0x8c] ss:$16 sps:$4 sm:$0xff]   ;;  %v3054_v19 = vld [vmem:[#allocation5 + $0x80] ss:$16 sps:$4 sm:$0xff]  }
  0x2d   :  { %340 = vmatpush1.bf16.msra.mxu0 %v3036_v7  ;;  %453 = vmatpush1.bf16.msra.mxu1 %v3037_v8  ;;  %v3055_v20 = vld [vmem:[#allocation5 + $0x88] ss:$16 sps:$4 sm:$0xff]   ;;  %v3056_v21 = vld [vmem:[#allocation5 + $0xa4] ss:$16 sps:$4 sm:$0xff]   ;;  %v3058_v22 = vld [vmem:[#allocation5 + $0xac] ss:$16 sps:$4 sm:$0xff]  }
  0x2e   :  { %341 = vmatprep.subr.bf16.mxu0 %v3038_v9  ;;  %454 = vmatprep.subr.bf16.mxu1 %v3040_v10  ;;  %v3060_v23 = vld [vmem:[#allocation5 + $0xa0] ss:$16 sps:$4 sm:$0xff]   ;;  %v3061_v24 = vld [vmem:[#allocation5 + $0xa8] ss:$16 sps:$4 sm:$0xff]   ;;  %v3062_v25 = vld [vmem:[#allocation5 + $0xc4] ss:$16 sps:$4 sm:$0xff]  }
  0x2f   :  { %v3064_v26 = vld [vmem:[#allocation5 + $0xcc] ss:$16 sps:$4 sm:$0xff]   ;;  %v3066_v27 = vld [vmem:[#allocation5 + $0xc0] ss:$16 sps:$4 sm:$0xff]   ;;  %v3067_v28 = vld [vmem:[#allocation5 + $0xc8] ss:$16 sps:$4 sm:$0xff]  }
  0x30   :  { %v3068_v29 = vld [vmem:[#allocation5 + $0xe4] ss:$16 sps:$4 sm:$0xff]   ;;  %v3070_v30 = vld [vmem:[#allocation5 + $0xec] ss:$16 sps:$4 sm:$0xff]   ;;  %v3072_v31 = vld [vmem:[#allocation5 + $0xe0] ss:$16 sps:$4 sm:$0xff]  }
  0x31   :  { %342 = vmatpush1.bf16.msra.mxu0 %v3042_v11  ;;  %455 = vmatpush1.bf16.msra.mxu1 %v3043_v12  ;;  %v3073_v32 = vld [vmem:[#allocation5 + $0xe8] ss:$16 sps:$4 sm:$0xff]   ;;  %v3600_v33 = vld [vmem:[#allocation8 + $0x4] ss:$16 sps:$4 sm:$0xff]   ;;  %v3602_v34 = vld [vmem:[#allocation8 + $0xc] ss:$16 sps:$4 sm:$0xff]   ;;  %v109_v11 = vlaneseq }
  0x32   :  { %343 = vmatprep.subr.bf16.mxu0 %v3044_v13  ;;  %456 = vmatprep.subr.bf16.mxu1 %v3046_v14  ;;  %v3074_v35 = vld [vmem:[%s4740_s0] sm:$0xff]   ;;  %v3613_v38 = vld [vmem:[#allocation8 + $0x8] ss:$16 sps:$4 sm:$0xff]   ;;  %v3615_v39 = vld [vmem:[#allocation8 + $0x2c] ss:$16 sps:$4 sm:$0xff]   ;;  %v3535_v10 = vmov 0.0|0.0  }
  0x33   :  { %v3607_v36 = vld [vmem:[#allocation8] ss:$16 sps:$4 sm:$0xff]   ;;  %v3610_v37 = vld [vmem:[#allocation8 + $0x24] ss:$16 sps:$4 sm:$0xff]   ;;  %v3626_v42 = vld [vmem:[#allocation8 + $0x28] ss:$16 sps:$4 sm:$0xff]  }
  0x34   :  { %v3619_v40 = vld [vmem:[#allocation8 + $0x20] ss:$16 sps:$4 sm:$0xff]   ;;  %v3623_v41 = vld [vmem:[#allocation8 + $0x44] ss:$16 sps:$4 sm:$0xff]   ;;  %v3638_v46 = vld [vmem:[#allocation8 + $0x4c] ss:$16 sps:$4 sm:$0xff]  }
  0x35   :  { %344 = vmatpush1.bf16.msra.mxu0 %v3048_v15  ;;  %457 = vmatpush1.bf16.msra.mxu1 %v3049_v16  ;;  %v3633_v44 = vld [vmem:[#allocation8 + $0x40] ss:$16 sps:$4 sm:$0xff]   ;;  %v3635_v45 = vld [vmem:[#allocation8 + $0x64] ss:$16 sps:$4 sm:$0xff]   ;;  %v3641_v47 = vld [vmem:[#allocation8 + $0x48] ss:$16 sps:$4 sm:$0xff]  }
  0x36   :  { %345 = vmatprep.subr.bf16.mxu0 %v3050_v17  ;;  %458 = vmatprep.subr.bf16.mxu1 %v3052_v18  ;;  %v3643_v48 = vld [vmem:[#allocation8 + $0x6c] ss:$16 sps:$4 sm:$0xff]   ;;  %v3648_v49 = vld [vmem:[#allocation8 + $0x60] ss:$16 sps:$4 sm:$0xff]   ;;  %v3651_v50 = vld [vmem:[#allocation8 + $0x84] ss:$16 sps:$4 sm:$0xff]  }
  0x37   :  { %v3655_v51 = vld [vmem:[#allocation8 + $0x68] ss:$16 sps:$4 sm:$0xff]   ;;  %v3084_v52 = vld [vmem:[%s4740_s0 + $0x10] sm:$0xff]   ;;  %v3664_v54 = vld [vmem:[#allocation8 + $0x8c] ss:$16 sps:$4 sm:$0xff]   ;;  %v110_v12 = vshrl.u32 %v109_v11, 7 }
  0x38   :  { %v3661_v53 = vld [vmem:[#allocation8 + $0x80] ss:$16 sps:$4 sm:$0xff]   ;;  %v3667_v55 = vld [vmem:[#allocation8 + $0xa4] ss:$16 sps:$4 sm:$0xff]   ;;  %v3670_v56 = vld [vmem:[#allocation8 + $0x88] ss:$16 sps:$4 sm:$0xff]  }
  0x39   :  { %346 = vmatpush1.bf16.msra.mxu0 %v3054_v19  ;;  %459 = vmatpush1.bf16.msra.mxu1 %v3055_v20  ;;  %v3672_v57 = vld [vmem:[#allocation8 + $0xac] ss:$16 sps:$4 sm:$0xff]   ;;  %v3674_v58 = vld [vmem:[#allocation8 + $0xa0] ss:$16 sps:$4 sm:$0xff]   ;;  %v3678_v59 = vld [vmem:[#allocation8 + $0xc4] ss:$16 sps:$4 sm:$0xff]  }
  0x3a   :  { %347 = vmatprep.subr.bf16.mxu0 %v3056_v21  ;;  %460 = vmatprep.subr.bf16.mxu1 %v3058_v22  ;;  %v3680_v60 = vld [vmem:[#allocation8 + $0xa8] ss:$16 sps:$4 sm:$0xff]   ;;  %v3691_v62 = vld [vmem:[#allocation8 + $0xc0] ss:$16 sps:$4 sm:$0xff]   ;;  %v3693_v63 = vld [vmem:[#allocation8 + $0xcc] ss:$16 sps:$4 sm:$0xff]  }
  0x3b   :  { %v3091_v61 = vld [vmem:[%s4740_s0 + $0x18] sm:$0xff]   ;;  %v3697_v1 = vld [vmem:[#allocation8 + $0xe4] ss:$16 sps:$4 sm:$0xff]   ;;  %v3707_v4 = vld [vmem:[#allocation8 + $0xe0] ss:$16 sps:$4 sm:$0xff]   ;;  %v119_v13 = vsub.s32 2, %v110_v12 }
  0x3c   :  { %v3699_v2 = vld [vmem:[#allocation8 + $0xc8] ss:$16 sps:$4 sm:$0xff]   ;;  %v3701_v3 = vld [vmem:[#allocation8 + $0xec] ss:$16 sps:$4 sm:$0xff]   ;;  %v3098_v6 = vld [vmem:[%s4740_s0 + $0x20] sm:$0xff]   ;;  %v123_v14 = vsub.s32 3, %v110_v12 }
  0x3d   :  { %348 = vmatpush1.bf16.msra.mxu0 %v3060_v23  ;;  %461 = vmatpush1.bf16.msra.mxu1 %v3061_v24  ;;  %v3711_v5 = vld [vmem:[#allocation8 + $0xe8] ss:$16 sps:$4 sm:$0xff]   ;;  %v3112_v8 = vld [vmem:[%s4740_s0 + $0x30] sm:$0xff]   ;;  %v111_v15 = vsub.s32 0, %v110_v12  ;;  %v107_v16 = vld [vmem:[%s4743_s3] sm:$0xf] }
  0x3e   :  { %349 = vmatprep.subr.bf16.mxu0 %v3062_v25  ;;  %462 = vmatprep.subr.bf16.mxu1 %v3064_v26  ;;  %v3105_v7 = vld [vmem:[%s4740_s0 + $0x28] sm:$0xff]   ;;  %v3120_v9 = vld [vmem:[%s4740_s0 + $0x38] sm:$0xff]   ;;  %v115_v17 = vsub.s32 1, %v110_v12  ;;  %v3775_v18 = vrot.slane %v107_v16, %v119_v13  ;;  %v3781_v21 = vrot.slane %v107_v16, %v123_v14  ;;  %vm3537_vm0 = vmmov 0   ;;  %s3538_s28 = smov [#allocation10]  }
  0x3f   :  { %v3783_v22 = vrot.slane %v107_v16, %v111_v15  ;;  %s2834_s29 = sshll.u32 %s3538_s28, 4  ;;  %vm2826_vm1 = vcmask 195584   ;;  %s2835_s29 = int_to_ptr.vmem [resolvable:$true] %s2834_s29 }
  0x40   :  { %v3789_v25 = vrot.slane %v107_v16, %v115_v17  ;;  %s3502_s30 = scalar_lea.vmem %s2835_s29, 128  ;;  %p3507_p3 = scmp.lt.s32.totalorder %s2835_s29, %s2835_s29 }
  0x41   :  { %350 = vmatpush1.bf16.msra.mxu0 %v3066_v27  ;;  %463 = vmatpush1.bf16.msra.mxu1 %v3067_v28  ;;  %p3503_p2 = scmp.ne.s32.totalorder %s2835_s29, %s3502_s30  ;;  %p3508_p4 = scmp.lt.s32.totalorder %s3502_s30, %s3502_s30 }
  0x42   :  { %351 = vmatprep.subr.bf16.mxu0 %v3068_v29  ;;  %464 = vmatprep.subr.bf16.mxu1 %v3070_v30 }
  0x43   :  { %p3509_p5 = por %p3508_p4, %p3507_p3 }
  0x45   :  { %352 = vmatpush1.bf16.msra.mxu0 %v3072_v31  ;;  %465 = vmatpush1.bf16.msra.mxu1 %v3073_v32  ;;  %p3510_p6 = pnand %p3509_p5, %p3503_p2 }
  0x46   :  { %829 = vmatprep.subr.bf16.mxu0 %v3600_v33  ;;  %870 = vmatprep.subr.bf16.mxu1 %v3602_v34 }
  0x48   :  { %370 = vmatmul.mubr.bf16.vlgmr.msra.gmra.mrb[0].mxu0 %v3074_v35  ;;  %483 = vmatmul.mubr.bf16.vlgmr.msra.gmra.mrb[0].mxu1 %v3074_v35 }
  0x49   :  { %830 = vmatpush1.bf16.msra.mxu0 %v3607_v36  ;;  %379 = vmatprep.mubr.bf16.mxu0 %v4747_v0 }
  0x4a   :  { %492 = vmatprep.mubr.bf16.mxu1 %v4747_v0  ;;  %831 = vmatprep.subr.bf16.mxu0 %v3610_v37 }
  0x4b   :  { %871 = vmatpush1.bf16.msra.mxu1 %v3613_v38 }
  0x4c   :  { %872 = vmatprep.subr.bf16.mxu1 %v3615_v39 }
  0x4d   :  { %832 = vmatpush1.bf16.msra.mxu0 %v3619_v40 }
  0x4e   :  { %833 = vmatprep.subr.bf16.mxu0 %v3623_v41 }
  0x4f   :  { %873 = vmatpush1.bf16.msra.mxu1 %v3626_v42 }
  0x50   :  { %380 = vmatmul.mubr.bf16.gmra.mrb[4].mxu0 %v3078_v43  ;;  %493 = vmatmul.mubr.bf16.gmra.mrb[4].mxu1 %v3078_v43 }
  0x51   :  { %389 = vmatprep.mubr.bf16.mxu0 %v4747_v0  ;;  %502 = vmatprep.mubr.bf16.mxu1 %v4747_v0 }
  0x52   :  { %834 = vmatpush1.bf16.msra.mxu0 %v3633_v44  ;;  %874 = vmatprep.subr.bf16.mxu1 %v3638_v46 }
  0x53   :  { %835 = vmatprep.subr.bf16.mxu0 %v3635_v45  ;;  %875 = vmatpush1.bf16.msra.mxu1 %v3641_v47 }
  0x54   :  { %876 = vmatprep.subr.bf16.mxu1 %v3643_v48 }
  0x56   :  { %836 = vmatpush1.bf16.msra.mxu0 %v3648_v49 }
  0x57   :  { %837 = vmatprep.subr.bf16.mxu0 %v3651_v50  ;;  %877 = vmatpush1.bf16.msra.mxu1 %v3655_v51 }
  0x58   :  { %390 = vmatmul.mubr.bf16.gmra.mrb[8].mxu0 %v3084_v52  ;;  %503 = vmatmul.mubr.bf16.gmra.mrb[8].mxu1 %v3084_v52 }
  0x59   :  { %399 = vmatprep.mubr.bf16.mxu0 %v4747_v0  ;;  %512 = vmatprep.mubr.bf16.mxu1 %v4747_v0 }
  0x5a   :  { %838 = vmatpush1.bf16.msra.mxu0 %v3661_v53  ;;  %878 = vmatprep.subr.bf16.mxu1 %v3664_v54 }
  0x5b   :  { %839 = vmatprep.subr.bf16.mxu0 %v3667_v55  ;;  %879 = vmatpush1.bf16.msra.mxu1 %v3670_v56 }
  0x5c   :  { %880 = vmatprep.subr.bf16.mxu1 %v3672_v57 }
  0x5e   :  { %840 = vmatpush1.bf16.msra.mxu0 %v3674_v58 }
  0x5f   :  { %841 = vmatprep.subr.bf16.mxu0 %v3678_v59  ;;  %881 = vmatpush1.bf16.msra.mxu1 %v3680_v60 }
  0x60   :  { %400 = vmatmul.mubr.bf16.gmra.mrb[12].mxu0 %v3091_v61  ;;  %513 = vmatmul.mubr.bf16.gmra.mrb[12].mxu1 %v3091_v61 }
  0x61   :  { %409 = vmatprep.mubr.bf16.mxu0 %v4747_v0  ;;  %522 = vmatprep.mubr.bf16.mxu1 %v4747_v0 }
  0x62   :  { %842 = vmatpush1.bf16.msra.mxu0 %v3691_v62  ;;  %882 = vmatprep.subr.bf16.mxu1 %v3693_v63 }
  0x63   :  { %843 = vmatprep.subr.bf16.mxu0 %v3697_v1  ;;  %883 = vmatpush1.bf16.msra.mxu1 %v3699_v2 }
  0x64   :  { %884 = vmatprep.subr.bf16.mxu1 %v3701_v3 }
  0x66   :  { %844 = vmatpush1.bf16.msra.mxu0 %v3707_v4 }
  0x67   :  { %885 = vmatpush1.bf16.msra.mxu1 %v3711_v5  ;;  %947 = vmatprep.subr.bf16.mxu0 %v3600_v33 }
  0x68   :  { %410 = vmatmul.mubr.bf16.gmra.mrb[16].mxu0 %v3098_v6  ;;  %523 = vmatmul.mubr.bf16.gmra.mrb[16].mxu1 %v3098_v6 }
  0x69   :  { %419 = vmatprep.mubr.bf16.mxu0 %v4747_v0  ;;  %532 = vmatprep.mubr.bf16.mxu1 %v4747_v0 }
  0x6a   :  { %988 = vmatprep.subr.bf16.mxu1 %v3602_v34 }
  0x70   :  { %420 = vmatmul.mubr.bf16.gmra.mrb[20].mxu0 %v3105_v7  ;;  %533 = vmatmul.mubr.bf16.gmra.mrb[20].mxu1 %v3105_v7 }
  0x71   :  { %429 = vmatprep.mubr.bf16.mxu0 %v4747_v0  ;;  %542 = vmatprep.mubr.bf16.mxu1 %v4747_v0 }
  0x78   :  { %430 = vmatmul.mubr.bf16.gmra.mrb[24].mxu0 %v3112_v8  ;;  %543 = vmatmul.mubr.bf16.gmra.mrb[24].mxu1 %v3112_v8 }
  0x79   :  { %439 = vmatprep.mubr.bf16.mxu0 %v4747_v0  ;;  %552 = vmatprep.mubr.bf16.mxu1 %v4747_v0 }
  0x80   :  { %440 = vmatmul.mubr.bf16.gmra.mrb[28].mxu0 %v3120_v9  ;;  %553 = vmatmul.mubr.bf16.gmra.mrb[28].mxu1 %v3120_v9 }
  0x81   :  { %861 = vmatprep.mubr.bf16.mxu0 %v4747_v0  ;;  %902 = vmatprep.mubr.bf16.mxu1 %v4747_v0 }
  0x88   :  { %862 = vmatmul.mubr.bf16.vlgmr.msra.gmra.mrb[32].mxu0 %v3535_v10  ;;  %903 = vmatmul.mubr.bf16.vlgmr.msra.gmra.mrb[32].mxu1 %v3535_v10 }
  0x89   :  { %948 = vmatpush1.bf16.msra.mxu0 %v3607_v36  ;;  %989 = vmatpush1.bf16.msra.mxu1 %v3613_v38 }
  0x8a   :  { %949 = vmatprep.subr.bf16.mxu0 %v3610_v37  ;;  %990 = vmatprep.subr.bf16.mxu1 %v3615_v39 }
  0x8b   :  { %979 = vmatprep.mubr.bf16.mxu0 %v4747_v0  ;;  %1020 = vmatprep.mubr.bf16.mxu1 %v4747_v0 }
  0x8d   :  { %950 = vmatpush1.bf16.msra.mxu0 %v3619_v40  ;;  %991 = vmatpush1.bf16.msra.mxu1 %v3626_v42 }
  0x8e   :  { %951 = vmatprep.subr.bf16.mxu0 %v3623_v41  ;;  %992 = vmatprep.subr.bf16.mxu1 %v3638_v46 }
  0x91   :  { %952 = vmatpush1.bf16.msra.mxu0 %v3633_v44  ;;  %993 = vmatpush1.bf16.msra.mxu1 %v3641_v47 }
  0x92   :  { %953 = vmatprep.subr.bf16.mxu0 %v3635_v45  ;;  %994 = vmatprep.subr.bf16.mxu1 %v3643_v48 }
  0x95   :  { %954 = vmatpush1.bf16.msra.mxu0 %v3648_v49  ;;  %995 = vmatpush1.bf16.msra.mxu1 %v3655_v51 }
  0x96   :  { %955 = vmatprep.subr.bf16.mxu0 %v3651_v50  ;;  %996 = vmatprep.subr.bf16.mxu1 %v3664_v54 }
  0x99   :  { %956 = vmatpush1.bf16.msra.mxu0 %v3661_v53  ;;  %997 = vmatpush1.bf16.msra.mxu1 %v3670_v56 }
  0x9a   :  { %957 = vmatprep.subr.bf16.mxu0 %v3667_v55  ;;  %998 = vmatprep.subr.bf16.mxu1 %v3672_v57 }
  0x9d   :  { %958 = vmatpush1.bf16.msra.mxu0 %v3674_v58  ;;  %999 = vmatpush1.bf16.msra.mxu1 %v3680_v60 }
  0x9e   :  { %959 = vmatprep.subr.bf16.mxu0 %v3678_v59  ;;  %1000 = vmatprep.subr.bf16.mxu1 %v3693_v63 }
  0xa1   :  { %960 = vmatpush1.bf16.msra.mxu0 %v3691_v62  ;;  %1001 = vmatpush1.bf16.msra.mxu1 %v3699_v2 }
  0xa2   :  { %961 = vmatprep.subr.bf16.mxu0 %v3697_v1  ;;  %1002 = vmatprep.subr.bf16.mxu1 %v3701_v3 }
  0xa5   :  { %962 = vmatpush1.bf16.msra.mxu0 %v3707_v4  ;;  %1003 = vmatpush1.bf16.msra.mxu1 %v3711_v5 }
  0xa6   :  { %1065 = vmatprep.subr.bf16.mxu0 %v3600_v33  ;;  %1106 = vmatprep.subr.bf16.mxu1 %v3602_v34 }
 0x11b   :  { %v3777_v19 = vpop.f32.mrb[0].mxu0  ;;  %v3779_v20 = vpop.f32.mrb[0].mxu1 }
 0x11c   :  { %v3785_v23 = vpop.f32.mrb[1].mxu0  ;;  %v3787_v24 = vpop.f32.mrb[1].mxu1 }
 0x11d   :  { %v375_v26 = vpop.f32.mrb[2].mxu0  ;;  %v488_v27 = vpop.f32.mrb[2].mxu1 }
 0x11e   :  { %v3792_v28 = vadd.f32 %v375_v26, %v3783_v22  ;;  %v377_v29 = vpop.f32.mrb[3].mxu0  ;;  %v3795_v30 = vadd.f32 %v488_v27, %v3775_v18  ;;  %v490_v31 = vpop.f32.mrb[3].mxu1 }
 0x11f   :  { %v3798_v32 = vadd.f32 %v377_v29, %v3789_v25  ;;  %v3801_v35 = vadd.f32 %v490_v31, %v3781_v21 }
 0x123   :  { %v381_v43 = vpop.f32.mrb[4].mxu0  ;;  %v494_v52 = vpop.f32.mrb[4].mxu1 }
 0x124   :  { %v3804_v61 = vadd.f32 %v381_v43, %v3783_v22  ;;  %v383_v6 = vpop.f32.mrb[5].mxu0  ;;  %v3807_v7 = vadd.f32 %v494_v52, %v3775_v18  ;;  %v496_v8 = vpop.f32.mrb[5].mxu1 }
 0x125   :  { %v3810_v9 = vadd.f32 %v383_v6, %v3789_v25  ;;  %v385_v10 = vpop.f32.mrb[6].mxu0  ;;  %v3813_v11 = vadd.f32 %v496_v8, %v3781_v21  ;;  %v498_v12 = vpop.f32.mrb[6].mxu1 }
 0x126   :  { %v3816_v13 = vadd.f32 %v385_v10, %v3783_v22  ;;  %v387_v14 = vpop.f32.mrb[7].mxu0  ;;  %v3819_v15 = vadd.f32 %v498_v12, %v3775_v18  ;;  %v500_v16 = vpop.f32.mrb[7].mxu1 }
 0x127   :  { %v3822_v17 = vadd.f32 %v387_v14, %v3789_v25  ;;  %v3825_v26 = vadd.f32 %v500_v16, %v3781_v21 }
 0x128   :  { %4749 = vst [vmem:[#allocation14_spill] sm:$0xff] %v3819_v15 }
 0x129   :  { %4750 = vst [vmem:[#allocation15_spill] sm:$0xff] %v3822_v17  ;;  %4751 = vst [vmem:[#allocation16_spill] sm:$0xff] %v3825_v26 }
 0x12b   :  { %v391_v27 = vpop.f32.mrb[8].mxu0  ;;  %v504_v29 = vpop.f32.mrb[8].mxu1 }
 0x12c   :  { %v3828_v31 = vadd.f32 %v391_v27, %v3783_v22  ;;  %v393_v43 = vpop.f32.mrb[9].mxu0  ;;  %v3831_v52 = vadd.f32 %v504_v29, %v3775_v18  ;;  %v506_v6 = vpop.f32.mrb[9].mxu1 }
 0x12d   :  { %v3834_v8 = vadd.f32 %v393_v43, %v3789_v25  ;;  %v395_v10 = vpop.f32.mrb[10].mxu0  ;;  %v3837_v12 = vadd.f32 %v506_v6, %v3781_v21  ;;  %v508_v14 = vpop.f32.mrb[10].mxu1 }
 0x12e   :  { %4752 = vst [vmem:[#allocation17_spill] sm:$0xff] %v3828_v31  ;;  %4753 = vst [vmem:[#allocation18_spill] sm:$0xff] %v3831_v52  ;;  %v3840_v16 = vadd.f32 %v395_v10, %v3783_v22  ;;  %v397_v0 = vpop.f32.mrb[11].mxu0  ;;  %v3843_v27 = vadd.f32 %v508_v14, %v3775_v18  ;;  %v510_v31 = vpop.f32.mrb[11].mxu1 }
 0x12f   :  { %4754 = vst [vmem:[#allocation19_spill] sm:$0xff] %v3834_v8  ;;  %4755 = vst [vmem:[#allocation20_spill] sm:$0xff] %v3837_v12  ;;  %v3846_v29 = vadd.f32 %v397_v0, %v3789_v25  ;;  %v3849_v52 = vadd.f32 %v510_v31, %v3781_v21 }
 0x130   :  { %4756 = vst [vmem:[#allocation21_spill] sm:$0xff] %v3840_v16  ;;  %4757 = vst [vmem:[#allocation22_spill] sm:$0xff] %v3843_v27 }
 0x131   :  { %4758 = vst [vmem:[#allocation23_spill] sm:$0xff] %v3846_v29  ;;  %4759 = vst [vmem:[#allocation24_spill] sm:$0xff] %v3849_v52 }
 0x133   :  { %v401_v43 = vpop.f32.mrb[12].mxu0  ;;  %v514_v8 = vpop.f32.mrb[12].mxu1 }
 0x134   :  { %v3852_v6 = vadd.f32 %v401_v43, %v3783_v22  ;;  %v403_v12 = vpop.f32.mrb[13].mxu0  ;;  %v3855_v10 = vadd.f32 %v514_v8, %v3775_v18  ;;  %v516_v16 = vpop.f32.mrb[13].mxu1 }
 0x135   :  { %v3858_v14 = vadd.f32 %v403_v12, %v3789_v25  ;;  %v405_v27 = vpop.f32.mrb[14].mxu0  ;;  %v3861_v0 = vadd.f32 %v516_v16, %v3781_v21  ;;  %v518_v29 = vpop.f32.mrb[14].mxu1 }
 0x136   :  { %4760 = vst [vmem:[#allocation25_spill] sm:$0xff] %v3852_v6  ;;  %4761 = vst [vmem:[#allocation26_spill] sm:$0xff] %v3855_v10  ;;  %v3864_v31 = vadd.f32 %v405_v27, %v3783_v22  ;;  %v407_v52 = vpop.f32.mrb[15].mxu0  ;;  %v3867_v43 = vadd.f32 %v518_v29, %v3775_v18  ;;  %v520_v6 = vpop.f32.mrb[15].mxu1 }
 0x137   :  { %4762 = vst [vmem:[#allocation27_spill] sm:$0xff] %v3858_v14  ;;  %4763 = vst [vmem:[#allocation28_spill] sm:$0xff] %v3861_v0  ;;  %v3870_v8 = vadd.f32 %v407_v52, %v3789_v25  ;;  %v3873_v10 = vadd.f32 %v520_v6, %v3781_v21 }
 0x138   :  { %4764 = vst [vmem:[#allocation29_spill] sm:$0xff] %v3864_v31  ;;  %4765 = vst [vmem:[#allocation30_spill] sm:$0xff] %v3867_v43 }
 0x139   :  { %4766 = vst [vmem:[#allocation31_spill] sm:$0xff] %v3870_v8  ;;  %4767 = vst [vmem:[#allocation32_spill] sm:$0xff] %v3873_v10 }
 0x13b   :  { %v411_v12 = vpop.f32.mrb[16].mxu0  ;;  %v524_v14 = vpop.f32.mrb[16].mxu1 }
 0x13c   :  { %v3876_v16 = vadd.f32 %v411_v12, %v3783_v22  ;;  %v413_v0 = vpop.f32.mrb[17].mxu0  ;;  %v3879_v27 = vadd.f32 %v524_v14, %v3775_v18  ;;  %v526_v31 = vpop.f32.mrb[17].mxu1 }
 0x13d   :  { %v3882_v29 = vadd.f32 %v413_v0, %v3789_v25  ;;  %v415_v43 = vpop.f32.mrb[18].mxu0  ;;  %v3885_v52 = vadd.f32 %v526_v31, %v3781_v21  ;;  %v528_v8 = vpop.f32.mrb[18].mxu1 }
 0x13e   :  { %4768 = vst [vmem:[#allocation33_spill] sm:$0xff] %v3876_v16  ;;  %4769 = vst [vmem:[#allocation34_spill] sm:$0xff] %v3879_v27  ;;  %v3888_v6 = vadd.f32 %v415_v43, %v3783_v22  ;;  %v417_v10 = vpop.f32.mrb[19].mxu0  ;;  %v3891_v12 = vadd.f32 %v528_v8, %v3775_v18  ;;  %v530_v16 = vpop.f32.mrb[19].mxu1 }
 0x13f   :  { %4770 = vst [vmem:[#allocation35_spill] sm:$0xff] %v3882_v29  ;;  %4771 = vst [vmem:[#allocation36_spill] sm:$0xff] %v3885_v52  ;;  %v3894_v14 = vadd.f32 %v417_v10, %v3789_v25  ;;  %v3897_v27 = vadd.f32 %v530_v16, %v3781_v21 }
 0x140   :  { %4772 = vst [vmem:[#allocation37_spill] sm:$0xff] %v3888_v6  ;;  %4773 = vst [vmem:[#allocation38_spill] sm:$0xff] %v3891_v12 }
 0x141   :  { %4774 = vst [vmem:[#allocation39_spill] sm:$0xff] %v3894_v14  ;;  %4775 = vst [vmem:[#allocation40_spill] sm:$0xff] %v3897_v27 }
 0x143   :  { %v421_v0 = vpop.f32.mrb[20].mxu0  ;;  %v534_v29 = vpop.f32.mrb[20].mxu1 }
 0x144   :  { %v3900_v31 = vadd.f32 %v421_v0, %v3783_v22  ;;  %v423_v52 = vpop.f32.mrb[21].mxu0  ;;  %v3903_v43 = vadd.f32 %v534_v29, %v3775_v18  ;;  %v536_v6 = vpop.f32.mrb[21].mxu1 }
 0x145   :  { %v3906_v8 = vadd.f32 %v423_v52, %v3789_v25  ;;  %v425_v12 = vpop.f32.mrb[22].mxu0  ;;  %v3909_v10 = vadd.f32 %v536_v6, %v3781_v21  ;;  %v538_v14 = vpop.f32.mrb[22].mxu1 }
 0x146   :  { %4776 = vst [vmem:[#allocation41_spill] sm:$0xff] %v3900_v31  ;;  %4777 = vst [vmem:[#allocation42_spill] sm:$0xff] %v3903_v43  ;;  %v3912_v16 = vadd.f32 %v425_v12, %v3783_v22  ;;  %v427_v27 = vpop.f32.mrb[23].mxu0  ;;  %v3915_v0 = vadd.f32 %v538_v14, %v3775_v18  ;;  %v540_v31 = vpop.f32.mrb[23].mxu1 }
 0x147   :  { %4778 = vst [vmem:[#allocation43_spill] sm:$0xff] %v3906_v8  ;;  %4779 = vst [vmem:[#allocation44_spill] sm:$0xff] %v3909_v10  ;;  %v3918_v29 = vadd.f32 %v427_v27, %v3789_v25  ;;  %v3921_v43 = vadd.f32 %v540_v31, %v3781_v21 }
 0x148   :  { %4780 = vst [vmem:[#allocation45_spill] sm:$0xff] %v3912_v16  ;;  %4781 = vst [vmem:[#allocation46_spill] sm:$0xff] %v3915_v0 }
 0x149   :  { %4782 = vst [vmem:[#allocation47_spill] sm:$0xff] %v3918_v29  ;;  %4783 = vst [vmem:[#allocation48_spill] sm:$0xff] %v3921_v43 }
 0x14b   :  { %v431_v52 = vpop.f32.mrb[24].mxu0  ;;  %v544_v8 = vpop.f32.mrb[24].mxu1 }
 0x14c   :  { %v3924_v6 = vadd.f32 %v431_v52, %v3783_v22  ;;  %v433_v10 = vpop.f32.mrb[25].mxu0  ;;  %v3927_v12 = vadd.f32 %v544_v8, %v3775_v18  ;;  %v546_v16 = vpop.f32.mrb[25].mxu1 }
 0x14d   :  { %v3930_v14 = vadd.f32 %v433_v10, %v3789_v25  ;;  %v435_v0 = vpop.f32.mrb[26].mxu0  ;;  %v3933_v27 = vadd.f32 %v546_v16, %v3781_v21  ;;  %v548_v29 = vpop.f32.mrb[26].mxu1 }
 0x14e   :  { %4784 = vst [vmem:[#allocation49_spill] sm:$0xff] %v3924_v6  ;;  %4785 = vst [vmem:[#allocation50_spill] sm:$0xff] %v3927_v12  ;;  %v3936_v31 = vadd.f32 %v435_v0, %v3783_v22  ;;  %v437_v43 = vpop.f32.mrb[27].mxu0  ;;  %v3939_v52 = vadd.f32 %v548_v29, %v3775_v18  ;;  %v550_v6 = vpop.f32.mrb[27].mxu1 }
 0x14f   :  { %4786 = vst [vmem:[#allocation51_spill] sm:$0xff] %v3930_v14  ;;  %4787 = vst [vmem:[#allocation52_spill] sm:$0xff] %v3933_v27  ;;  %v3942_v8 = vadd.f32 %v437_v43, %v3789_v25  ;;  %v3945_v12 = vadd.f32 %v550_v6, %v3781_v21 }
 0x150   :  { %4788 = vst [vmem:[#allocation53_spill] sm:$0xff] %v3936_v31  ;;  %4789 = vst [vmem:[#allocation54_spill] sm:$0xff] %v3939_v52 }
 0x151   :  { %4790 = vst [vmem:[#allocation55_spill] sm:$0xff] %v3942_v8  ;;  %4791 = vst [vmem:[#allocation56_spill] sm:$0xff] %v3945_v12 }
 0x153   :  { %v441_v10 = vpop.f32.mrb[28].mxu0  ;;  %v554_v14 = vpop.f32.mrb[28].mxu1 }
 0x154   :  { %v3948_v16 = vadd.f32 %v441_v10, %v3783_v22  ;;  %v443_v27 = vpop.f32.mrb[29].mxu0  ;;  %v3951_v0 = vadd.f32 %v554_v14, %v3775_v18  ;;  %v556_v31 = vpop.f32.mrb[29].mxu1 }
 0x155   :  { %v3954_v29 = vadd.f32 %v443_v27, %v3789_v25  ;;  %v445_v52 = vpop.f32.mrb[30].mxu0  ;;  %v3957_v43 = vadd.f32 %v556_v31, %v3781_v21  ;;  %v558_v8 = vpop.f32.mrb[30].mxu1  ;;  %v372_v27 = vadd.f32 %v3777_v19, %v3783_v22  ;;  %v485_v31 = vadd.f32 %v3779_v20, %v3775_v18 }
 0x156   :  { %4792 = vst [vmem:[#allocation57_spill] sm:$0xff] %v3948_v16  ;;  %4793 = vst [vmem:[#allocation58_spill] sm:$0xff] %v3951_v0  ;;  %v3960_v6 = vadd.f32 %v445_v52, %v3783_v22  ;;  %v447_v12 = vpop.f32.mrb[31].mxu0  ;;  %v3963_v10 = vadd.f32 %v558_v8, %v3775_v18  ;;  %v560_v16 = vpop.f32.mrb[31].mxu1  ;;  %v374_v52 = vadd.f32 %v3785_v23, %v3789_v25 }
 0x157   :  { %4794 = vst [vmem:[#allocation59_spill] sm:$0xff] %v3954_v29  ;;  %4795 = vst [vmem:[#allocation60_spill] sm:$0xff] %v3957_v43  ;;  %v3966_v14 = vadd.f32 %v447_v12, %v3789_v25  ;;  %v3969_v0 = vadd.f32 %v560_v16, %v3781_v21  ;;  %v487_v8 = vadd.f32 %v3787_v24, %v3781_v21 }
 0x158   :  { %4796 = vst [vmem:[#allocation61_spill] sm:$0xff] %v3960_v6  ;;  %4797 = vst [vmem:[#allocation62_spill] sm:$0xff] %v3963_v10 }
 0x159   :  { %4798 = vst [vmem:[#allocation63_spill] sm:$0xff] %v3966_v14  ;;  %4799 = vst [vmem:[#allocation64_spill] sm:$0xff] %v3969_v0 }
 0x15b   :  { %v863_v10 = vpop.f32.mrb[32].mxu0  ;;  %v904_v6 = vpop.f32.mrb[32].mxu1 }
 0x15c   :  { %v911_v43 = vadd.f32 %v863_v10, %v372_v27  ;;  %v913_v12 = vadd.f32 %v904_v6, %v485_v31  ;;  %v865_v14 = vpop.f32.mrb[33].mxu0  ;;  %v906_v29 = vpop.f32.mrb[33].mxu1 }
 0x15d   :  { %v912_v16 = vadd.f32 %v865_v14, %v374_v52  ;;  %v914_v0 = vadd.f32 %v906_v29, %v487_v8  ;;  %v867_v26 = vpop.f32.mrb[34].mxu0  ;;  %v908_v17 = vpop.f32.mrb[34].mxu1  ;;  %v4800_v8 = vmov 0  }
 0x15e   :  { %v2931_v19 = vmul.f32 -1.442695, %v911_v43  ;;  %v868_v22 = vpop.f32.mrb[35].mxu0  ;;  %v909_v15 = vpop.f32.mrb[35].mxu1 }
 0x15f   :  { %v2932_v18 = vmul.f32 -1.442695, %v912_v16  ;;  %v2933_v20 = vmul.f32 -1.442695, %v914_v0 }
 0x160   :  { %3138 = vpow2.f32 %v2931_v19 }
 0x161   :  { %3140 = vpow2.f32 %v2932_v18 }
 0x162   :  { %3142 = vpow2.f32 %v2933_v20 }
 0x163   :  { %3144 = vtanh.f32 %v913_v12 }
 0x16a   :  { %v3139_v23 = vpop.eup %3138 }
 0x16b   :  { %v3141_v25 = vpop.eup %3140  ;;  %v918_v21 = vadd.f32 1.0, %v3139_v23 }
 0x16c   :  { %v924_v24 = vadd.f32 1.0, %v3141_v25  ;;  %v3143_v6 = vpop.eup %3142 }
 0x16d   :  { %3146 = vrcp.f32 %v918_v21  ;;  %v3145_v10 = vpop.eup %3144  ;;  %v931_v43 = vadd.f32 1.0, %v3143_v6 }
 0x16e   :  { %3148 = vrcp.f32 %v924_v24 }
 0x16f   :  { %3150 = vrcp.f32 %v931_v43 }
 0x177   :  { %v3147_v29 = vpop.eup %3146 }
 0x178   :  { %v3149_v26 = vpop.eup %3148  ;;  %v935_v17 = vmul.f32 %v3147_v29, %v3145_v10 }
 0x179   :  { %v934_v14 = vmul.f32 0.0, %v3149_v26  ;;  %v3151_v0 = vpop.eup %3150 }
 0x17b   :  { %v3979_v15 = vadd.f32 %v935_v17, %v934_v14 }
 0x17d   :  { %3152 = vtanh.f32 %v3979_v15 }
 0x187   :  { %v3153_v27 = vpop.eup %3152 }
 0x188   :  { %v938_v31 = vmul.f32 %v3153_v27, %v3151_v0 }
 0x18a   :  { %v946_v52 = vpack.c.bf16 %v938_v31, %v938_v31 }
 0x18c   :  { %980 = vmatmul.mubr.bf16.vlgmr.msra.gmra.mrb[36].mxu0 %v946_v52  ;;  %1021 = vmatmul.mubr.bf16.vlgmr.msra.gmra.mrb[36].mxu1 %v946_v52 }
 0x18d   :  { %1066 = vmatpush1.bf16.msra.mxu0 %v3607_v36  ;;  %1107 = vmatpush1.bf16.msra.mxu1 %v3613_v38 }
 0x18e   :  { %1067 = vmatprep.subr.bf16.mxu0 %v3610_v37  ;;  %1108 = vmatprep.subr.bf16.mxu1 %v3615_v39 }
 0x18f   :  { %1097 = vmatprep.mubr.bf16.mxu0 %v4800_v8  ;;  %1138 = vmatprep.mubr.bf16.mxu1 %v4800_v8 }
 0x191   :  { %1068 = vmatpush1.bf16.msra.mxu0 %v3619_v40  ;;  %1109 = vmatpush1.bf16.msra.mxu1 %v3626_v42 }
 0x192   :  { %1069 = vmatprep.subr.bf16.mxu0 %v3623_v41  ;;  %1110 = vmatprep.subr.bf16.mxu1 %v3638_v46 }
 0x195   :  { %1070 = vmatpush1.bf16.msra.mxu0 %v3633_v44  ;;  %1111 = vmatpush1.bf16.msra.mxu1 %v3641_v47 }
 0x196   :  { %1071 = vmatprep.subr.bf16.mxu0 %v3635_v45  ;;  %1112 = vmatprep.subr.bf16.mxu1 %v3643_v48 }
 0x199   :  { %1072 = vmatpush1.bf16.msra.mxu0 %v3648_v49  ;;  %1113 = vmatpush1.bf16.msra.mxu1 %v3655_v51 }
 0x19a   :  { %1073 = vmatprep.subr.bf16.mxu0 %v3651_v50  ;;  %1114 = vmatprep.subr.bf16.mxu1 %v3664_v54 }
 0x19d   :  { %1074 = vmatpush1.bf16.msra.mxu0 %v3661_v53  ;;  %1115 = vmatpush1.bf16.msra.mxu1 %v3670_v56 }
 0x19e   :  { %1075 = vmatprep.subr.bf16.mxu0 %v3667_v55  ;;  %1116 = vmatprep.subr.bf16.mxu1 %v3672_v57 }
 0x1a1   :  { %1076 = vmatpush1.bf16.msra.mxu0 %v3674_v58  ;;  %1117 = vmatpush1.bf16.msra.mxu1 %v3680_v60 }
 0x1a2   :  { %1077 = vmatprep.subr.bf16.mxu0 %v3678_v59  ;;  %1118 = vmatprep.subr.bf16.mxu1 %v3693_v63 }
 0x1a5   :  { %1078 = vmatpush1.bf16.msra.mxu0 %v3691_v62  ;;  %1119 = vmatpush1.bf16.msra.mxu1 %v3699_v2 }
 0x1a6   :  { %1079 = vmatprep.subr.bf16.mxu0 %v3697_v1  ;;  %1120 = vmatprep.subr.bf16.mxu1 %v3701_v3 }
 0x1a9   :  { %1080 = vmatpush1.bf16.msra.mxu0 %v3707_v4  ;;  %1121 = vmatpush1.bf16.msra.mxu1 %v3711_v5 }
 0x1aa   :  { %1183 = vmatprep.subr.bf16.mxu0 %v3600_v33  ;;  %1224 = vmatprep.subr.bf16.mxu1 %v3602_v34 }
 0x25f   :  { %v981_v12 = vpop.f32.mrb[36].mxu0  ;;  %v1022_v16 = vpop.f32.mrb[36].mxu1 }
 0x260   :  { %v1029_v19 = vadd.f32 %v981_v12, %v3792_v28  ;;  %v1031_v22 = vadd.f32 %v1022_v16, %v3795_v30  ;;  %v983_v18 = vpop.f32.mrb[37].mxu0  ;;  %v1024_v20 = vpop.f32.mrb[37].mxu1 }
 0x261   :  { %v1030_v23 = vadd.f32 %v983_v18, %v3798_v32  ;;  %v1032_v25 = vadd.f32 %v1024_v20, %v3801_v35  ;;  %v985_v21 = vpop.f32.mrb[38].mxu0  ;;  %v1026_v24 = vpop.f32.mrb[38].mxu1 }
 0x262   :  { %v2934_v6 = vmul.f32 -1.442695, %v1029_v19  ;;  %v986_v10 = vpop.f32.mrb[39].mxu0  ;;  %v1027_v29 = vpop.f32.mrb[39].mxu1 }
 0x263   :  { %v2935_v26 = vmul.f32 -1.442695, %v1030_v23  ;;  %v2936_v17 = vmul.f32 -1.442695, %v1032_v25 }
 0x264   :  { %3154 = vpow2.f32 %v2934_v6 }
 0x265   :  { %3156 = vpow2.f32 %v2935_v26 }
 0x266   :  { %3158 = vpow2.f32 %v2936_v17 }
 0x267   :  { %3160 = vtanh.f32 %v1031_v22 }
 0x26e   :  { %v3155_v43 = vpop.eup %3154 }
 0x26f   :  { %v3157_v14 = vpop.eup %3156  ;;  %v1036_v28 = vadd.f32 1.0, %v3155_v43 }
 0x270   :  { %v1042_v30 = vadd.f32 1.0, %v3157_v14  ;;  %v3159_v32 = vpop.eup %3158 }
 0x271   :  { %3162 = vrcp.f32 %v1036_v28  ;;  %v3161_v0 = vpop.eup %3160  ;;  %v1049_v52 = vadd.f32 1.0, %v3159_v32 }
 0x272   :  { %3164 = vrcp.f32 %v1042_v30 }
 0x273   :  { %3166 = vrcp.f32 %v1049_v52 }
 0x27b   :  { %v3163_v35 = vpop.eup %3162 }
 0x27c   :  { %v3165_v27 = vpop.eup %3164  ;;  %v1053_v31 = vmul.f32 %v3163_v35, %v3161_v0 }
 0x27d   :  { %v1052_v12 = vmul.f32 %v3165_v27, %v3979_v15  ;;  %v3167_v19 = vpop.eup %3166 }
 0x27f   :  { %v4021_v16 = vadd.f32 %v1053_v31, %v1052_v12 }
 0x281   :  { %3168 = vtanh.f32 %v4021_v16 }
 0x28b   :  { %v3169_v18 = vpop.eup %3168 }
 0x28c   :  { %v1056_v20 = vmul.f32 %v3169_v18, %v3167_v19 }
 0x28e   :  { %v1064_v22 = vpack.c.bf16 %v1056_v20, %v1056_v20  ;;  %v4066_v20 = vld [vmem:[#allocation8] ss:$16 sps:$4 sm:$0xff]  }
 0x290   :  { %1098 = vmatmul.mubr.bf16.vlgmr.msra.gmra.mrb[40].mxu0 %v1064_v22  ;;  %1139 = vmatmul.mubr.bf16.vlgmr.msra.gmra.mrb[40].mxu1 %v1064_v22  ;;  %v4070_v22 = vld [vmem:[#allocation8 + $0x24] ss:$16 sps:$4 sm:$0xff]  }
 0x291   :  { %1184 = vmatpush1.bf16.msra.mxu0 %v3607_v36  ;;  %1225 = vmatpush1.bf16.msra.mxu1 %v3613_v38 }
 0x292   :  { %1185 = vmatprep.subr.bf16.mxu0 %v3610_v37  ;;  %1226 = vmatprep.subr.bf16.mxu1 %v3615_v39 }
 0x293   :  { %1215 = vmatprep.mubr.bf16.mxu0 %v4800_v8  ;;  %1256 = vmatprep.mubr.bf16.mxu1 %v4800_v8 }
 0x295   :  { %1186 = vmatpush1.bf16.msra.mxu0 %v3619_v40  ;;  %1227 = vmatpush1.bf16.msra.mxu1 %v3626_v42 }
 0x296   :  { %1187 = vmatprep.subr.bf16.mxu0 %v3623_v41  ;;  %1228 = vmatprep.subr.bf16.mxu1 %v3638_v46 }
 0x299   :  { %1188 = vmatpush1.bf16.msra.mxu0 %v3633_v44  ;;  %1229 = vmatpush1.bf16.msra.mxu1 %v3641_v47 }
 0x29a   :  { %1189 = vmatprep.subr.bf16.mxu0 %v3635_v45  ;;  %1230 = vmatprep.subr.bf16.mxu1 %v3643_v48 }
 0x29d   :  { %1190 = vmatpush1.bf16.msra.mxu0 %v3648_v49  ;;  %1231 = vmatpush1.bf16.msra.mxu1 %v3655_v51 }
 0x29e   :  { %1191 = vmatprep.subr.bf16.mxu0 %v3651_v50  ;;  %1232 = vmatprep.subr.bf16.mxu1 %v3664_v54 }
 0x2a1   :  { %1192 = vmatpush1.bf16.msra.mxu0 %v3661_v53  ;;  %1233 = vmatpush1.bf16.msra.mxu1 %v3670_v56 }
 0x2a2   :  { %1193 = vmatprep.subr.bf16.mxu0 %v3667_v55  ;;  %1234 = vmatprep.subr.bf16.mxu1 %v3672_v57 }
 0x2a5   :  { %1194 = vmatpush1.bf16.msra.mxu0 %v3674_v58  ;;  %1235 = vmatpush1.bf16.msra.mxu1 %v3680_v60 }
 0x2a6   :  { %1195 = vmatprep.subr.bf16.mxu0 %v3678_v59  ;;  %1236 = vmatprep.subr.bf16.mxu1 %v3693_v63 }
 0x2a9   :  { %1196 = vmatpush1.bf16.msra.mxu0 %v3691_v62  ;;  %1237 = vmatpush1.bf16.msra.mxu1 %v3699_v2 }
 0x2aa   :  { %1197 = vmatprep.subr.bf16.mxu0 %v3697_v1  ;;  %1238 = vmatprep.subr.bf16.mxu1 %v3701_v3 }
 0x2ad   :  { %1198 = vmatpush1.bf16.msra.mxu0 %v3707_v4  ;;  %1239 = vmatpush1.bf16.msra.mxu1 %v3711_v5 }
 0x2ae   :  { %1301 = vmatprep.subr.bf16.mxu0 %v3600_v33  ;;  %1342 = vmatprep.subr.bf16.mxu1 %v3602_v34 }
 0x363   :  { %v1099_v36 = vpop.f32.mrb[40].mxu0  ;;  %v1140_v37 = vpop.f32.mrb[40].mxu1 }
 0x364   :  { %v1147_v15 = vadd.f32 %v1099_v36, %v3804_v61  ;;  %v1149_v23 = vadd.f32 %v1140_v37, %v3807_v7  ;;  %v1101_v25 = vpop.f32.mrb[41].mxu0  ;;  %v1142_v21 = vpop.f32.mrb[41].mxu1 }
 0x365   :  { %v1148_v24 = vadd.f32 %v1101_v25, %v3810_v9  ;;  %v1150_v6 = vadd.f32 %v1142_v21, %v3813_v11  ;;  %v1103_v10 = vpop.f32.mrb[42].mxu0  ;;  %v1144_v29 = vpop.f32.mrb[42].mxu1 }
 0x366   :  { %v2937_v26 = vmul.f32 -1.442695, %v1147_v15  ;;  %v1104_v17 = vpop.f32.mrb[43].mxu0  ;;  %v1145_v43 = vpop.f32.mrb[43].mxu1 }
 0x367   :  { %v2938_v33 = vmul.f32 -1.442695, %v1148_v24  ;;  %v2939_v34 = vmul.f32 -1.442695, %v1150_v6 }
 0x368   :  { %3170 = vpow2.f32 %v2937_v26 }
 0x369   :  { %3172 = vpow2.f32 %v2938_v33  ;;  %v4117_v33 = vld [vmem:[#allocation8 + $0x8] ss:$16 sps:$4 sm:$0xff]  }
 0x36a   :  { %3174 = vpow2.f32 %v2939_v34  ;;  %v4121_v34 = vld [vmem:[#allocation8 + $0x2c] ss:$16 sps:$4 sm:$0xff]  }
 0x36b   :  { %3176 = vtanh.f32 %v1149_v23 }
 0x372   :  { %v3171_v14 = vpop.eup %3170 }
 0x373   :  { %v3173_v28 = vpop.eup %3172  ;;  %v1154_v61 = vadd.f32 1.0, %v3171_v14  ;;  %v4126_v14 = vld [vmem:[#allocation8 + $0x20] ss:$16 sps:$4 sm:$0xff]  }
 0x374   :  { %v1160_v7 = vadd.f32 1.0, %v3173_v28  ;;  %v3175_v9 = vpop.eup %3174  ;;  %v4129_v28 = vld [vmem:[#allocation8 + $0x28] ss:$16 sps:$4 sm:$0xff]  }
 0x375   :  { %3178 = vrcp.f32 %v1154_v61  ;;  %v3177_v30 = vpop.eup %3176  ;;  %v1167_v35 = vadd.f32 1.0, %v3175_v9  ;;  %v4132_v61 = vld [vmem:[#allocation8 + $0x44] ss:$16 sps:$4 sm:$0xff]   ;;  %v4138_v9 = vld [vmem:[#allocation8 + $0x40] ss:$16 sps:$4 sm:$0xff]  }
 0x376   :  { %3180 = vrcp.f32 %v1160_v7  ;;  %v4135_v7 = vld [vmem:[#allocation8 + $0x4c] ss:$16 sps:$4 sm:$0xff]  }
 0x377   :  { %3182 = vrcp.f32 %v1167_v35  ;;  %v4153_v35 = vld [vmem:[#allocation8 + $0x68] ss:$16 sps:$4 sm:$0xff]  }
 0x37f   :  { %v3179_v11 = vpop.eup %3178 }
 0x380   :  { %v3181_v32 = vpop.eup %3180  ;;  %v1171_v0 = vmul.f32 %v3179_v11, %v3177_v30  ;;  %v4141_v30 = vld [vmem:[#allocation8 + $0x48] ss:$16 sps:$4 sm:$0xff]   ;;  %v4144_v11 = vld [vmem:[#allocation8 + $0x64] ss:$16 sps:$4 sm:$0xff]  }
 0x381   :  { %v1170_v27 = vmul.f32 %v3181_v32, %v4021_v16  ;;  %v3183_v52 = vpop.eup %3182  ;;  %v4147_v32 = vld [vmem:[#allocation8 + $0x6c] ss:$16 sps:$4 sm:$0xff]  }
 0x383   :  { %v4063_v31 = vadd.f32 %v1171_v0, %v1170_v27  ;;  %v4150_v0 = vld [vmem:[#allocation8 + $0x60] ss:$16 sps:$4 sm:$0xff]   ;;  %v4156_v27 = vld [vmem:[#allocation8 + $0x84] ss:$16 sps:$4 sm:$0xff]  }
 0x385   :  { %3184 = vtanh.f32 %v4063_v31 }
 0x38f   :  { %v3185_v12 = vpop.eup %3184 }
 0x390   :  { %v1174_v19 = vmul.f32 %v3185_v12, %v3183_v52  ;;  %v4162_v52 = vld [vmem:[#allocation8 + $0x80] ss:$16 sps:$4 sm:$0xff]   ;;  %v4165_v12 = vld [vmem:[#allocation8 + $0x88] ss:$16 sps:$4 sm:$0xff]  }
 0x392   :  { %v1182_v18 = vpack.c.bf16 %v1174_v19, %v1174_v19  ;;  %v4168_v19 = vld [vmem:[#allocation8 + $0xa4] ss:$16 sps:$4 sm:$0xff]  }
 0x394   :  { %1216 = vmatmul.mubr.bf16.vlgmr.msra.gmra.mrb[44].mxu0 %v1182_v18  ;;  %1257 = vmatmul.mubr.bf16.vlgmr.msra.gmra.mrb[44].mxu1 %v1182_v18  ;;  %v4171_v18 = vld [vmem:[#allocation8 + $0xac] ss:$16 sps:$4 sm:$0xff]  }
 0x395   :  { %1302 = vmatpush1.bf16.msra.mxu0 %v4066_v20  ;;  %1343 = vmatpush1.bf16.msra.mxu1 %v3613_v38  ;;  %v4102_v38 = vld [vmem:[#allocation8 + $0x4] ss:$16 sps:$4 sm:$0xff]  }
 0x396   :  { %1303 = vmatprep.subr.bf16.mxu0 %v4070_v22  ;;  %1344 = vmatprep.subr.bf16.mxu1 %v3615_v39  ;;  %v4105_v39 = vld [vmem:[#allocation8 + $0xc] ss:$16 sps:$4 sm:$0xff]  }
 0x397   :  { %1333 = vmatprep.mubr.bf16.mxu0 %v4800_v8  ;;  %1374 = vmatprep.mubr.bf16.mxu1 %v4800_v8 }
 0x399   :  { %1304 = vmatpush1.bf16.msra.mxu0 %v3619_v40  ;;  %1345 = vmatpush1.bf16.msra.mxu1 %v3626_v42 }
 0x39a   :  { %1305 = vmatprep.subr.bf16.mxu0 %v3623_v41  ;;  %1346 = vmatprep.subr.bf16.mxu1 %v3638_v46 }
 0x39d   :  { %1306 = vmatpush1.bf16.msra.mxu0 %v3633_v44  ;;  %1347 = vmatpush1.bf16.msra.mxu1 %v3641_v47  ;;  %v4801_v44 = vld [vmem:[#allocation14_spill] sm:$0xff] }
 0x39e   :  { %1307 = vmatprep.subr.bf16.mxu0 %v3635_v45  ;;  %1348 = vmatprep.subr.bf16.mxu1 %v3643_v48  ;;  %v4802_v48 = vld [vmem:[#allocation15_spill] sm:$0xff] }
 0x3a1   :  { %1308 = vmatpush1.bf16.msra.mxu0 %v3648_v49  ;;  %1349 = vmatpush1.bf16.msra.mxu1 %v3655_v51 }
 0x3a2   :  { %1309 = vmatprep.subr.bf16.mxu0 %v3651_v50  ;;  %1350 = vmatprep.subr.bf16.mxu1 %v3664_v54  ;;  %v4803_v50 = vld [vmem:[#allocation16_spill] sm:$0xff] }
 0x3a5   :  { %1310 = vmatpush1.bf16.msra.mxu0 %v3661_v53  ;;  %1351 = vmatpush1.bf16.msra.mxu1 %v3670_v56 }
 0x3a6   :  { %1311 = vmatprep.subr.bf16.mxu0 %v3667_v55  ;;  %1352 = vmatprep.subr.bf16.mxu1 %v3672_v57 }
 0x3a9   :  { %1312 = vmatpush1.bf16.msra.mxu0 %v3674_v58  ;;  %1353 = vmatpush1.bf16.msra.mxu1 %v3680_v60 }
 0x3aa   :  { %1313 = vmatprep.subr.bf16.mxu0 %v3678_v59  ;;  %1354 = vmatprep.subr.bf16.mxu1 %v3693_v63 }
 0x3ad   :  { %1314 = vmatpush1.bf16.msra.mxu0 %v3691_v62  ;;  %1355 = vmatpush1.bf16.msra.mxu1 %v3699_v2 }
 0x3ae   :  { %1315 = vmatprep.subr.bf16.mxu0 %v3697_v1  ;;  %1356 = vmatprep.subr.bf16.mxu1 %v3701_v3 }
 0x3b1   :  { %1316 = vmatpush1.bf16.msra.mxu0 %v3707_v4  ;;  %1357 = vmatpush1.bf16.msra.mxu1 %v3711_v5 }
 0x3b2   :  { %1419 = vmatprep.subr.bf16.mxu0 %v4102_v38  ;;  %1460 = vmatprep.subr.bf16.mxu1 %v4105_v39 }
 0x467   :  { %v1217_v40 = vpop.f32.mrb[44].mxu0  ;;  %v1258_v41 = vpop.f32.mrb[44].mxu1 }
 0x468   :  { %v1265_v42 = vadd.f32 %v1217_v40, %v3816_v13  ;;  %v1267_v45 = vadd.f32 %v1258_v41, %v4801_v44  ;;  %v1219_v46 = vpop.f32.mrb[45].mxu0  ;;  %v1260_v47 = vpop.f32.mrb[45].mxu1  ;;  %v4174_v40 = vld [vmem:[#allocation8 + $0xa0] ss:$16 sps:$4 sm:$0xff]   ;;  %v4177_v41 = vld [vmem:[#allocation8 + $0xa8] ss:$16 sps:$4 sm:$0xff]  }
 0x469   :  { %v1266_v49 = vadd.f32 %v1219_v46, %v4802_v48  ;;  %v1268_v51 = vadd.f32 %v1260_v47, %v4803_v50  ;;  %v1221_v53 = vpop.f32.mrb[46].mxu0  ;;  %v1262_v54 = vpop.f32.mrb[46].mxu1  ;;  %v4804_v46 = vld [vmem:[#allocation17_spill] sm:$0xff]  ;;  %v4805_v47 = vld [vmem:[#allocation18_spill] sm:$0xff]  ;;  %v4807_v50 = vld [vmem:[#allocation20_spill] sm:$0xff] }
 0x46a   :  { %v2940_v55 = vmul.f32 -1.442695, %v1265_v42  ;;  %v1222_v56 = vpop.f32.mrb[47].mxu0  ;;  %v1263_v57 = vpop.f32.mrb[47].mxu1  ;;  %v4180_v42 = vld [vmem:[#allocation8 + $0xc4] ss:$16 sps:$4 sm:$0xff]  }
 0x46b   :  { %v2941_v58 = vmul.f32 -1.442695, %v1266_v49  ;;  %v2942_v59 = vmul.f32 -1.442695, %v1268_v51  ;;  %v4806_v49 = vld [vmem:[#allocation19_spill] sm:$0xff] }
 0x46c   :  { %3186 = vpow2.f32 %v2940_v55 }
 0x46d   :  { %3188 = vpow2.f32 %v2941_v58 }
 0x46e   :  { %3190 = vpow2.f32 %v2942_v59 }
 0x46f   :  { %3192 = vtanh.f32 %v1267_v45 }
 0x476   :  { %v3187_v60 = vpop.eup %3186 }
 0x477   :  { %v3189_v16 = vpop.eup %3188  ;;  %v1272_v13 = vadd.f32 1.0, %v3187_v60 }
 0x478   :  { %v1278_v36 = vadd.f32 1.0, %v3189_v16  ;;  %v3191_v37 = vpop.eup %3190 }
 0x479   :  { %3194 = vrcp.f32 %v1272_v13  ;;  %v3193_v15 = vpop.eup %3192  ;;  %v1285_v24 = vadd.f32 1.0, %v3191_v37 }
 0x47a   :  { %3196 = vrcp.f32 %v1278_v36 }
 0x47b   :  { %3198 = vrcp.f32 %v1285_v24 }
 0x483   :  { %v3195_v23 = vpop.eup %3194 }
 0x484   :  { %v3197_v25 = vpop.eup %3196  ;;  %v1289_v21 = vmul.f32 %v3195_v23, %v3193_v15 }
 0x485   :  { %v1288_v6 = vmul.f32 %v3197_v25, %v4063_v31  ;;  %v3199_v29 = vpop.eup %3198  ;;  %v4159_v31 = vld [vmem:[#allocation8 + $0x8c] ss:$16 sps:$4 sm:$0xff]  }
 0x487   :  { %v4113_v10 = vadd.f32 %v1289_v21, %v1288_v6 }
 0x489   :  { %3200 = vtanh.f32 %v4113_v10 }
 0x493   :  { %v3201_v26 = vpop.eup %3200 }
 0x494   :  { %v1292_v17 = vmul.f32 %v3201_v26, %v3199_v29 }
 0x496   :  { %v1300_v43 = vpack.c.bf16 %v1292_v17, %v1292_v17  ;;  %v4228_v17 = vld [vmem:[#allocation8 + $0xc0] ss:$16 sps:$4 sm:$0xff]  }
 0x498   :  { %1334 = vmatmul.mubr.bf16.vlgmr.msra.gmra.mrb[48].mxu0 %v1300_v43  ;;  %1375 = vmatmul.mubr.bf16.vlgmr.msra.gmra.mrb[48].mxu1 %v1300_v43  ;;  %v4231_v43 = vld [vmem:[#allocation8 + $0xc8] ss:$16 sps:$4 sm:$0xff]  }
 0x499   :  { %1420 = vmatpush1.bf16.msra.mxu0 %v4066_v20  ;;  %1461 = vmatpush1.bf16.msra.mxu1 %v4117_v33 }
 0x49a   :  { %1421 = vmatprep.subr.bf16.mxu0 %v4070_v22  ;;  %1462 = vmatprep.subr.bf16.mxu1 %v4121_v34 }
 0x49b   :  { %1451 = vmatprep.mubr.bf16.mxu0 %v4800_v8  ;;  %1492 = vmatprep.mubr.bf16.mxu1 %v4800_v8 }
 0x49d   :  { %1422 = vmatpush1.bf16.msra.mxu0 %v4126_v14  ;;  %1463 = vmatpush1.bf16.msra.mxu1 %v4129_v28 }
 0x49e   :  { %1423 = vmatprep.subr.bf16.mxu0 %v4132_v61  ;;  %1464 = vmatprep.subr.bf16.mxu1 %v4135_v7 }
 0x4a1   :  { %1424 = vmatpush1.bf16.msra.mxu0 %v4138_v9  ;;  %1465 = vmatpush1.bf16.msra.mxu1 %v4141_v30 }
 0x4a2   :  { %1425 = vmatprep.subr.bf16.mxu0 %v4144_v11  ;;  %1466 = vmatprep.subr.bf16.mxu1 %v4147_v32 }
 0x4a5   :  { %1426 = vmatpush1.bf16.msra.mxu0 %v4150_v0  ;;  %1467 = vmatpush1.bf16.msra.mxu1 %v4153_v35 }
 0x4a6   :  { %1427 = vmatprep.subr.bf16.mxu0 %v4156_v27  ;;  %1468 = vmatprep.subr.bf16.mxu1 %v4159_v31 }
 0x4a9   :  { %1428 = vmatpush1.bf16.msra.mxu0 %v4162_v52  ;;  %1469 = vmatpush1.bf16.msra.mxu1 %v4165_v12 }
 0x4aa   :  { %1429 = vmatprep.subr.bf16.mxu0 %v4168_v19  ;;  %1470 = vmatprep.subr.bf16.mxu1 %v4171_v18 }
 0x4ad   :  { %1430 = vmatpush1.bf16.msra.mxu0 %v4174_v40  ;;  %1471 = vmatpush1.bf16.msra.mxu1 %v4177_v41 }
 0x4ae   :  { %1431 = vmatprep.subr.bf16.mxu0 %v4180_v42  ;;  %1472 = vmatprep.subr.bf16.mxu1 %v3693_v63 }
 0x4b1   :  { %1432 = vmatpush1.bf16.msra.mxu0 %v3691_v62  ;;  %1473 = vmatpush1.bf16.msra.mxu1 %v3699_v2 }
 0x4b2   :  { %1433 = vmatprep.subr.bf16.mxu0 %v3697_v1  ;;  %1474 = vmatprep.subr.bf16.mxu1 %v3701_v3 }
 0x4b5   :  { %1434 = vmatpush1.bf16.msra.mxu0 %v3707_v4  ;;  %1475 = vmatpush1.bf16.msra.mxu1 %v3711_v5 }
 0x4b6   :  { %1537 = vmatprep.subr.bf16.mxu0 %v4102_v38  ;;  %1578 = vmatprep.subr.bf16.mxu1 %v4105_v39 }
 0x56b   :  { %v1335_v44 = vpop.f32.mrb[48].mxu0  ;;  %v1376_v45 = vpop.f32.mrb[48].mxu1 }
 0x56c   :  { %v1383_v63 = vadd.f32 %v1335_v44, %v4804_v46  ;;  %v1385_v62 = vadd.f32 %v1376_v45, %v4805_v47  ;;  %v1337_v48 = vpop.f32.mrb[49].mxu0  ;;  %v1378_v2 = vpop.f32.mrb[49].mxu1  ;;  %v4234_v44 = vld [vmem:[#allocation8 + $0xe4] ss:$16 sps:$4 sm:$0xff]   ;;  %v4237_v45 = vld [vmem:[#allocation8 + $0xec] ss:$16 sps:$4 sm:$0xff]  }
 0x56d   :  { %v1384_v1 = vadd.f32 %v1337_v48, %v4806_v49  ;;  %v1386_v3 = vadd.f32 %v1378_v2, %v4807_v50  ;;  %v1339_v51 = vpop.f32.mrb[50].mxu0  ;;  %v1380_v4 = vpop.f32.mrb[50].mxu1  ;;  %v4240_v46 = vld [vmem:[#allocation8 + $0xe0] ss:$16 sps:$4 sm:$0xff]   ;;  %v4809_v49 = vld [vmem:[#allocation22_spill] sm:$0xff] }
 0x56e   :  { %v2943_v53 = vmul.f32 -1.442695, %v1383_v63  ;;  %v1340_v5 = vpop.f32.mrb[51].mxu0  ;;  %v1381_v54 = vpop.f32.mrb[51].mxu1  ;;  %v4243_v63 = vld [vmem:[#allocation8 + $0xe8] ss:$16 sps:$4 sm:$0xff]  }
 0x56f   :  { %v2944_v55 = vmul.f32 -1.442695, %v1384_v1  ;;  %v2945_v56 = vmul.f32 -1.442695, %v1386_v3  ;;  %v4808_v48 = vld [vmem:[#allocation21_spill] sm:$0xff]  ;;  %v4810_v51 = vld [vmem:[#allocation23_spill] sm:$0xff] }
 0x570   :  { %3202 = vpow2.f32 %v2943_v53  ;;  %v4811_v53 = vld [vmem:[#allocation24_spill] sm:$0xff] }
 0x571   :  { %3204 = vpow2.f32 %v2944_v55 }
 0x572   :  { %3206 = vpow2.f32 %v2945_v56 }
 0x573   :  { %3208 = vtanh.f32 %v1385_v62 }
 0x57a   :  { %v3203_v57 = vpop.eup %3202 }
 0x57b   :  { %v3205_v58 = vpop.eup %3204  ;;  %v1390_v59 = vadd.f32 1.0, %v3203_v57 }
 0x57c   :  { %v1396_v60 = vadd.f32 1.0, %v3205_v58  ;;  %v3207_v16 = vpop.eup %3206 }
 0x57d   :  { %3210 = vrcp.f32 %v1390_v59  ;;  %v3209_v13 = vpop.eup %3208  ;;  %v1403_v23 = vadd.f32 1.0, %v3207_v16 }
 0x57e   :  { %3212 = vrcp.f32 %v1396_v60 }
 0x57f   :  { %3214 = vrcp.f32 %v1403_v23 }
 0x587   :  { %v3211_v36 = vpop.eup %3210 }
 0x588   :  { %v3213_v37 = vpop.eup %3212  ;;  %v1407_v15 = vmul.f32 %v3211_v36, %v3209_v13 }
 0x589   :  { %v1406_v25 = vmul.f32 %v3213_v37, %v4113_v10  ;;  %v3215_v24 = vpop.eup %3214  ;;  %v4225_v10 = vld [vmem:[#allocation8 + $0xcc] ss:$16 sps:$4 sm:$0xff]  }
 0x58b   :  { %v4197_v21 = vadd.f32 %v1407_v15, %v1406_v25 }
 0x58d   :  { %3216 = vtanh.f32 %v4197_v21 }
 0x597   :  { %v3217_v6 = vpop.eup %3216 }
 0x598   :  { %v1410_v29 = vmul.f32 %v3217_v6, %v3215_v24 }
 0x59a   :  { %v1418_v26 = vpack.c.bf16 %v1410_v29, %v1410_v29 }
 0x59c   :  { %1452 = vmatmul.mubr.bf16.vlgmr.msra.gmra.mrb[52].mxu0 %v1418_v26  ;;  %1493 = vmatmul.mubr.bf16.vlgmr.msra.gmra.mrb[52].mxu1 %v1418_v26 }
 0x59d   :  { %1538 = vmatpush1.bf16.msra.mxu0 %v4066_v20  ;;  %1579 = vmatpush1.bf16.msra.mxu1 %v4117_v33 }
 0x59e   :  { %1539 = vmatprep.subr.bf16.mxu0 %v4070_v22  ;;  %1580 = vmatprep.subr.bf16.mxu1 %v4121_v34 }
 0x59f   :  { %1569 = vmatprep.mubr.bf16.mxu0 %v4800_v8  ;;  %1610 = vmatprep.mubr.bf16.mxu1 %v4800_v8 }
 0x5a1   :  { %1540 = vmatpush1.bf16.msra.mxu0 %v4126_v14  ;;  %1581 = vmatpush1.bf16.msra.mxu1 %v4129_v28 }
 0x5a2   :  { %1541 = vmatprep.subr.bf16.mxu0 %v4132_v61  ;;  %1582 = vmatprep.subr.bf16.mxu1 %v4135_v7 }
 0x5a5   :  { %1542 = vmatpush1.bf16.msra.mxu0 %v4138_v9  ;;  %1583 = vmatpush1.bf16.msra.mxu1 %v4141_v30 }
 0x5a6   :  { %1543 = vmatprep.subr.bf16.mxu0 %v4144_v11  ;;  %1584 = vmatprep.subr.bf16.mxu1 %v4147_v32 }
 0x5a9   :  { %1544 = vmatpush1.bf16.msra.mxu0 %v4150_v0  ;;  %1585 = vmatpush1.bf16.msra.mxu1 %v4153_v35 }
 0x5aa   :  { %1545 = vmatprep.subr.bf16.mxu0 %v4156_v27  ;;  %1586 = vmatprep.subr.bf16.mxu1 %v4159_v31 }
 0x5ad   :  { %1546 = vmatpush1.bf16.msra.mxu0 %v4162_v52  ;;  %1587 = vmatpush1.bf16.msra.mxu1 %v4165_v12 }
 0x5ae   :  { %1547 = vmatprep.subr.bf16.mxu0 %v4168_v19  ;;  %1588 = vmatprep.subr.bf16.mxu1 %v4171_v18 }
 0x5b1   :  { %1548 = vmatpush1.bf16.msra.mxu0 %v4174_v40  ;;  %1589 = vmatpush1.bf16.msra.mxu1 %v4177_v41 }
 0x5b2   :  { %1549 = vmatprep.subr.bf16.mxu0 %v4180_v42  ;;  %1590 = vmatprep.subr.bf16.mxu1 %v4225_v10 }
 0x5b5   :  { %1550 = vmatpush1.bf16.msra.mxu0 %v4228_v17  ;;  %1591 = vmatpush1.bf16.msra.mxu1 %v4231_v43 }
 0x5b6   :  { %1551 = vmatprep.subr.bf16.mxu0 %v4234_v44  ;;  %1592 = vmatprep.subr.bf16.mxu1 %v4237_v45 }
 0x5b9   :  { %1552 = vmatpush1.bf16.msra.mxu0 %v4240_v46  ;;  %1593 = vmatpush1.bf16.msra.mxu1 %v4243_v63 }
 0x5ba   :  { %1655 = vmatprep.subr.bf16.mxu0 %v4102_v38  ;;  %1696 = vmatprep.subr.bf16.mxu1 %v4105_v39 }
 0x66f   :  { %v1453_v47 = vpop.f32.mrb[52].mxu0  ;;  %v1494_v62 = vpop.f32.mrb[52].mxu1 }
 0x670   :  { %v1501_v2 = vadd.f32 %v1453_v47, %v4808_v48  ;;  %v1503_v1 = vadd.f32 %v1494_v62, %v4809_v49  ;;  %v1455_v50 = vpop.f32.mrb[53].mxu0  ;;  %v1496_v3 = vpop.f32.mrb[53].mxu1 }
 0x671   :  { %v1502_v4 = vadd.f32 %v1455_v50, %v4810_v51  ;;  %v1504_v5 = vadd.f32 %v1496_v3, %v4811_v53  ;;  %v1457_v54 = vpop.f32.mrb[54].mxu0  ;;  %v1498_v55 = vpop.f32.mrb[54].mxu1  ;;  %v4812_v50 = vld [vmem:[#allocation25_spill] sm:$0xff]  ;;  %v4813_v51 = vld [vmem:[#allocation26_spill] sm:$0xff] }
 0x672   :  { %v2946_v56 = vmul.f32 -1.442695, %v1501_v2  ;;  %v1458_v57 = vpop.f32.mrb[55].mxu0  ;;  %v1499_v58 = vpop.f32.mrb[55].mxu1  ;;  %v4814_v54 = vld [vmem:[#allocation27_spill] sm:$0xff] }
 0x673   :  { %v2947_v59 = vmul.f32 -1.442695, %v1502_v4  ;;  %v2948_v60 = vmul.f32 -1.442695, %v1504_v5 }
 0x674   :  { %3218 = vpow2.f32 %v2946_v56  ;;  %v4815_v56 = vld [vmem:[#allocation28_spill] sm:$0xff] }
 0x675   :  { %3220 = vpow2.f32 %v2947_v59 }
 0x676   :  { %3222 = vpow2.f32 %v2948_v60 }
 0x677   :  { %3224 = vtanh.f32 %v1503_v1 }
 0x67e   :  { %v3219_v16 = vpop.eup %3218 }
 0x67f   :  { %v3221_v13 = vpop.eup %3220  ;;  %v1508_v36 = vadd.f32 1.0, %v3219_v16 }
 0x680   :  { %v1514_v37 = vadd.f32 1.0, %v3221_v13  ;;  %v3223_v15 = vpop.eup %3222 }
 0x681   :  { %3226 = vrcp.f32 %v1508_v36  ;;  %v3225_v23 = vpop.eup %3224  ;;  %v1521_v29 = vadd.f32 1.0, %v3223_v15 }
 0x682   :  { %3228 = vrcp.f32 %v1514_v37 }
 0x683   :  { %3230 = vrcp.f32 %v1521_v29 }
 0x68b   :  { %v3227_v25 = vpop.eup %3226 }
 0x68c   :  { %v3229_v24 = vpop.eup %3228  ;;  %v1525_v6 = vmul.f32 %v3227_v25, %v3225_v23 }
 0x68d   :  { %v1524_v26 = vmul.f32 %v3229_v24, %v4197_v21  ;;  %v3231_v62 = vpop.eup %3230 }
 0x68f   :  { %v4253_v47 = vadd.f32 %v1525_v6, %v1524_v26 }
 0x691   :  { %3232 = vtanh.f32 %v4253_v47 }
 0x69b   :  { %v3233_v48 = vpop.eup %3232 }
 0x69c   :  { %v1528_v2 = vmul.f32 %v3233_v48, %v3231_v62 }
 0x69e   :  { %v1536_v49 = vpack.c.bf16 %v1528_v2, %v1528_v2 }
 0x6a0   :  { %1570 = vmatmul.mubr.bf16.vlgmr.msra.gmra.mrb[56].mxu0 %v1536_v49  ;;  %1611 = vmatmul.mubr.bf16.vlgmr.msra.gmra.mrb[56].mxu1 %v1536_v49 }
 0x6a1   :  { %1656 = vmatpush1.bf16.msra.mxu0 %v4066_v20  ;;  %1697 = vmatpush1.bf16.msra.mxu1 %v4117_v33 }
 0x6a2   :  { %1657 = vmatprep.subr.bf16.mxu0 %v4070_v22  ;;  %1698 = vmatprep.subr.bf16.mxu1 %v4121_v34 }
 0x6a3   :  { %1687 = vmatprep.mubr.bf16.mxu0 %v4800_v8  ;;  %1728 = vmatprep.mubr.bf16.mxu1 %v4800_v8 }
 0x6a5   :  { %1658 = vmatpush1.bf16.msra.mxu0 %v4126_v14  ;;  %1699 = vmatpush1.bf16.msra.mxu1 %v4129_v28 }
 0x6a6   :  { %1659 = vmatprep.subr.bf16.mxu0 %v4132_v61  ;;  %1700 = vmatprep.subr.bf16.mxu1 %v4135_v7 }
 0x6a9   :  { %1660 = vmatpush1.bf16.msra.mxu0 %v4138_v9  ;;  %1701 = vmatpush1.bf16.msra.mxu1 %v4141_v30 }
 0x6aa   :  { %1661 = vmatprep.subr.bf16.mxu0 %v4144_v11  ;;  %1702 = vmatprep.subr.bf16.mxu1 %v4147_v32 }
 0x6ad   :  { %1662 = vmatpush1.bf16.msra.mxu0 %v4150_v0  ;;  %1703 = vmatpush1.bf16.msra.mxu1 %v4153_v35 }
 0x6ae   :  { %1663 = vmatprep.subr.bf16.mxu0 %v4156_v27  ;;  %1704 = vmatprep.subr.bf16.mxu1 %v4159_v31 }
 0x6b1   :  { %1664 = vmatpush1.bf16.msra.mxu0 %v4162_v52  ;;  %1705 = vmatpush1.bf16.msra.mxu1 %v4165_v12 }
 0x6b2   :  { %1665 = vmatprep.subr.bf16.mxu0 %v4168_v19  ;;  %1706 = vmatprep.subr.bf16.mxu1 %v4171_v18 }
 0x6b5   :  { %1666 = vmatpush1.bf16.msra.mxu0 %v4174_v40  ;;  %1707 = vmatpush1.bf16.msra.mxu1 %v4177_v41 }
 0x6b6   :  { %1667 = vmatprep.subr.bf16.mxu0 %v4180_v42  ;;  %1708 = vmatprep.subr.bf16.mxu1 %v4225_v10 }
 0x6b9   :  { %1668 = vmatpush1.bf16.msra.mxu0 %v4228_v17  ;;  %1709 = vmatpush1.bf16.msra.mxu1 %v4231_v43 }
 0x6ba   :  { %1669 = vmatprep.subr.bf16.mxu0 %v4234_v44  ;;  %1710 = vmatprep.subr.bf16.mxu1 %v4237_v45 }
 0x6bd   :  { %1670 = vmatpush1.bf16.msra.mxu0 %v4240_v46  ;;  %1711 = vmatpush1.bf16.msra.mxu1 %v4243_v63 }
 0x6be   :  { %1773 = vmatprep.subr.bf16.mxu0 %v4102_v38  ;;  %1814 = vmatprep.subr.bf16.mxu1 %v4105_v39 }
 0x773   :  { %v1571_v21 = vpop.f32.mrb[56].mxu0  ;;  %v1612_v1 = vpop.f32.mrb[56].mxu1 }
 0x774   :  { %v1619_v3 = vadd.f32 %v1571_v21, %v4812_v50  ;;  %v1621_v4 = vadd.f32 %v1612_v1, %v4813_v51  ;;  %v1573_v53 = vpop.f32.mrb[57].mxu0  ;;  %v1614_v5 = vpop.f32.mrb[57].mxu1 }
 0x775   :  { %v1620_v55 = vadd.f32 %v1573_v53, %v4814_v54  ;;  %v1622_v57 = vadd.f32 %v1614_v5, %v4815_v56  ;;  %v1575_v58 = vpop.f32.mrb[58].mxu0  ;;  %v1616_v59 = vpop.f32.mrb[58].mxu1  ;;  %v4816_v53 = vld [vmem:[#allocation29_spill] sm:$0xff]  ;;  %v4817_v54 = vld [vmem:[#allocation30_spill] sm:$0xff] }
 0x776   :  { %v2949_v60 = vmul.f32 -1.442695, %v1619_v3  ;;  %v1576_v16 = vpop.f32.mrb[59].mxu0  ;;  %v1617_v13 = vpop.f32.mrb[59].mxu1  ;;  %v4818_v58 = vld [vmem:[#allocation31_spill] sm:$0xff] }
 0x777   :  { %v2950_v36 = vmul.f32 -1.442695, %v1620_v55  ;;  %v2951_v37 = vmul.f32 -1.442695, %v1622_v57 }
 0x778   :  { %3234 = vpow2.f32 %v2949_v60  ;;  %v4819_v60 = vld [vmem:[#allocation32_spill] sm:$0xff] }
 0x779   :  { %3236 = vpow2.f32 %v2950_v36 }
 0x77a   :  { %3238 = vpow2.f32 %v2951_v37 }
 0x77b   :  { %3240 = vtanh.f32 %v1621_v4 }
 0x782   :  { %v3235_v15 = vpop.eup %3234 }
 0x783   :  { %v3237_v23 = vpop.eup %3236  ;;  %v1626_v25 = vadd.f32 1.0, %v3235_v15 }
 0x784   :  { %v1632_v24 = vadd.f32 1.0, %v3237_v23  ;;  %v3239_v6 = vpop.eup %3238 }
 0x785   :  { %3242 = vrcp.f32 %v1626_v25  ;;  %v3241_v29 = vpop.eup %3240  ;;  %v1639_v2 = vadd.f32 1.0, %v3239_v6 }
 0x786   :  { %3244 = vrcp.f32 %v1632_v24 }
 0x787   :  { %3246 = vrcp.f32 %v1639_v2 }
 0x78f   :  { %v3243_v26 = vpop.eup %3242 }
 0x790   :  { %v3245_v62 = vpop.eup %3244  ;;  %v1643_v48 = vmul.f32 %v3243_v26, %v3241_v29 }
 0x791   :  { %v1642_v49 = vmul.f32 %v3245_v62, %v4253_v47  ;;  %v3247_v1 = vpop.eup %3246 }
 0x793   :  { %v4295_v21 = vadd.f32 %v1643_v48, %v1642_v49 }
 0x795   :  { %3248 = vtanh.f32 %v4295_v21 }
 0x79f   :  { %v3249_v50 = vpop.eup %3248 }
 0x7a0   :  { %v1646_v3 = vmul.f32 %v3249_v50, %v3247_v1 }
 0x7a2   :  { %v1654_v51 = vpack.c.bf16 %v1646_v3, %v1646_v3 }
 0x7a4   :  { %1688 = vmatmul.mubr.bf16.vlgmr.msra.gmra.mrb[60].mxu0 %v1654_v51  ;;  %1729 = vmatmul.mubr.bf16.vlgmr.msra.gmra.mrb[60].mxu1 %v1654_v51 }
 0x7a5   :  { %1774 = vmatpush1.bf16.msra.mxu0 %v4066_v20  ;;  %1815 = vmatpush1.bf16.msra.mxu1 %v4117_v33 }
 0x7a6   :  { %1775 = vmatprep.subr.bf16.mxu0 %v4070_v22  ;;  %1816 = vmatprep.subr.bf16.mxu1 %v4121_v34 }
 0x7a7   :  { %1805 = vmatprep.mubr.bf16.mxu0 %v4800_v8  ;;  %1846 = vmatprep.mubr.bf16.mxu1 %v4800_v8 }
 0x7a9   :  { %1776 = vmatpush1.bf16.msra.mxu0 %v4126_v14  ;;  %1817 = vmatpush1.bf16.msra.mxu1 %v4129_v28 }
 0x7aa   :  { %1777 = vmatprep.subr.bf16.mxu0 %v4132_v61  ;;  %1818 = vmatprep.subr.bf16.mxu1 %v4135_v7 }
 0x7ad   :  { %1778 = vmatpush1.bf16.msra.mxu0 %v4138_v9  ;;  %1819 = vmatpush1.bf16.msra.mxu1 %v4141_v30 }
 0x7ae   :  { %1779 = vmatprep.subr.bf16.mxu0 %v4144_v11  ;;  %1820 = vmatprep.subr.bf16.mxu1 %v4147_v32 }
 0x7b1   :  { %1780 = vmatpush1.bf16.msra.mxu0 %v4150_v0  ;;  %1821 = vmatpush1.bf16.msra.mxu1 %v4153_v35 }
 0x7b2   :  { %1781 = vmatprep.subr.bf16.mxu0 %v4156_v27  ;;  %1822 = vmatprep.subr.bf16.mxu1 %v4159_v31 }
 0x7b5   :  { %1782 = vmatpush1.bf16.msra.mxu0 %v4162_v52  ;;  %1823 = vmatpush1.bf16.msra.mxu1 %v4165_v12 }
 0x7b6   :  { %1783 = vmatprep.subr.bf16.mxu0 %v4168_v19  ;;  %1824 = vmatprep.subr.bf16.mxu1 %v4171_v18 }
 0x7b9   :  { %1784 = vmatpush1.bf16.msra.mxu0 %v4174_v40  ;;  %1825 = vmatpush1.bf16.msra.mxu1 %v4177_v41 }
 0x7ba   :  { %1785 = vmatprep.subr.bf16.mxu0 %v4180_v42  ;;  %1826 = vmatprep.subr.bf16.mxu1 %v4225_v10 }
 0x7bd   :  { %1786 = vmatpush1.bf16.msra.mxu0 %v4228_v17  ;;  %1827 = vmatpush1.bf16.msra.mxu1 %v4231_v43 }
 0x7be   :  { %1787 = vmatprep.subr.bf16.mxu0 %v4234_v44  ;;  %1828 = vmatprep.subr.bf16.mxu1 %v4237_v45 }
 0x7c1   :  { %1788 = vmatpush1.bf16.msra.mxu0 %v4240_v46  ;;  %1829 = vmatpush1.bf16.msra.mxu1 %v4243_v63 }
 0x7c2   :  { %1891 = vmatprep.subr.bf16.mxu0 %v4102_v38  ;;  %1932 = vmatprep.subr.bf16.mxu1 %v4105_v39 }
 0x877   :  { %v1689_v47 = vpop.f32.mrb[60].mxu0  ;;  %v1730_v4 = vpop.f32.mrb[60].mxu1 }
 0x878   :  { %v1737_v5 = vadd.f32 %v1689_v47, %v4816_v53  ;;  %v1739_v55 = vadd.f32 %v1730_v4, %v4817_v54  ;;  %v1691_v56 = vpop.f32.mrb[61].mxu0  ;;  %v1732_v57 = vpop.f32.mrb[61].mxu1 }
 0x879   :  { %v1738_v59 = vadd.f32 %v1691_v56, %v4818_v58  ;;  %v1740_v16 = vadd.f32 %v1732_v57, %v4819_v60  ;;  %v1693_v13 = vpop.f32.mrb[62].mxu0  ;;  %v1734_v36 = vpop.f32.mrb[62].mxu1  ;;  %v4820_v56 = vld [vmem:[#allocation33_spill] sm:$0xff]  ;;  %v4821_v58 = vld [vmem:[#allocation34_spill] sm:$0xff] }
 0x87a   :  { %v2952_v37 = vmul.f32 -1.442695, %v1737_v5  ;;  %v1694_v15 = vpop.f32.mrb[63].mxu0  ;;  %v1735_v23 = vpop.f32.mrb[63].mxu1  ;;  %v4822_v13 = vld [vmem:[#allocation35_spill] sm:$0xff] }
 0x87b   :  { %v2953_v25 = vmul.f32 -1.442695, %v1738_v59  ;;  %v2954_v24 = vmul.f32 -1.442695, %v1740_v16 }
 0x87c   :  { %3250 = vpow2.f32 %v2952_v37  ;;  %v4823_v37 = vld [vmem:[#allocation36_spill] sm:$0xff] }
 0x87d   :  { %3252 = vpow2.f32 %v2953_v25 }
 0x87e   :  { %3254 = vpow2.f32 %v2954_v24 }
 0x87f   :  { %3256 = vtanh.f32 %v1739_v55 }
 0x886   :  { %v3251_v6 = vpop.eup %3250 }
 0x887   :  { %v3253_v29 = vpop.eup %3252  ;;  %v1744_v26 = vadd.f32 1.0, %v3251_v6 }
 0x888   :  { %v1750_v62 = vadd.f32 1.0, %v3253_v29  ;;  %v3255_v48 = vpop.eup %3254 }
 0x889   :  { %3258 = vrcp.f32 %v1744_v26  ;;  %v3257_v2 = vpop.eup %3256  ;;  %v1757_v3 = vadd.f32 1.0, %v3255_v48 }
 0x88a   :  { %3260 = vrcp.f32 %v1750_v62 }
 0x88b   :  { %3262 = vrcp.f32 %v1757_v3 }
 0x893   :  { %v3259_v49 = vpop.eup %3258 }
 0x894   :  { %v3261_v1 = vpop.eup %3260  ;;  %v1761_v50 = vmul.f32 %v3259_v49, %v3257_v2 }
 0x895   :  { %v1760_v51 = vmul.f32 %v3261_v1, %v4295_v21  ;;  %v3263_v4 = vpop.eup %3262 }
 0x897   :  { %v4337_v47 = vadd.f32 %v1761_v50, %v1760_v51 }
 0x899   :  { %3264 = vtanh.f32 %v4337_v47 }
 0x8a3   :  { %v3265_v53 = vpop.eup %3264 }
 0x8a4   :  { %v1764_v5 = vmul.f32 %v3265_v53, %v3263_v4 }
 0x8a6   :  { %v1772_v54 = vpack.c.bf16 %v1764_v5, %v1764_v5 }
 0x8a8   :  { %1806 = vmatmul.mubr.bf16.vlgmr.msra.gmra.mrb[64].mxu0 %v1772_v54  ;;  %1847 = vmatmul.mubr.bf16.vlgmr.msra.gmra.mrb[64].mxu1 %v1772_v54 }
 0x8a9   :  { %1892 = vmatpush1.bf16.msra.mxu0 %v4066_v20  ;;  %1933 = vmatpush1.bf16.msra.mxu1 %v4117_v33 }
 0x8aa   :  { %1893 = vmatprep.subr.bf16.mxu0 %v4070_v22  ;;  %1934 = vmatprep.subr.bf16.mxu1 %v4121_v34 }
 0x8ab   :  { %1923 = vmatprep.mubr.bf16.mxu0 %v4800_v8  ;;  %1964 = vmatprep.mubr.bf16.mxu1 %v4800_v8 }
 0x8ad   :  { %1894 = vmatpush1.bf16.msra.mxu0 %v4126_v14  ;;  %1935 = vmatpush1.bf16.msra.mxu1 %v4129_v28 }
 0x8ae   :  { %1895 = vmatprep.subr.bf16.mxu0 %v4132_v61  ;;  %1936 = vmatprep.subr.bf16.mxu1 %v4135_v7 }
 0x8b1   :  { %1896 = vmatpush1.bf16.msra.mxu0 %v4138_v9  ;;  %1937 = vmatpush1.bf16.msra.mxu1 %v4141_v30 }
 0x8b2   :  { %1897 = vmatprep.subr.bf16.mxu0 %v4144_v11  ;;  %1938 = vmatprep.subr.bf16.mxu1 %v4147_v32 }
 0x8b5   :  { %1898 = vmatpush1.bf16.msra.mxu0 %v4150_v0  ;;  %1939 = vmatpush1.bf16.msra.mxu1 %v4153_v35 }
 0x8b6   :  { %1899 = vmatprep.subr.bf16.mxu0 %v4156_v27  ;;  %1940 = vmatprep.subr.bf16.mxu1 %v4159_v31 }
 0x8b9   :  { %1900 = vmatpush1.bf16.msra.mxu0 %v4162_v52  ;;  %1941 = vmatpush1.bf16.msra.mxu1 %v4165_v12 }
 0x8ba   :  { %1901 = vmatprep.subr.bf16.mxu0 %v4168_v19  ;;  %1942 = vmatprep.subr.bf16.mxu1 %v4171_v18 }
 0x8bd   :  { %1902 = vmatpush1.bf16.msra.mxu0 %v4174_v40  ;;  %1943 = vmatpush1.bf16.msra.mxu1 %v4177_v41 }
 0x8be   :  { %1903 = vmatprep.subr.bf16.mxu0 %v4180_v42  ;;  %1944 = vmatprep.subr.bf16.mxu1 %v4225_v10 }
 0x8c1   :  { %1904 = vmatpush1.bf16.msra.mxu0 %v4228_v17  ;;  %1945 = vmatpush1.bf16.msra.mxu1 %v4231_v43 }
 0x8c2   :  { %1905 = vmatprep.subr.bf16.mxu0 %v4234_v44  ;;  %1946 = vmatprep.subr.bf16.mxu1 %v4237_v45 }
 0x8c5   :  { %1906 = vmatpush1.bf16.msra.mxu0 %v4240_v46  ;;  %1947 = vmatpush1.bf16.msra.mxu1 %v4243_v63 }
 0x8c6   :  { %2009 = vmatprep.subr.bf16.mxu0 %v4102_v38  ;;  %2050 = vmatprep.subr.bf16.mxu1 %v4105_v39 }
 0x97b   :  { %v1807_v21 = vpop.f32.mrb[64].mxu0  ;;  %v1848_v55 = vpop.f32.mrb[64].mxu1 }
 0x97c   :  { %v1855_v57 = vadd.f32 %v1807_v21, %v4820_v56  ;;  %v1857_v59 = vadd.f32 %v1848_v55, %v4821_v58  ;;  %v1809_v60 = vpop.f32.mrb[65].mxu0  ;;  %v1850_v16 = vpop.f32.mrb[65].mxu1 }
 0x97d   :  { %v1856_v36 = vadd.f32 %v1809_v60, %v4822_v13  ;;  %v1858_v15 = vadd.f32 %v1850_v16, %v4823_v37  ;;  %v1811_v23 = vpop.f32.mrb[66].mxu0  ;;  %v1852_v25 = vpop.f32.mrb[66].mxu1  ;;  %v4825_v60 = vld [vmem:[#allocation38_spill] sm:$0xff]  ;;  %v4826_v37 = vld [vmem:[#allocation39_spill] sm:$0xff] }
 0x97e   :  { %v2955_v24 = vmul.f32 -1.442695, %v1855_v57  ;;  %v1812_v6 = vpop.f32.mrb[67].mxu0  ;;  %v1853_v29 = vpop.f32.mrb[67].mxu1  ;;  %v4827_v23 = vld [vmem:[#allocation40_spill] sm:$0xff] }
 0x97f   :  { %v2956_v26 = vmul.f32 -1.442695, %v1856_v36  ;;  %v2957_v62 = vmul.f32 -1.442695, %v1858_v15 }
 0x980   :  { %3266 = vpow2.f32 %v2955_v24 }
 0x981   :  { %3268 = vpow2.f32 %v2956_v26 }
 0x982   :  { %3270 = vpow2.f32 %v2957_v62 }
 0x983   :  { %3272 = vtanh.f32 %v1857_v59 }
 0x98a   :  { %v3267_v48 = vpop.eup %3266 }
 0x98b   :  { %v3269_v2 = vpop.eup %3268  ;;  %v1862_v49 = vadd.f32 1.0, %v3267_v48 }
 0x98c   :  { %v1868_v1 = vadd.f32 1.0, %v3269_v2  ;;  %v3271_v50 = vpop.eup %3270 }
 0x98d   :  { %3274 = vrcp.f32 %v1862_v49  ;;  %v3273_v3 = vpop.eup %3272  ;;  %v1875_v5 = vadd.f32 1.0, %v3271_v50 }
 0x98e   :  { %3276 = vrcp.f32 %v1868_v1 }
 0x98f   :  { %3278 = vrcp.f32 %v1875_v5 }
 0x997   :  { %v3275_v51 = vpop.eup %3274 }
 0x998   :  { %v3277_v4 = vpop.eup %3276  ;;  %v1879_v53 = vmul.f32 %v3275_v51, %v3273_v3 }
 0x999   :  { %v1878_v54 = vmul.f32 %v3277_v4, %v4337_v47  ;;  %v3279_v55 = vpop.eup %3278  ;;  %v4824_v47 = vld [vmem:[#allocation37_spill] sm:$0xff] }
 0x99b   :  { %v4379_v21 = vadd.f32 %v1879_v53, %v1878_v54 }
 0x99d   :  { %3280 = vtanh.f32 %v4379_v21 }
 0x9a7   :  { %v3281_v56 = vpop.eup %3280 }
 0x9a8   :  { %v1882_v57 = vmul.f32 %v3281_v56, %v3279_v55 }
 0x9aa   :  { %v1890_v58 = vpack.c.bf16 %v1882_v57, %v1882_v57 }
 0x9ac   :  { %1924 = vmatmul.mubr.bf16.vlgmr.msra.gmra.mrb[68].mxu0 %v1890_v58  ;;  %1965 = vmatmul.mubr.bf16.vlgmr.msra.gmra.mrb[68].mxu1 %v1890_v58 }
 0x9ad   :  { %2010 = vmatpush1.bf16.msra.mxu0 %v4066_v20  ;;  %2051 = vmatpush1.bf16.msra.mxu1 %v4117_v33 }
 0x9ae   :  { %2011 = vmatprep.subr.bf16.mxu0 %v4070_v22  ;;  %2052 = vmatprep.subr.bf16.mxu1 %v4121_v34 }
 0x9af   :  { %2041 = vmatprep.mubr.bf16.mxu0 %v4800_v8  ;;  %2082 = vmatprep.mubr.bf16.mxu1 %v4800_v8 }
 0x9b1   :  { %2012 = vmatpush1.bf16.msra.mxu0 %v4126_v14  ;;  %2053 = vmatpush1.bf16.msra.mxu1 %v4129_v28 }
 0x9b2   :  { %2013 = vmatprep.subr.bf16.mxu0 %v4132_v61  ;;  %2054 = vmatprep.subr.bf16.mxu1 %v4135_v7 }
 0x9b5   :  { %2014 = vmatpush1.bf16.msra.mxu0 %v4138_v9  ;;  %2055 = vmatpush1.bf16.msra.mxu1 %v4141_v30 }
 0x9b6   :  { %2015 = vmatprep.subr.bf16.mxu0 %v4144_v11  ;;  %2056 = vmatprep.subr.bf16.mxu1 %v4147_v32 }
 0x9b9   :  { %2016 = vmatpush1.bf16.msra.mxu0 %v4150_v0  ;;  %2057 = vmatpush1.bf16.msra.mxu1 %v4153_v35 }
 0x9ba   :  { %2017 = vmatprep.subr.bf16.mxu0 %v4156_v27  ;;  %2058 = vmatprep.subr.bf16.mxu1 %v4159_v31 }
 0x9bd   :  { %2018 = vmatpush1.bf16.msra.mxu0 %v4162_v52  ;;  %2059 = vmatpush1.bf16.msra.mxu1 %v4165_v12 }
 0x9be   :  { %2019 = vmatprep.subr.bf16.mxu0 %v4168_v19  ;;  %2060 = vmatprep.subr.bf16.mxu1 %v4171_v18 }
 0x9c1   :  { %2020 = vmatpush1.bf16.msra.mxu0 %v4174_v40  ;;  %2061 = vmatpush1.bf16.msra.mxu1 %v4177_v41 }
 0x9c2   :  { %2021 = vmatprep.subr.bf16.mxu0 %v4180_v42  ;;  %2062 = vmatprep.subr.bf16.mxu1 %v4225_v10 }
 0x9c5   :  { %2022 = vmatpush1.bf16.msra.mxu0 %v4228_v17  ;;  %2063 = vmatpush1.bf16.msra.mxu1 %v4231_v43 }
 0x9c6   :  { %2023 = vmatprep.subr.bf16.mxu0 %v4234_v44  ;;  %2064 = vmatprep.subr.bf16.mxu1 %v4237_v45 }
 0x9c9   :  { %2024 = vmatpush1.bf16.msra.mxu0 %v4240_v46  ;;  %2065 = vmatpush1.bf16.msra.mxu1 %v4243_v63 }
 0x9ca   :  { %2127 = vmatprep.subr.bf16.mxu0 %v4102_v38  ;;  %2168 = vmatprep.subr.bf16.mxu1 %v4105_v39 }
 0xa7f   :  { %v1925_v20 = vpop.f32.mrb[68].mxu0  ;;  %v1966_v22 = vpop.f32.mrb[68].mxu1 }
 0xa80   :  { %v1973_v59 = vadd.f32 %v1925_v20, %v4824_v47  ;;  %v1975_v16 = vadd.f32 %v1966_v22, %v4825_v60  ;;  %v1927_v13 = vpop.f32.mrb[69].mxu0  ;;  %v1968_v36 = vpop.f32.mrb[69].mxu1  ;;  %v4424_v22 = vld [vmem:[#allocation8] ss:$16 sps:$4 sm:$0xff]   ;;  %v4428_v47 = vld [vmem:[#allocation8 + $0x24] ss:$16 sps:$4 sm:$0xff]  }
 0xa81   :  { %v1974_v15 = vadd.f32 %v1927_v13, %v4826_v37  ;;  %v1976_v25 = vadd.f32 %v1968_v36, %v4827_v23  ;;  %v1929_v24 = vpop.f32.mrb[70].mxu0  ;;  %v1970_v6 = vpop.f32.mrb[70].mxu1 }
 0xa82   :  { %v2958_v29 = vmul.f32 -1.442695, %v1973_v59  ;;  %v1930_v26 = vpop.f32.mrb[71].mxu0  ;;  %v1971_v62 = vpop.f32.mrb[71].mxu1 }
 0xa83   :  { %v2959_v38 = vmul.f32 -1.442695, %v1974_v15  ;;  %v2960_v39 = vmul.f32 -1.442695, %v1976_v25 }
 0xa84   :  { %3282 = vpow2.f32 %v2958_v29 }
 0xa85   :  { %3284 = vpow2.f32 %v2959_v38 }
 0xa86   :  { %3286 = vpow2.f32 %v2960_v39  ;;  %v4475_v39 = vld [vmem:[#allocation8 + $0x8] ss:$16 sps:$4 sm:$0xff]  }
 0xa87   :  { %3288 = vtanh.f32 %v1975_v16 }
 0xa8e   :  { %v3283_v48 = vpop.eup %3282 }
 0xa8f   :  { %v3285_v2 = vpop.eup %3284  ;;  %v1980_v49 = vadd.f32 1.0, %v3283_v48  ;;  %v4479_v48 = vld [vmem:[#allocation8 + $0x2c] ss:$16 sps:$4 sm:$0xff]  }
 0xa90   :  { %v1986_v1 = vadd.f32 1.0, %v3285_v2  ;;  %v3287_v50 = vpop.eup %3286  ;;  %v4484_v2 = vld [vmem:[#allocation8 + $0x20] ss:$16 sps:$4 sm:$0xff]  }
 0xa91   :  { %3290 = vrcp.f32 %v1980_v49  ;;  %v3289_v3 = vpop.eup %3288  ;;  %v1993_v5 = vadd.f32 1.0, %v3287_v50  ;;  %v4487_v49 = vld [vmem:[#allocation8 + $0x28] ss:$16 sps:$4 sm:$0xff]   ;;  %v4493_v50 = vld [vmem:[#allocation8 + $0x4c] ss:$16 sps:$4 sm:$0xff]  }
 0xa92   :  { %3292 = vrcp.f32 %v1986_v1  ;;  %v4490_v1 = vld [vmem:[#allocation8 + $0x44] ss:$16 sps:$4 sm:$0xff]  }
 0xa93   :  { %3294 = vrcp.f32 %v1993_v5  ;;  %v4508_v5 = vld [vmem:[#allocation8 + $0x60] ss:$16 sps:$4 sm:$0xff]  }
 0xa9b   :  { %v3291_v51 = vpop.eup %3290 }
 0xa9c   :  { %v3293_v4 = vpop.eup %3292  ;;  %v1997_v53 = vmul.f32 %v3291_v51, %v3289_v3  ;;  %v4496_v3 = vld [vmem:[#allocation8 + $0x40] ss:$16 sps:$4 sm:$0xff]   ;;  %v4499_v51 = vld [vmem:[#allocation8 + $0x48] ss:$16 sps:$4 sm:$0xff]  }
 0xa9d   :  { %v1996_v54 = vmul.f32 %v3293_v4, %v4379_v21  ;;  %v3295_v56 = vpop.eup %3294  ;;  %v4502_v4 = vld [vmem:[#allocation8 + $0x64] ss:$16 sps:$4 sm:$0xff]  }
 0xa9f   :  { %v4421_v55 = vadd.f32 %v1997_v53, %v1996_v54  ;;  %v4505_v53 = vld [vmem:[#allocation8 + $0x6c] ss:$16 sps:$4 sm:$0xff]   ;;  %v4511_v54 = vld [vmem:[#allocation8 + $0x68] ss:$16 sps:$4 sm:$0xff]  }
 0xaa1   :  { %3296 = vtanh.f32 %v4421_v55 }
 0xaab   :  { %v3297_v57 = vpop.eup %3296 }
 0xaac   :  { %v2000_v58 = vmul.f32 %v3297_v57, %v3295_v56  ;;  %v4517_v56 = vld [vmem:[#allocation8 + $0x8c] ss:$16 sps:$4 sm:$0xff]   ;;  %v4520_v57 = vld [vmem:[#allocation8 + $0x80] ss:$16 sps:$4 sm:$0xff]  }
 0xaae   :  { %v2008_v20 = vpack.c.bf16 %v2000_v58, %v2000_v58  ;;  %v4523_v58 = vld [vmem:[#allocation8 + $0x88] ss:$16 sps:$4 sm:$0xff]  }
 0xab0   :  { %2042 = vmatmul.mubr.bf16.vlgmr.msra.gmra.mrb[72].mxu0 %v2008_v20  ;;  %2083 = vmatmul.mubr.bf16.vlgmr.msra.gmra.mrb[72].mxu1 %v2008_v20  ;;  %v4526_v20 = vld [vmem:[#allocation8 + $0xa4] ss:$16 sps:$4 sm:$0xff]  }
 0xab1   :  { %2128 = vmatpush1.bf16.msra.mxu0 %v4424_v22  ;;  %2169 = vmatpush1.bf16.msra.mxu1 %v4117_v33  ;;  %v4460_v33 = vld [vmem:[#allocation8 + $0x4] ss:$16 sps:$4 sm:$0xff]  }
 0xab2   :  { %2129 = vmatprep.subr.bf16.mxu0 %v4428_v47  ;;  %2170 = vmatprep.subr.bf16.mxu1 %v4121_v34  ;;  %v4463_v34 = vld [vmem:[#allocation8 + $0xc] ss:$16 sps:$4 sm:$0xff]  }
 0xab3   :  { %2159 = vmatprep.mubr.bf16.mxu0 %v4800_v8  ;;  %2200 = vmatprep.mubr.bf16.mxu1 %v4800_v8 }
 0xab5   :  { %2130 = vmatpush1.bf16.msra.mxu0 %v4126_v14  ;;  %2171 = vmatpush1.bf16.msra.mxu1 %v4129_v28 }
 0xab6   :  { %2131 = vmatprep.subr.bf16.mxu0 %v4132_v61  ;;  %2172 = vmatprep.subr.bf16.mxu1 %v4135_v7  ;;  %v4828_v61 = vld [vmem:[#allocation41_spill] sm:$0xff] }
 0xab9   :  { %2132 = vmatpush1.bf16.msra.mxu0 %v4138_v9  ;;  %2173 = vmatpush1.bf16.msra.mxu1 %v4141_v30  ;;  %v4829_v9 = vld [vmem:[#allocation42_spill] sm:$0xff] }
 0xaba   :  { %2133 = vmatprep.subr.bf16.mxu0 %v4144_v11  ;;  %2174 = vmatprep.subr.bf16.mxu1 %v4147_v32 }
 0xabd   :  { %2134 = vmatpush1.bf16.msra.mxu0 %v4150_v0  ;;  %2175 = vmatpush1.bf16.msra.mxu1 %v4153_v35  ;;  %v4830_v0 = vld [vmem:[#allocation43_spill] sm:$0xff] }
 0xabe   :  { %2135 = vmatprep.subr.bf16.mxu0 %v4156_v27  ;;  %2176 = vmatprep.subr.bf16.mxu1 %v4159_v31  ;;  %v4831_v27 = vld [vmem:[#allocation44_spill] sm:$0xff] }
 0xac1   :  { %2136 = vmatpush1.bf16.msra.mxu0 %v4162_v52  ;;  %2177 = vmatpush1.bf16.msra.mxu1 %v4165_v12 }
 0xac2   :  { %2137 = vmatprep.subr.bf16.mxu0 %v4168_v19  ;;  %2178 = vmatprep.subr.bf16.mxu1 %v4171_v18 }
 0xac5   :  { %2138 = vmatpush1.bf16.msra.mxu0 %v4174_v40  ;;  %2179 = vmatpush1.bf16.msra.mxu1 %v4177_v41 }
 0xac6   :  { %2139 = vmatprep.subr.bf16.mxu0 %v4180_v42  ;;  %2180 = vmatprep.subr.bf16.mxu1 %v4225_v10 }
 0xac9   :  { %2140 = vmatpush1.bf16.msra.mxu0 %v4228_v17  ;;  %2181 = vmatpush1.bf16.msra.mxu1 %v4231_v43 }
 0xaca   :  { %2141 = vmatprep.subr.bf16.mxu0 %v4234_v44  ;;  %2182 = vmatprep.subr.bf16.mxu1 %v4237_v45 }
 0xacd   :  { %2142 = vmatpush1.bf16.msra.mxu0 %v4240_v46  ;;  %2183 = vmatpush1.bf16.msra.mxu1 %v4243_v63 }
 0xace   :  { %2245 = vmatprep.subr.bf16.mxu0 %v4460_v33  ;;  %2286 = vmatprep.subr.bf16.mxu1 %v4463_v34 }
 0xb83   :  { %v2043_v14 = vpop.f32.mrb[72].mxu0  ;;  %v2084_v28 = vpop.f32.mrb[72].mxu1 }
 0xb84   :  { %v2091_v7 = vadd.f32 %v2043_v14, %v4828_v61  ;;  %v2093_v30 = vadd.f32 %v2084_v28, %v4829_v9  ;;  %v2045_v11 = vpop.f32.mrb[73].mxu0  ;;  %v2086_v32 = vpop.f32.mrb[73].mxu1  ;;  %v4529_v14 = vld [vmem:[#allocation8 + $0xac] ss:$16 sps:$4 sm:$0xff]   ;;  %v4532_v28 = vld [vmem:[#allocation8 + $0xa0] ss:$16 sps:$4 sm:$0xff]  }
 0xb85   :  { %v2092_v35 = vadd.f32 %v2045_v11, %v4830_v0  ;;  %v2094_v31 = vadd.f32 %v2086_v32, %v4831_v27  ;;  %v2047_v52 = vpop.f32.mrb[74].mxu0  ;;  %v2088_v12 = vpop.f32.mrb[74].mxu1  ;;  %v4535_v61 = vld [vmem:[#allocation8 + $0xa8] ss:$16 sps:$4 sm:$0xff]   ;;  %v4832_v11 = vld [vmem:[#allocation45_spill] sm:$0xff] }
 0xb86   :  { %v2961_v19 = vmul.f32 -1.442695, %v2091_v7  ;;  %v2048_v18 = vpop.f32.mrb[75].mxu0  ;;  %v2089_v40 = vpop.f32.mrb[75].mxu1  ;;  %v4538_v7 = vld [vmem:[#allocation8 + $0xc4] ss:$16 sps:$4 sm:$0xff]  }
 0xb87   :  { %v2962_v41 = vmul.f32 -1.442695, %v2092_v35  ;;  %v2963_v42 = vmul.f32 -1.442695, %v2094_v31  ;;  %v4833_v32 = vld [vmem:[#allocation46_spill] sm:$0xff]  ;;  %v4834_v35 = vld [vmem:[#allocation47_spill] sm:$0xff] }
 0xb88   :  { %3298 = vpow2.f32 %v2961_v19  ;;  %v4835_v27 = vld [vmem:[#allocation48_spill] sm:$0xff] }
 0xb89   :  { %3300 = vpow2.f32 %v2962_v41 }
 0xb8a   :  { %3302 = vpow2.f32 %v2963_v42 }
 0xb8b   :  { %3304 = vtanh.f32 %v2093_v30 }
 0xb92   :  { %v3299_v21 = vpop.eup %3298 }
 0xb93   :  { %v3301_v59 = vpop.eup %3300  ;;  %v2098_v60 = vadd.f32 1.0, %v3299_v21 }
 0xb94   :  { %v2104_v16 = vadd.f32 1.0, %v3301_v59  ;;  %v3303_v13 = vpop.eup %3302 }
 0xb95   :  { %3306 = vrcp.f32 %v2098_v60  ;;  %v3305_v36 = vpop.eup %3304  ;;  %v2111_v25 = vadd.f32 1.0, %v3303_v13 }
 0xb96   :  { %3308 = vrcp.f32 %v2104_v16 }
 0xb97   :  { %3310 = vrcp.f32 %v2111_v25 }
 0xb9f   :  { %v3307_v37 = vpop.eup %3306 }
 0xba0   :  { %v3309_v15 = vpop.eup %3308  ;;  %v2115_v23 = vmul.f32 %v3307_v37, %v3305_v36 }
 0xba1   :  { %v2114_v24 = vmul.f32 %v3309_v15, %v4421_v55  ;;  %v3311_v29 = vpop.eup %3310  ;;  %v4514_v55 = vld [vmem:[#allocation8 + $0x84] ss:$16 sps:$4 sm:$0xff]  }
 0xba3   :  { %v4471_v6 = vadd.f32 %v2115_v23, %v2114_v24 }
 0xba5   :  { %3312 = vtanh.f32 %v4471_v6 }
 0xbaf   :  { %v3313_v26 = vpop.eup %3312 }
 0xbb0   :  { %v2118_v62 = vmul.f32 %v3313_v26, %v3311_v29 }
 0xbb2   :  { %v2126_v38 = vpack.c.bf16 %v2118_v62, %v2118_v62  ;;  %v4586_v62 = vld [vmem:[#allocation8 + $0xc0] ss:$16 sps:$4 sm:$0xff]  }
 0xbb4   :  { %2160 = vmatmul.mubr.bf16.vlgmr.msra.gmra.mrb[76].mxu0 %v2126_v38  ;;  %2201 = vmatmul.mubr.bf16.vlgmr.msra.gmra.mrb[76].mxu1 %v2126_v38  ;;  %v4589_v38 = vld [vmem:[#allocation8 + $0xc8] ss:$16 sps:$4 sm:$0xff]  }
 0xbb5   :  { %2246 = vmatpush1.bf16.msra.mxu0 %v4424_v22  ;;  %2287 = vmatpush1.bf16.msra.mxu1 %v4475_v39 }
 0xbb6   :  { %2247 = vmatprep.subr.bf16.mxu0 %v4428_v47  ;;  %2288 = vmatprep.subr.bf16.mxu1 %v4479_v48 }
 0xbb7   :  { %2277 = vmatprep.mubr.bf16.mxu0 %v4800_v8  ;;  %2318 = vmatprep.mubr.bf16.mxu1 %v4800_v8 }
 0xbb9   :  { %2248 = vmatpush1.bf16.msra.mxu0 %v4484_v2  ;;  %2289 = vmatpush1.bf16.msra.mxu1 %v4487_v49 }
 0xbba   :  { %2249 = vmatprep.subr.bf16.mxu0 %v4490_v1  ;;  %2290 = vmatprep.subr.bf16.mxu1 %v4493_v50 }
 0xbbd   :  { %2250 = vmatpush1.bf16.msra.mxu0 %v4496_v3  ;;  %2291 = vmatpush1.bf16.msra.mxu1 %v4499_v51 }
 0xbbe   :  { %2251 = vmatprep.subr.bf16.mxu0 %v4502_v4  ;;  %2292 = vmatprep.subr.bf16.mxu1 %v4505_v53 }
 0xbc1   :  { %2252 = vmatpush1.bf16.msra.mxu0 %v4508_v5  ;;  %2293 = vmatpush1.bf16.msra.mxu1 %v4511_v54 }
 0xbc2   :  { %2253 = vmatprep.subr.bf16.mxu0 %v4514_v55  ;;  %2294 = vmatprep.subr.bf16.mxu1 %v4517_v56 }
 0xbc5   :  { %2254 = vmatpush1.bf16.msra.mxu0 %v4520_v57  ;;  %2295 = vmatpush1.bf16.msra.mxu1 %v4523_v58 }
 0xbc6   :  { %2255 = vmatprep.subr.bf16.mxu0 %v4526_v20  ;;  %2296 = vmatprep.subr.bf16.mxu1 %v4529_v14 }
 0xbc9   :  { %2256 = vmatpush1.bf16.msra.mxu0 %v4532_v28  ;;  %2297 = vmatpush1.bf16.msra.mxu1 %v4535_v61 }
 0xbca   :  { %2257 = vmatprep.subr.bf16.mxu0 %v4538_v7  ;;  %2298 = vmatprep.subr.bf16.mxu1 %v4225_v10 }
 0xbcd   :  { %2258 = vmatpush1.bf16.msra.mxu0 %v4228_v17  ;;  %2299 = vmatpush1.bf16.msra.mxu1 %v4231_v43 }
 0xbce   :  { %2259 = vmatprep.subr.bf16.mxu0 %v4234_v44  ;;  %2300 = vmatprep.subr.bf16.mxu1 %v4237_v45 }
 0xbd1   :  { %2260 = vmatpush1.bf16.msra.mxu0 %v4240_v46  ;;  %2301 = vmatpush1.bf16.msra.mxu1 %v4243_v63 }
 0xbd2   :  { %2363 = vmatprep.subr.bf16.mxu0 %v4460_v33  ;;  %2404 = vmatprep.subr.bf16.mxu1 %v4463_v34 }
 0xc87   :  { %v2161_v9 = vpop.f32.mrb[76].mxu0  ;;  %v2202_v30 = vpop.f32.mrb[76].mxu1 }
 0xc88   :  { %v2209_v10 = vadd.f32 %v2161_v9, %v4832_v11  ;;  %v2211_v17 = vadd.f32 %v2202_v30, %v4833_v32  ;;  %v2163_v0 = vpop.f32.mrb[77].mxu0  ;;  %v2204_v43 = vpop.f32.mrb[77].mxu1  ;;  %v4592_v9 = vld [vmem:[#allocation8 + $0xe4] ss:$16 sps:$4 sm:$0xff]   ;;  %v4595_v30 = vld [vmem:[#allocation8 + $0xec] ss:$16 sps:$4 sm:$0xff]  }
 0xc89   :  { %v2210_v44 = vadd.f32 %v2163_v0, %v4834_v35  ;;  %v2212_v45 = vadd.f32 %v2204_v43, %v4835_v27  ;;  %v2165_v31 = vpop.f32.mrb[78].mxu0  ;;  %v2206_v46 = vpop.f32.mrb[78].mxu1  ;;  %v4598_v11 = vld [vmem:[#allocation8 + $0xe0] ss:$16 sps:$4 sm:$0xff]   ;;  %v4837_v35 = vld [vmem:[#allocation50_spill] sm:$0xff] }
 0xc8a   :  { %v2964_v52 = vmul.f32 -1.442695, %v2209_v10  ;;  %v2166_v63 = vpop.f32.mrb[79].mxu0  ;;  %v2207_v12 = vpop.f32.mrb[79].mxu1  ;;  %v4601_v10 = vld [vmem:[#allocation8 + $0xe8] ss:$16 sps:$4 sm:$0xff]  }
 0xc8b   :  { %v2965_v19 = vmul.f32 -1.442695, %v2210_v44  ;;  %v2966_v18 = vmul.f32 -1.442695, %v2212_v45  ;;  %v4836_v0 = vld [vmem:[#allocation49_spill] sm:$0xff]  ;;  %v4838_v31 = vld [vmem:[#allocation51_spill] sm:$0xff] }
 0xc8c   :  { %3314 = vpow2.f32 %v2964_v52  ;;  %v4839_v52 = vld [vmem:[#allocation52_spill] sm:$0xff] }
 0xc8d   :  { %3316 = vpow2.f32 %v2965_v19 }
 0xc8e   :  { %3318 = vpow2.f32 %v2966_v18 }
 0xc8f   :  { %3320 = vtanh.f32 %v2211_v17 }
 0xc96   :  { %v3315_v40 = vpop.eup %3314 }
 0xc97   :  { %v3317_v41 = vpop.eup %3316  ;;  %v2216_v42 = vadd.f32 1.0, %v3315_v40 }
 0xc98   :  { %v2222_v21 = vadd.f32 1.0, %v3317_v41  ;;  %v3319_v59 = vpop.eup %3318 }
 0xc99   :  { %3322 = vrcp.f32 %v2216_v42  ;;  %v3321_v60 = vpop.eup %3320  ;;  %v2229_v37 = vadd.f32 1.0, %v3319_v59 }
 0xc9a   :  { %3324 = vrcp.f32 %v2222_v21 }
 0xc9b   :  { %3326 = vrcp.f32 %v2229_v37 }
 0xca3   :  { %v3323_v16 = vpop.eup %3322 }
 0xca4   :  { %v3325_v13 = vpop.eup %3324  ;;  %v2233_v36 = vmul.f32 %v3323_v16, %v3321_v60 }
 0xca5   :  { %v2232_v15 = vmul.f32 %v3325_v13, %v4471_v6  ;;  %v3327_v25 = vpop.eup %3326  ;;  %v4583_v6 = vld [vmem:[#allocation8 + $0xcc] ss:$16 sps:$4 sm:$0xff]  }
 0xca7   :  { %v4555_v23 = vadd.f32 %v2233_v36, %v2232_v15 }
 0xca9   :  { %3328 = vtanh.f32 %v4555_v23 }
 0xcb3   :  { %v3329_v24 = vpop.eup %3328 }
 0xcb4   :  { %v2236_v29 = vmul.f32 %v3329_v24, %v3327_v25 }
 0xcb6   :  { %v2244_v26 = vpack.c.bf16 %v2236_v29, %v2236_v29 }
 0xcb8   :  { %2278 = vmatmul.mubr.bf16.vlgmr.msra.gmra.mrb[80].mxu0 %v2244_v26  ;;  %2319 = vmatmul.mubr.bf16.vlgmr.msra.gmra.mrb[80].mxu1 %v2244_v26 }
 0xcb9   :  { %2364 = vmatpush1.bf16.msra.mxu0 %v4424_v22  ;;  %2405 = vmatpush1.bf16.msra.mxu1 %v4475_v39 }
 0xcba   :  { %2365 = vmatprep.subr.bf16.mxu0 %v4428_v47  ;;  %2406 = vmatprep.subr.bf16.mxu1 %v4479_v48 }
 0xcbb   :  { %2395 = vmatprep.mubr.bf16.mxu0 %v4800_v8  ;;  %2436 = vmatprep.mubr.bf16.mxu1 %v4800_v8 }
 0xcbd   :  { %2366 = vmatpush1.bf16.msra.mxu0 %v4484_v2  ;;  %2407 = vmatpush1.bf16.msra.mxu1 %v4487_v49 }
 0xcbe   :  { %2367 = vmatprep.subr.bf16.mxu0 %v4490_v1  ;;  %2408 = vmatprep.subr.bf16.mxu1 %v4493_v50 }
 0xcc1   :  { %2368 = vmatpush1.bf16.msra.mxu0 %v4496_v3  ;;  %2409 = vmatpush1.bf16.msra.mxu1 %v4499_v51 }
 0xcc2   :  { %2369 = vmatprep.subr.bf16.mxu0 %v4502_v4  ;;  %2410 = vmatprep.subr.bf16.mxu1 %v4505_v53 }
 0xcc5   :  { %2370 = vmatpush1.bf16.msra.mxu0 %v4508_v5  ;;  %2411 = vmatpush1.bf16.msra.mxu1 %v4511_v54 }
 0xcc6   :  { %2371 = vmatprep.subr.bf16.mxu0 %v4514_v55  ;;  %2412 = vmatprep.subr.bf16.mxu1 %v4517_v56 }
 0xcc9   :  { %2372 = vmatpush1.bf16.msra.mxu0 %v4520_v57  ;;  %2413 = vmatpush1.bf16.msra.mxu1 %v4523_v58 }
 0xcca   :  { %2373 = vmatprep.subr.bf16.mxu0 %v4526_v20  ;;  %2414 = vmatprep.subr.bf16.mxu1 %v4529_v14 }
 0xccd   :  { %2374 = vmatpush1.bf16.msra.mxu0 %v4532_v28  ;;  %2415 = vmatpush1.bf16.msra.mxu1 %v4535_v61 }
 0xcce   :  { %2375 = vmatprep.subr.bf16.mxu0 %v4538_v7  ;;  %2416 = vmatprep.subr.bf16.mxu1 %v4583_v6 }
 0xcd1   :  { %2376 = vmatpush1.bf16.msra.mxu0 %v4586_v62  ;;  %2417 = vmatpush1.bf16.msra.mxu1 %v4589_v38 }
 0xcd2   :  { %2377 = vmatprep.subr.bf16.mxu0 %v4592_v9  ;;  %2418 = vmatprep.subr.bf16.mxu1 %v4595_v30 }
 0xcd5   :  { %2378 = vmatpush1.bf16.msra.mxu0 %v4598_v11  ;;  %2419 = vmatpush1.bf16.msra.mxu1 %v4601_v10 }
 0xcd6   :  { %2481 = vmatprep.subr.bf16.mxu0 %v4460_v33  ;;  %2522 = vmatprep.subr.bf16.mxu1 %v4463_v34 }
 0xd8b   :  { %v2279_v32 = vpop.f32.mrb[80].mxu0  ;;  %v2320_v17 = vpop.f32.mrb[80].mxu1 }
 0xd8c   :  { %v2327_v43 = vadd.f32 %v2279_v32, %v4836_v0  ;;  %v2329_v44 = vadd.f32 %v2320_v17, %v4837_v35  ;;  %v2281_v27 = vpop.f32.mrb[81].mxu0  ;;  %v2322_v45 = vpop.f32.mrb[81].mxu1 }
 0xd8d   :  { %v2328_v46 = vadd.f32 %v2281_v27, %v4838_v31  ;;  %v2330_v63 = vadd.f32 %v2322_v45, %v4839_v52  ;;  %v2283_v12 = vpop.f32.mrb[82].mxu0  ;;  %v2324_v19 = vpop.f32.mrb[82].mxu1  ;;  %v4840_v27 = vld [vmem:[#allocation53_spill] sm:$0xff]  ;;  %v4841_v31 = vld [vmem:[#allocation54_spill] sm:$0xff] }
 0xd8e   :  { %v2967_v18 = vmul.f32 -1.442695, %v2327_v43  ;;  %v2284_v40 = vpop.f32.mrb[83].mxu0  ;;  %v2325_v41 = vpop.f32.mrb[83].mxu1  ;;  %v4842_v12 = vld [vmem:[#allocation55_spill] sm:$0xff] }
 0xd8f   :  { %v2968_v42 = vmul.f32 -1.442695, %v2328_v46  ;;  %v2969_v21 = vmul.f32 -1.442695, %v2330_v63 }
 0xd90   :  { %3330 = vpow2.f32 %v2967_v18  ;;  %v4843_v18 = vld [vmem:[#allocation56_spill] sm:$0xff] }
 0xd91   :  { %3332 = vpow2.f32 %v2968_v42 }
 0xd92   :  { %3334 = vpow2.f32 %v2969_v21 }
 0xd93   :  { %3336 = vtanh.f32 %v2329_v44 }
 0xd9a   :  { %v3331_v59 = vpop.eup %3330 }
 0xd9b   :  { %v3333_v60 = vpop.eup %3332  ;;  %v2334_v16 = vadd.f32 1.0, %v3331_v59 }
 0xd9c   :  { %v2340_v13 = vadd.f32 1.0, %v3333_v60  ;;  %v3335_v36 = vpop.eup %3334 }
 0xd9d   :  { %3338 = vrcp.f32 %v2334_v16  ;;  %v3337_v37 = vpop.eup %3336  ;;  %v2347_v29 = vadd.f32 1.0, %v3335_v36 }
 0xd9e   :  { %3340 = vrcp.f32 %v2340_v13 }
 0xd9f   :  { %3342 = vrcp.f32 %v2347_v29 }
 0xda7   :  { %v3339_v15 = vpop.eup %3338 }
 0xda8   :  { %v3341_v25 = vpop.eup %3340  ;;  %v2351_v24 = vmul.f32 %v3339_v15, %v3337_v37 }
 0xda9   :  { %v2350_v26 = vmul.f32 %v3341_v25, %v4555_v23  ;;  %v3343_v17 = vpop.eup %3342 }
 0xdab   :  { %v4611_v32 = vadd.f32 %v2351_v24, %v2350_v26 }
 0xdad   :  { %3344 = vtanh.f32 %v4611_v32 }
 0xdb7   :  { %v3345_v0 = vpop.eup %3344 }
 0xdb8   :  { %v2354_v43 = vmul.f32 %v3345_v0, %v3343_v17 }
 0xdba   :  { %v2362_v35 = vpack.c.bf16 %v2354_v43, %v2354_v43 }
 0xdbc   :  { %2396 = vmatmul.mubr.bf16.vlgmr.msra.gmra.mrb[84].mxu0 %v2362_v35  ;;  %2437 = vmatmul.mubr.bf16.vlgmr.msra.gmra.mrb[84].mxu1 %v2362_v35 }
 0xdbd   :  { %2482 = vmatpush1.bf16.msra.mxu0 %v4424_v22  ;;  %2523 = vmatpush1.bf16.msra.mxu1 %v4475_v39 }
 0xdbe   :  { %2483 = vmatprep.subr.bf16.mxu0 %v4428_v47  ;;  %2524 = vmatprep.subr.bf16.mxu1 %v4479_v48 }
 0xdbf   :  { %2513 = vmatprep.mubr.bf16.mxu0 %v4800_v8  ;;  %2554 = vmatprep.mubr.bf16.mxu1 %v4800_v8 }
 0xdc1   :  { %2484 = vmatpush1.bf16.msra.mxu0 %v4484_v2  ;;  %2525 = vmatpush1.bf16.msra.mxu1 %v4487_v49 }
 0xdc2   :  { %2485 = vmatprep.subr.bf16.mxu0 %v4490_v1  ;;  %2526 = vmatprep.subr.bf16.mxu1 %v4493_v50 }
 0xdc5   :  { %2486 = vmatpush1.bf16.msra.mxu0 %v4496_v3  ;;  %2527 = vmatpush1.bf16.msra.mxu1 %v4499_v51 }
 0xdc6   :  { %2487 = vmatprep.subr.bf16.mxu0 %v4502_v4  ;;  %2528 = vmatprep.subr.bf16.mxu1 %v4505_v53 }
 0xdc9   :  { %2488 = vmatpush1.bf16.msra.mxu0 %v4508_v5  ;;  %2529 = vmatpush1.bf16.msra.mxu1 %v4511_v54 }
 0xdca   :  { %2489 = vmatprep.subr.bf16.mxu0 %v4514_v55  ;;  %2530 = vmatprep.subr.bf16.mxu1 %v4517_v56 }
 0xdcd   :  { %2490 = vmatpush1.bf16.msra.mxu0 %v4520_v57  ;;  %2531 = vmatpush1.bf16.msra.mxu1 %v4523_v58 }
 0xdce   :  { %2491 = vmatprep.subr.bf16.mxu0 %v4526_v20  ;;  %2532 = vmatprep.subr.bf16.mxu1 %v4529_v14 }
 0xdd1   :  { %2492 = vmatpush1.bf16.msra.mxu0 %v4532_v28  ;;  %2533 = vmatpush1.bf16.msra.mxu1 %v4535_v61 }
 0xdd2   :  { %2493 = vmatprep.subr.bf16.mxu0 %v4538_v7  ;;  %2534 = vmatprep.subr.bf16.mxu1 %v4583_v6 }
 0xdd5   :  { %2494 = vmatpush1.bf16.msra.mxu0 %v4586_v62  ;;  %2535 = vmatpush1.bf16.msra.mxu1 %v4589_v38 }
 0xdd6   :  { %2495 = vmatprep.subr.bf16.mxu0 %v4592_v9  ;;  %2536 = vmatprep.subr.bf16.mxu1 %v4595_v30 }
 0xdd9   :  { %2496 = vmatpush1.bf16.msra.mxu0 %v4598_v11  ;;  %2537 = vmatpush1.bf16.msra.mxu1 %v4601_v10 }
 0xdda   :  { %2599 = vmatprep.subr.bf16.mxu0 %v4460_v33  ;;  %2640 = vmatprep.subr.bf16.mxu1 %v4463_v34 }
 0xe8f   :  { %v2397_v23 = vpop.f32.mrb[84].mxu0  ;;  %v2438_v44 = vpop.f32.mrb[84].mxu1 }
 0xe90   :  { %v2445_v45 = vadd.f32 %v2397_v23, %v4840_v27  ;;  %v2447_v46 = vadd.f32 %v2438_v44, %v4841_v31  ;;  %v2399_v52 = vpop.f32.mrb[85].mxu0  ;;  %v2440_v63 = vpop.f32.mrb[85].mxu1 }
 0xe91   :  { %v2446_v19 = vadd.f32 %v2399_v52, %v4842_v12  ;;  %v2448_v40 = vadd.f32 %v2440_v63, %v4843_v18  ;;  %v2401_v41 = vpop.f32.mrb[86].mxu0  ;;  %v2442_v42 = vpop.f32.mrb[86].mxu1  ;;  %v3130_v52 = vld [vmem:[%s4744_s4] sm:$0xff]   ;;  %v3536_v63 = vmov 0.0   ;;  %v3131_v12 = vld [vmem:[%s4744_s4 + $0x8] sm:$0xff]   ;;  %v3133_v18 = vld [vmem:[%s4744_s4 + $0x18] sm:$0xff]  }
 0xe92   :  { %v2970_v21 = vmul.f32 -1.442695, %v2445_v45  ;;  %v2402_v59 = vpop.f32.mrb[87].mxu0  ;;  %v2443_v60 = vpop.f32.mrb[87].mxu1  ;;  %v3135_v41 = vld [vmem:[%s4744_s4 + $0x28] sm:$0xff]   ;;  %v3136_v42 = vld [vmem:[%s4744_s4 + $0x30] sm:$0xff]  }
 0xe93   :  { %v2971_v33 = vmul.f32 -1.442695, %v2446_v19  ;;  %v2972_v34 = vmul.f32 -1.442695, %v2448_v40  ;;  %v3132_v19 = vld [vmem:[%s4744_s4 + $0x10] sm:$0xff]   ;;  %v3134_v40 = vld [vmem:[%s4744_s4 + $0x20] sm:$0xff]  }
 0xe94   :  { %3346 = vpow2.f32 %v2970_v21  ;;  %v3137_v21 = vld [vmem:[%s4744_s4 + $0x38] sm:$0xff]  }
 0xe95   :  { %3348 = vpow2.f32 %v2971_v33  ;;  %v4848_v33 = vld [vmem:[#allocation61_spill] sm:$0xff] }
 0xe96   :  { %3350 = vpow2.f32 %v2972_v34 }
 0xe97   :  { %3352 = vtanh.f32 %v2447_v46 }
 0xe9e   :  { %v3347_v16 = vpop.eup %3346 }
 0xe9f   :  { %v3349_v13 = vpop.eup %3348  ;;  %v2452_v36 = vadd.f32 1.0, %v3347_v16  ;;  %v4849_v16 = vld [vmem:[#allocation62_spill] sm:$0xff] }
 0xea0   :  { %v2458_v37 = vadd.f32 1.0, %v3349_v13  ;;  %v3351_v15 = vpop.eup %3350 }
 0xea1   :  { %3354 = vrcp.f32 %v2452_v36  ;;  %v3353_v25 = vpop.eup %3352  ;;  %v2465_v17 = vadd.f32 1.0, %v3351_v15  ;;  %v4850_v15 = vld [vmem:[#allocation63_spill] sm:$0xff] }
 0xea2   :  { %3356 = vrcp.f32 %v2458_v37 }
 0xea3   :  { %3358 = vrcp.f32 %v2465_v17 }
 0xeab   :  { %v3355_v24 = vpop.eup %3354 }
 0xeac   :  { %v3357_v29 = vpop.eup %3356  ;;  %v2469_v26 = vmul.f32 %v3355_v24, %v3353_v25  ;;  %v4851_v24 = vld [vmem:[#allocation64_spill] sm:$0xff] }
 0xead   :  { %v2468_v0 = vmul.f32 %v3357_v29, %v4611_v32  ;;  %v3359_v35 = vpop.eup %3358 }
 0xeaf   :  { %v4653_v43 = vadd.f32 %v2469_v26, %v2468_v0 }
 0xeb1   :  { %3360 = vtanh.f32 %v4653_v43 }
 0xebb   :  { %v3361_v23 = vpop.eup %3360 }
 0xebc   :  { %v2472_v44 = vmul.f32 %v3361_v23, %v3359_v35 }
 0xebe   :  { %v2480_v27 = vpack.c.bf16 %v2472_v44, %v2472_v44 }
 0xec0   :  { %2514 = vmatmul.mubr.bf16.vlgmr.msra.gmra.mrb[88].mxu0 %v2480_v27  ;;  %2555 = vmatmul.mubr.bf16.vlgmr.msra.gmra.mrb[88].mxu1 %v2480_v27 }
 0xec1   :  { %2600 = vmatpush1.bf16.msra.mxu0 %v4424_v22  ;;  %2641 = vmatpush1.bf16.msra.mxu1 %v4475_v39 }
 0xec2   :  { %2601 = vmatprep.subr.bf16.mxu0 %v4428_v47  ;;  %2642 = vmatprep.subr.bf16.mxu1 %v4479_v48  ;;  %v4844_v47 = vld [vmem:[#allocation57_spill] sm:$0xff]  ;;  %v4845_v48 = vld [vmem:[#allocation58_spill] sm:$0xff] }
 0xec3   :  { %2631 = vmatprep.mubr.bf16.mxu0 %v4800_v8  ;;  %2672 = vmatprep.mubr.bf16.mxu1 %v4800_v8 }
 0xec5   :  { %2602 = vmatpush1.bf16.msra.mxu0 %v4484_v2  ;;  %2643 = vmatpush1.bf16.msra.mxu1 %v4487_v49 }
 0xec6   :  { %2603 = vmatprep.subr.bf16.mxu0 %v4490_v1  ;;  %2644 = vmatprep.subr.bf16.mxu1 %v4493_v50  ;;  %v4846_v50 = vld [vmem:[#allocation59_spill] sm:$0xff] }
 0xec9   :  { %2604 = vmatpush1.bf16.msra.mxu0 %v4496_v3  ;;  %2645 = vmatpush1.bf16.msra.mxu1 %v4499_v51  ;;  %v4847_v51 = vld [vmem:[#allocation60_spill] sm:$0xff] }
 0xeca   :  { %2605 = vmatprep.subr.bf16.mxu0 %v4502_v4  ;;  %2646 = vmatprep.subr.bf16.mxu1 %v4505_v53 }
 0xecd   :  { %2606 = vmatpush1.bf16.msra.mxu0 %v4508_v5  ;;  %2647 = vmatpush1.bf16.msra.mxu1 %v4511_v54 }
 0xece   :  { %2607 = vmatprep.subr.bf16.mxu0 %v4514_v55  ;;  %2648 = vmatprep.subr.bf16.mxu1 %v4517_v56 }
 0xed1   :  { %2608 = vmatpush1.bf16.msra.mxu0 %v4520_v57  ;;  %2649 = vmatpush1.bf16.msra.mxu1 %v4523_v58 }
 0xed2   :  { %2609 = vmatprep.subr.bf16.mxu0 %v4526_v20  ;;  %2650 = vmatprep.subr.bf16.mxu1 %v4529_v14 }
 0xed5   :  { %2610 = vmatpush1.bf16.msra.mxu0 %v4532_v28  ;;  %2651 = vmatpush1.bf16.msra.mxu1 %v4535_v61 }
 0xed6   :  { %2611 = vmatprep.subr.bf16.mxu0 %v4538_v7  ;;  %2652 = vmatprep.subr.bf16.mxu1 %v4583_v6 }
 0xed9   :  { %2612 = vmatpush1.bf16.msra.mxu0 %v4586_v62  ;;  %2653 = vmatpush1.bf16.msra.mxu1 %v4589_v38 }
 0xeda   :  { %2613 = vmatprep.subr.bf16.mxu0 %v4592_v9  ;;  %2654 = vmatprep.subr.bf16.mxu1 %v4595_v30 }
 0xedd   :  { %2614 = vmatpush1.bf16.msra.mxu0 %v4598_v11  ;;  %2655 = vmatpush1.bf16.msra.mxu1 %v4601_v10 }
 0xede   :  { %2997 = vmatprep.subr.bf16.mxu0 %v3536_v63 }
 0xf93   :  { %v2515_v8 = vpop.f32.mrb[88].mxu0  ;;  %v2556_v22 = vpop.f32.mrb[88].mxu1 }
 0xf94   :  { %v2563_v39 = vadd.f32 %v2515_v8, %v4844_v47  ;;  %v2565_v2 = vadd.f32 %v2556_v22, %v4845_v48  ;;  %v2517_v49 = vpop.f32.mrb[89].mxu0  ;;  %v2558_v1 = vpop.f32.mrb[89].mxu1 }
 0xf95   :  { %v2564_v3 = vadd.f32 %v2517_v49, %v4846_v50  ;;  %v2566_v4 = vadd.f32 %v2558_v1, %v4847_v51  ;;  %v2519_v53 = vpop.f32.mrb[90].mxu0  ;;  %v2560_v5 = vpop.f32.mrb[90].mxu1 }
 0xf96   :  { %v2973_v54 = vmul.f32 -1.442695, %v2563_v39  ;;  %v2520_v55 = vpop.f32.mrb[91].mxu0  ;;  %v2561_v56 = vpop.f32.mrb[91].mxu1 }
 0xf97   :  { %v2974_v57 = vmul.f32 -1.442695, %v2564_v3  ;;  %v2975_v58 = vmul.f32 -1.442695, %v2566_v4  ;;  %v2979_v55 = vld [vmem:[%s4745_s5] ss:$0 sm:$0xff] }
 0xf98   :  { %3362 = vpow2.f32 %v2973_v54 }
 0xf99   :  { %3364 = vpow2.f32 %v2974_v57 }
 0xf9a   :  { %3366 = vpow2.f32 %v2975_v58 }
 0xf9b   :  { %3368 = vtanh.f32 %v2565_v2 }
 0xfa2   :  { %v3363_v20 = vpop.eup %3362 }
 0xfa3   :  { %v3365_v14 = vpop.eup %3364  ;;  %v2570_v28 = vadd.f32 1.0, %v3363_v20 }
 0xfa4   :  { %v2576_v61 = vadd.f32 1.0, %v3365_v14  ;;  %v3367_v7 = vpop.eup %3366 }
 0xfa5   :  { %3370 = vrcp.f32 %v2570_v28  ;;  %v3369_v6 = vpop.eup %3368  ;;  %v2583_v30 = vadd.f32 1.0, %v3367_v7 }
 0xfa6   :  { %3372 = vrcp.f32 %v2576_v61 }
 0xfa7   :  { %3374 = vrcp.f32 %v2583_v30 }
 0xfaf   :  { %v3371_v62 = vpop.eup %3370 }
 0xfb0   :  { %v3373_v38 = vpop.eup %3372  ;;  %v2587_v9 = vmul.f32 %v3371_v62, %v3369_v6 }
 0xfb1   :  { %v2586_v11 = vmul.f32 %v3373_v38, %v4653_v43  ;;  %v3375_v32 = vpop.eup %3374 }
 0xfb3   :  { %v4693_v10 = vadd.f32 %v2587_v9, %v2586_v11 }
 0xfb5   :  { %3376 = vtanh.f32 %v4693_v10 }
 0xfbf   :  { %v3377_v45 = vpop.eup %3376 }
 0xfc0   :  { %v2590_v31 = vmul.f32 %v3377_v45, %v3375_v32 }
 0xfc2   :  { %v2598_v46 = vpack.c.bf16 %v2590_v31, %v2590_v31 }
 0xfc4   :  { %2632 = vmatmul.mubr.bf16.vlgmr.msra.gmra.mrb[92].mxu0 %v2598_v46  ;;  %2673 = vmatmul.mubr.bf16.vlgmr.msra.gmra.mrb[92].mxu1 %v2598_v46 }
 0xfc5   :  { %2998 = vmatpush3.bf16.msra.mxu0 %v3130_v52  ;;  %3013 = vmatprep.mubr.msk.bf16.mxu0 %vm3537_vm0, %v3536_v63 }
 0xfc6   :  { %2999 = vmatprep.subr.bf16.mxu0 %v3536_v63 }
 0xfc9   :  { %3000 = vmatpush3.bf16.msra.mxu0 %v3131_v12 }
 0xfca   :  { %3001 = vmatprep.subr.bf16.mxu0 %v3536_v63 }
 0xfcd   :  { %3002 = vmatpush3.bf16.msra.mxu0 %v3132_v19 }
 0xfce   :  { %3003 = vmatprep.subr.bf16.mxu0 %v3536_v63 }
 0xfd1   :  { %3004 = vmatpush3.bf16.msra.mxu0 %v3133_v18 }
 0xfd2   :  { %3005 = vmatprep.subr.bf16.mxu0 %v3536_v63 }
 0xfd5   :  { %3006 = vmatpush3.bf16.msra.mxu0 %v3134_v40 }
 0xfd6   :  { %3007 = vmatprep.subr.bf16.mxu0 %v3536_v63 }
 0xfd9   :  { %3008 = vmatpush3.bf16.msra.mxu0 %v3135_v41 }
 0xfda   :  { %3009 = vmatprep.subr.bf16.mxu0 %v3536_v63 }
 0xfdd   :  { %3010 = vmatpush3.bf16.msra.mxu0 %v3136_v42 }
 0xfde   :  { %3011 = vmatprep.subr.bf16.mxu0 %v3536_v63 }
 0xfe1   :  { %3012 = vmatpush3.bf16.msra.mxu0 %v3137_v21 }
0x1097   :  { %v2633_v59 = vpop.f32.mrb[92].mxu0  ;;  %v2674_v60 = vpop.f32.mrb[92].mxu1 }
0x1098   :  { %v2681_v34 = vadd.f32 %v2633_v59, %v4848_v33  ;;  %v2683_v13 = vadd.f32 %v2674_v60, %v4849_v16  ;;  %v2635_v36 = vpop.f32.mrb[93].mxu0  ;;  %v2676_v37 = vpop.f32.mrb[93].mxu1 }
0x1099   :  { %v2682_v25 = vadd.f32 %v2635_v36, %v4850_v15  ;;  %v2684_v29 = vadd.f32 %v2676_v37, %v4851_v24  ;;  %v2637_v26 = vpop.f32.mrb[94].mxu0  ;;  %v2678_v17 = vpop.f32.mrb[94].mxu1 }
0x109a   :  { %v2976_v0 = vmul.f32 -1.442695, %v2681_v34  ;;  %v2638_v43 = vpop.f32.mrb[95].mxu0  ;;  %v2679_v35 = vpop.f32.mrb[95].mxu1 }
0x109b   :  { %v2977_v23 = vmul.f32 -1.442695, %v2682_v25  ;;  %v2978_v44 = vmul.f32 -1.442695, %v2684_v29 }
0x109c   :  { %3378 = vpow2.f32 %v2976_v0 }
0x109d   :  { %3380 = vpow2.f32 %v2977_v23 }
0x109e   :  { %3382 = vpow2.f32 %v2978_v44 }
0x109f   :  { %3384 = vtanh.f32 %v2683_v13 }
0x10a6   :  { %v3379_v27 = vpop.eup %3378 }
0x10a7   :  { %v3381_v8 = vpop.eup %3380  ;;  %v2688_v22 = vadd.f32 1.0, %v3379_v27 }
0x10a8   :  { %v2694_v47 = vadd.f32 1.0, %v3381_v8  ;;  %v3383_v39 = vpop.eup %3382 }
0x10a9   :  { %3386 = vrcp.f32 %v2688_v22  ;;  %v3385_v48 = vpop.eup %3384  ;;  %v2701_v50 = vadd.f32 1.0, %v3383_v39 }
0x10aa   :  { %3388 = vrcp.f32 %v2694_v47 }
0x10ab   :  { %3390 = vrcp.f32 %v2701_v50 }
0x10b3   :  { %v3387_v2 = vpop.eup %3386 }
0x10b4   :  { %v3389_v49 = vpop.eup %3388  ;;  %v2705_v1 = vmul.f32 %v3387_v2, %v3385_v48 }
0x10b5   :  { %v2704_v3 = vmul.f32 %v3389_v49, %v4693_v10  ;;  %v3391_v4 = vpop.eup %3390 }
0x10b7   :  { %v2706_v51 = vadd.f32 %v2705_v1, %v2704_v3 }
0x10b9   :  { %3392 = vtanh.f32 %v2706_v51 }
0x10c3   :  { %v3393_v53 = vpop.eup %3392 }
0x10c4   :  { %v2708_v5 = vmul.f32 %v3393_v53, %v3391_v4 }
0x10c6   :  { %v2714_v54 = vpack.c.bf16 %v2708_v5, %v2708_v5 }
0x10c8   :  { %3014 = vmatmul.mubr.bf16.vlgmr.msra.gmra.mrb[96].mxu0 %v2714_v54 }
0x119b   :  { %v2820_v56 = vpop.f32.mrb[96].mxu0 }
0x119c   :  { %v2821_v57 = vadd.f32 %v2979_v55, %v2820_v56  ;;  %v3015_v58 = vpop.f32.mrb[97].mxu0 }
0x119d   :  { %v2823_v20 = vpop.f32.mrb[98].mxu0 }
0x119e   :  { %v3016_v14 = vpop.f32.mrb[99].mxu0  ;;  %2827 = vst.msk [vmem:[#allocation10] sm:$0xff] %vm2826_vm1, %v2821_v57 }
0x119f   :  { %3513 = shalt.err (!%p3510_p6)
}
0x11a0   :  { %s3514_s5 = scalar_lea.hbm %s4746_s6, 128 }
0x11a1   :  { %p3515_p7 = scmp.ne.s32.totalorder %s4746_s6, %s3514_s5  ;;  %p3518_p8 = scmp.lt.u32.totalorder %s3514_s5, %s4746_s6 }
0x11a3   :  { %p3520_p9 = pnand %p3518_p8, %p3515_p7 }
0x11a5   :  { %3523 = shalt.err (!%p3520_p9)
}
0x11a6   :  { %2837 = dma.vmem_to_hbm [thread:$0]  %s2835_s29, 128, %s4746_s6, [#allocation7]  }
0x11a7   :  { %3528 = dma.done.wait [#allocation7], 128  }
0x11a8   :  { %3529 = vsyncadd [#allocation7], 4294967168 }
0x11a9   :  { %2841 = vsyncpa [#allocation6], 1 }
0x11aa   :  { %2842 = vsyncpa [#allocation9], 1 }
0x11ab   :  { %2843 = vsyncpa [#allocation7], 1 }

</bundles_post_ra>
